<compile_context>
chip_gen: v6e
topology: v6e:2x2x1
jax: 0.10.0
libtpu: 0.0.40
codegen_flags: <defaults>
</compile_context>

<pallas_src>
import functools

import jax
import jax.numpy as jnp
from jax import lax
from jax.experimental import pallas as pl
from jax.experimental.pallas import tpu as pltpu


# dimension_numbers for x @ W^T when W is stored PyTorch-style as (out, in)
_DN_TRANS_B = (((1,), (1,)), ((), ()))


def block_kernel(x_ref, ln1g_ref, ln1b_ref, wqkv_ref, wo_ref, bo_ref, mask_ref,
                 ln2g_ref, ln2b_ref, w1_ref, b1_ref, w2_ref, b2_ref, o_ref,
                 *, n_head):
    """o = y1 + FFN(LN2(y1)),  y1 = x + proj(MHA(LN1(x)))   (one batch tile)."""
    bt, T, D = x_ref.shape
    hs = D // n_head
    R = bt * T
    scale = 1.0 / (D ** 0.5)          # PyTorch module uses C**-0.5 with C = n_embd

    x = x_ref[...].astype(jnp.float32).reshape(R, D)          # fold batch into rows

    # ---- LayerNorm (ln1), f32 ----
    mean = jnp.mean(x, axis=-1, keepdims=True)
    var = jnp.mean((x - mean) ** 2, axis=-1, keepdims=True)
    xn = (x - mean) * lax.rsqrt(var + 1e-5) * ln1g_ref[...] + ln1b_ref[...]

    # ---- fused QKV projection: one (R, 3D) matmul, bf16 operands / f32 acc ----
    qkv = lax.dot_general(xn.astype(jnp.bfloat16), wqkv_ref[...], _DN_TRANS_B,
                          preferred_element_type=jnp.float32)
    qkv = qkv.astype(jnp.bfloat16)                             # (R, 3D)

    mask_bias = mask_ref[...]                                  # (T, T): 0 / -1e30

    # ---- per-head causal attention (bf16 operands on both MXU matmuls) ----
    # TODO(synk): for large n_head / realistic T, drive this with a kv-tiled
    # flash-style loop instead of a static head unroll.
    head_outs = []
    for h in range(n_head):
        q = qkv[:, h * hs:(h + 1) * hs].reshape(bt, T, hs)
        k = qkv[:, D + h * hs:D + (h + 1) * hs].reshape(bt, T, hs)
        v = qkv[:, 2 * D + h * hs:2 * D + (h + 1) * hs].reshape(bt, T, hs)

        s = jnp.einsum('btd,bsd->bts', q, k,
                       preferred_element_type=jnp.float32) * scale + mask_bias
        s = s - jnp.max(s, axis=-1, keepdims=True)
        p = jnp.exp(s)
        p = p * pl.reciprocal(jnp.sum(p, axis=-1, keepdims=True), approx=True)
        # TODO(synk): training-mode attention dropout would mask `p` here.
        head_outs.append(jnp.einsum('bts,bsd->btd', p.astype(jnp.bfloat16), v,
                                    preferred_element_type=jnp.float32))

    att = jnp.concatenate(head_outs, axis=-1).reshape(R, D)    # concat heads -> (R, D)

    # ---- output projection (single D x D matmul) + residual ----
    y1 = x + lax.dot_general(att.astype(jnp.bfloat16), wo_ref[...], _DN_TRANS_B,
                             preferred_element_type=jnp.float32) + bo_ref[...]

    # ---- LayerNorm (ln2) + FeedForward + residual, fused (y1 stays in VMEM) ----
    mean2 = jnp.mean(y1, axis=-1, keepdims=True)
    var2 = jnp.mean((y1 - mean2) ** 2, axis=-1, keepdims=True)
    y1n = (y1 - mean2) * lax.rsqrt(var2 + 1e-5) * ln2g_ref[...] + ln2b_ref[...]

    hdd = lax.dot_general(y1n.astype(jnp.bfloat16), w1_ref[...], _DN_TRANS_B,
                          preferred_element_type=jnp.float32) + b1_ref[...]
    hdd = jnp.maximum(hdd, 0.0)                                # ReLU
    y2 = lax.dot_general(hdd.astype(jnp.bfloat16), w2_ref[...], _DN_TRANS_B,
                         preferred_element_type=jnp.float32) + b2_ref[...]
    # TODO(synk): training-mode dropout on `y2` would use pltpu.prng_seed +
    # pltpu.stateful_bernoulli.

    o_ref[...] = (y1 + y2).reshape(bt, T, D).astype(o_ref.dtype)


def block_forward(x, params):
    """Forward pass of the PyTorch `Block` (eval mode).  x: (B, T, D) float32."""
    B, T, D = x.shape
    H, hs, _ = params["wq"].shape
    f32, bf16 = jnp.float32, jnp.bfloat16

    ln1_g = params["ln1_g"].reshape(1, D).astype(f32)
    ln1_b = params["ln1_b"].reshape(1, D).astype(f32)
    ln2_g = params["ln2_g"].reshape(1, D).astype(f32)
    ln2_b = params["ln2_b"].reshape(1, D).astype(f32)
    bo = params["bo"].reshape(1, D).astype(f32)
    b1 = params["b1"].reshape(1, D).astype(f32)
    b2 = params["b2"].reshape(1, D).astype(f32)

    # bf16 weights for the MXU, kept in PyTorch (out, in) layout.
    # Stack Q/K/V into one (3*D, D) weight -> one full-width projection matmul.
    wqkv = jnp.concatenate([params["wq"].reshape(D, D),
                            params["wk"].reshape(D, D),
                            params["wv"].reshape(D, D)], axis=0).astype(bf16)
    wo = params["wo"].astype(bf16)                 # (D, D)
    w1 = params["w1"].astype(bf16)                 # (D, D)
    w2 = params["w2"].astype(bf16)                 # (D, D)

    # Precomputed additive causal mask (0 where allowed, -1e30 where masked).
    mask_bias = jnp.where(jnp.tril(jnp.ones((T, T), dtype=bool)),
                          0.0, -1e30).astype(f32)

    # Batch-tile: target ~256 rows per grid step, but keep >= 2 "parallel" grid
    # steps when B >= 2 so v7x's two TensorCores both get work.
    bt = max(1, min(B, max(1, 256 // T)))
    if B >= 2:
        bt = min(bt, max(1, B // 2))
    while B % bt:
        bt -= 1

    # VMEM budget from actual tile sizes (weights + biases are double-buffered by
    # default), capped at 48 MiB to leave headroom on v7x (64 MiB physical).
    vmem_limit = min(48 << 20,
                     2 * (6 * D * D * 2)           # resident bf16 weights x 2 buffers
                     + 2 * 2 * (bt * T * D * 4)    # x / out blocks, double-buffered
                     + (16 << 20))                 # headroom for compiler temporaries

    cparams = pltpu.CompilerParams(
        dimension_semantics=("parallel",),
        vmem_limit_bytes=int(vmem_limit),
    )

    kernel = functools.partial(block_kernel, n_head=H)
    const2 = lambda i: (0, 0)

    out = pl.pallas_call(
        kernel,
        out_shape=jax.ShapeDtypeStruct((B, T, D), x.dtype),
        grid_spec=pltpu.PrefetchScalarGridSpec(
            num_scalar_prefetch=0,
            grid=(B // bt,),
            in_specs=[
                pl.BlockSpec((bt, T, D), lambda i: (i, 0, 0)),   # x tile (bt batches)
                pl.BlockSpec((1, D), const2),                    # ln1 gamma
                pl.BlockSpec((1, D), const2),                    # ln1 beta
                pl.BlockSpec((3 * D, D), const2),                # Wqkv (resident)
                pl.BlockSpec((D, D), const2),                    # Wo   (resident)
                pl.BlockSpec((1, D), const2),                    # proj bias
                pl.BlockSpec((T, T), const2),                    # causal mask bias
                pl.BlockSpec((1, D), const2),                    # ln2 gamma
                pl.BlockSpec((1, D), const2),                    # ln2 beta
                pl.BlockSpec((D, D), const2),                    # W1 (resident)
                pl.BlockSpec((1, D), const2),                    # b1
                pl.BlockSpec((D, D), const2),                    # W2 (resident)
                pl.BlockSpec((1, D), const2),                    # b2
            ],
            out_specs=pl.BlockSpec((bt, T, D), lambda i: (i, 0, 0)),
        ),
        compiler_params=cparams,
    )(x, ln1_g, ln1_b, wqkv, wo, bo, mask_bias, ln2_g, ln2_b, w1, b1, w2, b2)
    return out


def block_ref(x, p):
    """Pure-JAX f32 reference matching the PyTorch Block (eval mode)."""
    def ln(z, g, b):
        m = jnp.mean(z, -1, keepdims=True)
        v = jnp.mean((z - m) ** 2, -1, keepdims=True)
        return (z - m) / jnp.sqrt(v + 1e-5) * g + b

    B, T, C = x.shape
    xn = ln(x, p["ln1_g"], p["ln1_b"])
    scale = C ** -0.5
    mask = jnp.tril(jnp.ones((T, T), dtype=bool))
    heads = []
    for h in range(p["wq"].shape[0]):
        q = xn @ p["wq"][h].T
        k = xn @ p["wk"][h].T
        v = xn @ p["wv"][h].T
        wei = jnp.einsum("btd,bsd->bts", q, k) * scale
        wei = jnp.where(mask, wei, -jnp.inf)
        wei = jax.nn.softmax(wei, axis=-1)
        heads.append(jnp.einsum("bts,bsd->btd", wei, v))
    sa = jnp.concatenate(heads, axis=-1) @ p["wo"].T + p["bo"]
    x = x + sa
    xn2 = ln(x, p["ln2_g"], p["ln2_b"])
    hdd = jnp.maximum(xn2 @ p["w1"].T + p["b1"], 0.0)
    return x + hdd @ p["w2"].T + p["b2"]


if __name__ == "__main__":
    # Small shapes consistent with the module: n_embd=384, n_head=6, batch=2, seq=8.
    B, T = 2, 8
    D, H = 384, 6
    hs = D // H

    key = jax.random.PRNGKey(0)
    ks = jax.random.split(key, 14)
    sc = 1.0 / float(jnp.sqrt(D))

    x = jax.random.normal(ks[0], (B, T, D), jnp.float32)
    params = dict(
        ln1_g=1.0 + 0.1 * jax.random.normal(ks[1], (D,), jnp.float32),
        ln1_b=0.1 * jax.random.normal(ks[2], (D,), jnp.float32),
        wq=jax.random.uniform(ks[3], (H, hs, D), jnp.float32, -sc, sc),
        wk=jax.random.uniform(ks[4], (H, hs, D), jnp.float32, -sc, sc),
        wv=jax.random.uniform(ks[5], (H, hs, D), jnp.float32, -sc, sc),
        wo=jax.random.uniform(ks[6], (D, D), jnp.float32, -sc, sc),
        bo=jax.random.uniform(ks[7], (D,), jnp.float32, -sc, sc),
        ln2_g=1.0 + 0.1 * jax.random.normal(ks[8], (D,), jnp.float32),
        ln2_b=0.1 * jax.random.normal(ks[9], (D,), jnp.float32),
        w1=jax.random.uniform(ks[10], (D, D), jnp.float32, -sc, sc),
        b1=jax.random.uniform(ks[11], (D,), jnp.float32, -sc, sc),
        w2=jax.random.uniform(ks[12], (D, D), jnp.float32, -sc, sc),
        b2=jax.random.uniform(ks[13], (D,), jnp.float32, -sc, sc),
    )

    out = block_forward(x, params)
    out = jax.block_until_ready(out)

    ref = block_ref(x, params)
    assert out.shape == (B, T, D)
    # bf16 MXU operands (projections, QK^T, PV, FFN) with f32 accumulation plus an
    # approx reciprocal in the softmax -> relaxed tolerance vs the f32 reference.
    assert jnp.allclose(out, ref, atol=5e-2, rtol=5e-2), "mismatch vs reference"

    print("KERNEL_OK")
</pallas_src>

<mosaic_0001>
module attributes {stable_mosaic.version = 11 : i64} {
  func.func @block_kernel(%arg0: i32, %arg1: memref<1x8x384xf32, #tpu.memory_space<vmem>>, %arg2: memref<1x384xf32, #tpu.memory_space<vmem>>, %arg3: memref<1x384xf32, #tpu.memory_space<vmem>>, %arg4: memref<1152x384xbf16, #tpu.memory_space<vmem>>, %arg5: memref<384x384xbf16, #tpu.memory_space<vmem>>, %arg6: memref<1x384xf32, #tpu.memory_space<vmem>>, %arg7: memref<8x8xf32, #tpu.memory_space<vmem>>, %arg8: memref<1x384xf32, #tpu.memory_space<vmem>>, %arg9: memref<1x384xf32, #tpu.memory_space<vmem>>, %arg10: memref<384x384xbf16, #tpu.memory_space<vmem>>, %arg11: memref<1x384xf32, #tpu.memory_space<vmem>>, %arg12: memref<384x384xbf16, #tpu.memory_space<vmem>>, %arg13: memref<1x384xf32, #tpu.memory_space<vmem>>, %arg14: memref<1x8x384xf32, #tpu.memory_space<vmem>>) attributes {dimension_semantics = [#tpu.dimension_semantics<parallel>], iteration_bounds = array<i64: 2>, scalar_prefetch = 0 : i64, scratch_operands = 0 : i64, tpu.core_type = #tpu.core_type<tc>, window_params = [{transform_indices = @transform_0, window_bounds = array<i64: 1, 8, 384>}, {pipeline_mode = #tpu.pipeline_mode<synchronous>, transform_indices = @transform_1, window_bounds = array<i64: 1, 384>}, {pipeline_mode = #tpu.pipeline_mode<synchronous>, transform_indices = @transform_2, window_bounds = array<i64: 1, 384>}, {pipeline_mode = #tpu.pipeline_mode<synchronous>, transform_indices = @transform_3, window_bounds = array<i64: 1152, 384>}, {pipeline_mode = #tpu.pipeline_mode<synchronous>, transform_indices = @transform_4, window_bounds = array<i64: 384, 384>}, {pipeline_mode = #tpu.pipeline_mode<synchronous>, transform_indices = @transform_5, window_bounds = array<i64: 1, 384>}, {pipeline_mode = #tpu.pipeline_mode<synchronous>, transform_indices = @transform_6, window_bounds = array<i64: 8, 8>}, {pipeline_mode = #tpu.pipeline_mode<synchronous>, transform_indices = @transform_7, window_bounds = array<i64: 1, 384>}, {pipeline_mode = #tpu.pipeline_mode<synchronous>, transform_indices = @transform_8, window_bounds = array<i64: 1, 384>}, {pipeline_mode = #tpu.pipeline_mode<synchronous>, transform_indices = @transform_9, window_bounds = array<i64: 384, 384>}, {pipeline_mode = #tpu.pipeline_mode<synchronous>, transform_indices = @transform_10, window_bounds = array<i64: 1, 384>}, {pipeline_mode = #tpu.pipeline_mode<synchronous>, transform_indices = @transform_11, window_bounds = array<i64: 384, 384>}, {pipeline_mode = #tpu.pipeline_mode<synchronous>, transform_indices = @transform_12, window_bounds = array<i64: 1, 384>}, {transform_indices = @transform_13, window_bounds = array<i64: 1, 8, 384>}]} {
    %c0 = arith.constant 0 : index
    %c0_0 = arith.constant 0 : index
    %c0_1 = arith.constant 0 : index
    %0 = vector.load %arg1[%c0, %c0_0, %c0_1] : memref<1x8x384xf32, #tpu.memory_space<vmem>>, vector<1x8x384xf32>
    %1 = vector.shape_cast %0 : vector<1x8x384xf32> to vector<8x384xf32>
    %cst = arith.constant dense<0.000000e+00> : vector<8xf32>
    %2 = vector.multi_reduction <add>, %1, %cst [1] : vector<8x384xf32> to vector<8xf32>
    %3 = vector.shape_cast %2 : vector<8xf32> to vector<8x1xf32>
    %cst_2 = arith.constant 3.840000e+02 : f32
    %4 = vector.broadcast %cst_2 : f32 to vector<8x1xf32>
    %5 = arith.divf %3, %4 : vector<8x1xf32>
    %6 = vector.broadcast %5 : vector<8x1xf32> to vector<8x384xf32>
    %7 = arith.subf %1, %6 : vector<8x384xf32>
    %8 = arith.mulf %7, %7 : vector<8x384xf32>
    %cst_3 = arith.constant dense<0.000000e+00> : vector<8xf32>
    %9 = vector.multi_reduction <add>, %8, %cst_3 [1] : vector<8x384xf32> to vector<8xf32>
    %10 = vector.shape_cast %9 : vector<8xf32> to vector<8x1xf32>
    %cst_4 = arith.constant 3.840000e+02 : f32
    %11 = vector.broadcast %cst_4 : f32 to vector<8x1xf32>
    %12 = arith.divf %10, %11 : vector<8x1xf32>
    %13 = vector.broadcast %5 : vector<8x1xf32> to vector<8x384xf32>
    %14 = arith.subf %1, %13 : vector<8x384xf32>
    %cst_5 = arith.constant 9.99999974E-6 : f32
    %15 = vector.broadcast %cst_5 : f32 to vector<8x1xf32>
    %16 = arith.addf %12, %15 : vector<8x1xf32>
    %17 = math.rsqrt %16 : vector<8x1xf32>
    %18 = vector.broadcast %17 : vector<8x1xf32> to vector<8x384xf32>
    %19 = arith.mulf %14, %18 : vector<8x384xf32>
    %c0_6 = arith.constant 0 : index
    %c0_7 = arith.constant 0 : index
    %20 = vector.load %arg2[%c0_6, %c0_7] : memref<1x384xf32, #tpu.memory_space<vmem>>, vector<1x384xf32>
    %21 = vector.broadcast %20 : vector<1x384xf32> to vector<8x384xf32>
    %22 = arith.mulf %19, %21 : vector<8x384xf32>
    %c0_8 = arith.constant 0 : index
    %c0_9 = arith.constant 0 : index
    %23 = vector.load %arg3[%c0_8, %c0_9] : memref<1x384xf32, #tpu.memory_space<vmem>>, vector<1x384xf32>
    %24 = vector.broadcast %23 : vector<1x384xf32> to vector<8x384xf32>
    %25 = arith.addf %22, %24 : vector<8x384xf32>
    %26 = arith.truncf %25 : vector<8x384xf32> to vector<8x384xbf16>
    %c0_10 = arith.constant 0 : index
    %c0_11 = arith.constant 0 : index
    %27 = vector.load %arg4[%c0_10, %c0_11] : memref<1152x384xbf16, #tpu.memory_space<vmem>>, vector<1152x384xbf16>
    %cst_12 = arith.constant dense<0.000000e+00> : vector<8x1152xf32>
    %28 = tpu.matmul %26, %27, %cst_12 {dimension_numbers = #tpu.dot_dimension_numbers<[1], [1], [0], [0], [0, 0, 1, 0], [], []>} : vector<8x384xbf16>, vector<1152x384xbf16>, vector<8x1152xf32> -> vector<8x1152xf32>
    %29 = arith.truncf %28 : vector<8x1152xf32> to vector<8x1152xbf16>
    %c0_13 = arith.constant 0 : index
    %c0_14 = arith.constant 0 : index
    %30 = vector.load %arg7[%c0_13, %c0_14] : memref<8x8xf32, #tpu.memory_space<vmem>>, vector<8x8xf32>
    %31 = vector.extract_strided_slice %29 {offsets = [0, 0], sizes = [8, 64], strides = [1, 1]} : vector<8x1152xbf16> to vector<8x64xbf16>
    %32 = vector.shape_cast %31 : vector<8x64xbf16> to vector<1x8x64xbf16>
    %33 = vector.extract_strided_slice %29 {offsets = [0, 384], sizes = [8, 64], strides = [1, 1]} : vector<8x1152xbf16> to vector<8x64xbf16>
    %34 = vector.shape_cast %33 : vector<8x64xbf16> to vector<1x8x64xbf16>
    %35 = vector.extract_strided_slice %29 {offsets = [0, 768], sizes = [8, 64], strides = [1, 1]} : vector<8x1152xbf16> to vector<8x64xbf16>
    %36 = vector.shape_cast %35 : vector<8x64xbf16> to vector<1x8x64xbf16>
    "tpu.trace_start"() <{level = 10 : i32, message = "btd,bsd->bts"}> : () -> ()
    %cst_15 = arith.constant dense<0.000000e+00> : vector<1x8x8xf32>
    %37 = tpu.matmul %32, %34, %cst_15 {dimension_numbers = #tpu.dot_dimension_numbers<[2], [2], [1], [1], [0, 0, 0, 1, 1, 1], [0], [0]>} : vector<1x8x64xbf16>, vector<1x8x64xbf16>, vector<1x8x8xf32> -> vector<1x8x8xf32>
    "tpu.trace_stop"() : () -> ()
    %cst_16 = arith.constant 0.0510310382 : f32
    %38 = vector.broadcast %cst_16 : f32 to vector<1x8x8xf32>
    %39 = arith.mulf %37, %38 : vector<1x8x8xf32>
    %40 = vector.shape_cast %30 : vector<8x8xf32> to vector<1x8x8xf32>
    %41 = arith.addf %39, %40 : vector<1x8x8xf32>
    %cst_17 = arith.constant dense<0xFF800000> : vector<1x8xf32>
    %42 = vector.multi_reduction <maximumf>, %41, %cst_17 [2] : vector<1x8x8xf32> to vector<1x8xf32>
    %43 = vector.shape_cast %42 : vector<1x8xf32> to vector<1x8x1xf32>
    %44 = vector.broadcast %43 : vector<1x8x1xf32> to vector<1x8x8xf32>
    %45 = arith.subf %41, %44 : vector<1x8x8xf32>
    %46 = math.exp %45 : vector<1x8x8xf32>
    %cst_18 = arith.constant dense<0.000000e+00> : vector<1x8xf32>
    %47 = vector.multi_reduction <add>, %46, %cst_18 [2] : vector<1x8x8xf32> to vector<1x8xf32>
    %48 = vector.shape_cast %47 : vector<1x8xf32> to vector<1x8x1xf32>
    %49 = tpu.reciprocal %48 {approx = true} : vector<1x8x1xf32> -> vector<1x8x1xf32>
    %50 = vector.broadcast %49 : vector<1x8x1xf32> to vector<1x8x8xf32>
    %51 = arith.mulf %46, %50 : vector<1x8x8xf32>
    %52 = arith.truncf %51 : vector<1x8x8xf32> to vector<1x8x8xbf16>
    "tpu.trace_start"() <{level = 10 : i32, message = "bts,bsd->btd"}> : () -> ()
    %cst_19 = arith.constant dense<0.000000e+00> : vector<1x8x64xf32>
    %53 = tpu.matmul %52, %36, %cst_19 {dimension_numbers = #tpu.dot_dimension_numbers<[2], [1], [1], [2], [0, 0, 0, 1, 1, 2], [0], [0]>} : vector<1x8x8xbf16>, vector<1x8x64xbf16>, vector<1x8x64xf32> -> vector<1x8x64xf32>
    "tpu.trace_stop"() : () -> ()
    %54 = vector.extract_strided_slice %29 {offsets = [0, 64], sizes = [8, 64], strides = [1, 1]} : vector<8x1152xbf16> to vector<8x64xbf16>
    %55 = vector.shape_cast %54 : vector<8x64xbf16> to vector<1x8x64xbf16>
    %56 = vector.extract_strided_slice %29 {offsets = [0, 448], sizes = [8, 64], strides = [1, 1]} : vector<8x1152xbf16> to vector<8x64xbf16>
    %57 = vector.shape_cast %56 : vector<8x64xbf16> to vector<1x8x64xbf16>
    %58 = vector.extract_strided_slice %29 {offsets = [0, 832], sizes = [8, 64], strides = [1, 1]} : vector<8x1152xbf16> to vector<8x64xbf16>
    %59 = vector.shape_cast %58 : vector<8x64xbf16> to vector<1x8x64xbf16>
    "tpu.trace_start"() <{level = 10 : i32, message = "btd,bsd->bts"}> : () -> ()
    %cst_20 = arith.constant dense<0.000000e+00> : vector<1x8x8xf32>
    %60 = tpu.matmul %55, %57, %cst_20 {dimension_numbers = #tpu.dot_dimension_numbers<[2], [2], [1], [1], [0, 0, 0, 1, 1, 1], [0], [0]>} : vector<1x8x64xbf16>, vector<1x8x64xbf16>, vector<1x8x8xf32> -> vector<1x8x8xf32>
    "tpu.trace_stop"() : () -> ()
    %cst_21 = arith.constant 0.0510310382 : f32
    %61 = vector.broadcast %cst_21 : f32 to vector<1x8x8xf32>
    %62 = arith.mulf %60, %61 : vector<1x8x8xf32>
    %63 = vector.shape_cast %30 : vector<8x8xf32> to vector<1x8x8xf32>
    %64 = arith.addf %62, %63 : vector<1x8x8xf32>
    %cst_22 = arith.constant dense<0xFF800000> : vector<1x8xf32>
    %65 = vector.multi_reduction <maximumf>, %64, %cst_22 [2] : vector<1x8x8xf32> to vector<1x8xf32>
    %66 = vector.shape_cast %65 : vector<1x8xf32> to vector<1x8x1xf32>
    %67 = vector.broadcast %66 : vector<1x8x1xf32> to vector<1x8x8xf32>
    %68 = arith.subf %64, %67 : vector<1x8x8xf32>
    %69 = math.exp %68 : vector<1x8x8xf32>
    %cst_23 = arith.constant dense<0.000000e+00> : vector<1x8xf32>
    %70 = vector.multi_reduction <add>, %69, %cst_23 [2] : vector<1x8x8xf32> to vector<1x8xf32>
    %71 = vector.shape_cast %70 : vector<1x8xf32> to vector<1x8x1xf32>
    %72 = tpu.reciprocal %71 {approx = true} : vector<1x8x1xf32> -> vector<1x8x1xf32>
    %73 = vector.broadcast %72 : vector<1x8x1xf32> to vector<1x8x8xf32>
    %74 = arith.mulf %69, %73 : vector<1x8x8xf32>
    %75 = arith.truncf %74 : vector<1x8x8xf32> to vector<1x8x8xbf16>
    "tpu.trace_start"() <{level = 10 : i32, message = "bts,bsd->btd"}> : () -> ()
    %cst_24 = arith.constant dense<0.000000e+00> : vector<1x8x64xf32>
    %76 = tpu.matmul %75, %59, %cst_24 {dimension_numbers = #tpu.dot_dimension_numbers<[2], [1], [1], [2], [0, 0, 0, 1, 1, 2], [0], [0]>} : vector<1x8x8xbf16>, vector<1x8x64xbf16>, vector<1x8x64xf32> -> vector<1x8x64xf32>
    "tpu.trace_stop"() : () -> ()
    %77 = vector.extract_strided_slice %29 {offsets = [0, 128], sizes = [8, 64], strides = [1, 1]} : vector<8x1152xbf16> to vector<8x64xbf16>
    %78 = vector.shape_cast %77 : vector<8x64xbf16> to vector<1x8x64xbf16>
    %79 = vector.extract_strided_slice %29 {offsets = [0, 512], sizes = [8, 64], strides = [1, 1]} : vector<8x1152xbf16> to vector<8x64xbf16>
    %80 = vector.shape_cast %79 : vector<8x64xbf16> to vector<1x8x64xbf16>
    %81 = vector.extract_strided_slice %29 {offsets = [0, 896], sizes = [8, 64], strides = [1, 1]} : vector<8x1152xbf16> to vector<8x64xbf16>
    %82 = vector.shape_cast %81 : vector<8x64xbf16> to vector<1x8x64xbf16>
    "tpu.trace_start"() <{level = 10 : i32, message = "btd,bsd->bts"}> : () -> ()
    %cst_25 = arith.constant dense<0.000000e+00> : vector<1x8x8xf32>
    %83 = tpu.matmul %78, %80, %cst_25 {dimension_numbers = #tpu.dot_dimension_numbers<[2], [2], [1], [1], [0, 0, 0, 1, 1, 1], [0], [0]>} : vector<1x8x64xbf16>, vector<1x8x64xbf16>, vector<1x8x8xf32> -> vector<1x8x8xf32>
    "tpu.trace_stop"() : () -> ()
    %cst_26 = arith.constant 0.0510310382 : f32
    %84 = vector.broadcast %cst_26 : f32 to vector<1x8x8xf32>
    %85 = arith.mulf %83, %84 : vector<1x8x8xf32>
    %86 = vector.shape_cast %30 : vector<8x8xf32> to vector<1x8x8xf32>
    %87 = arith.addf %85, %86 : vector<1x8x8xf32>
    %cst_27 = arith.constant dense<0xFF800000> : vector<1x8xf32>
    %88 = vector.multi_reduction <maximumf>, %87, %cst_27 [2] : vector<1x8x8xf32> to vector<1x8xf32>
    %89 = vector.shape_cast %88 : vector<1x8xf32> to vector<1x8x1xf32>
    %90 = vector.broadcast %89 : vector<1x8x1xf32> to vector<1x8x8xf32>
    %91 = arith.subf %87, %90 : vector<1x8x8xf32>
    %92 = math.exp %91 : vector<1x8x8xf32>
    %cst_28 = arith.constant dense<0.000000e+00> : vector<1x8xf32>
    %93 = vector.multi_reduction <add>, %92, %cst_28 [2] : vector<1x8x8xf32> to vector<1x8xf32>
    %94 = vector.shape_cast %93 : vector<1x8xf32> to vector<1x8x1xf32>
    %95 = tpu.reciprocal %94 {approx = true} : vector<1x8x1xf32> -> vector<1x8x1xf32>
    %96 = vector.broadcast %95 : vector<1x8x1xf32> to vector<1x8x8xf32>
    %97 = arith.mulf %92, %96 : vector<1x8x8xf32>
    %98 = arith.truncf %97 : vector<1x8x8xf32> to vector<1x8x8xbf16>
    "tpu.trace_start"() <{level = 10 : i32, message = "bts,bsd->btd"}> : () -> ()
    %cst_29 = arith.constant dense<0.000000e+00> : vector<1x8x64xf32>
    %99 = tpu.matmul %98, %82, %cst_29 {dimension_numbers = #tpu.dot_dimension_numbers<[2], [1], [1], [2], [0, 0, 0, 1, 1, 2], [0], [0]>} : vector<1x8x8xbf16>, vector<1x8x64xbf16>, vector<1x8x64xf32> -> vector<1x8x64xf32>
    "tpu.trace_stop"() : () -> ()
    %100 = vector.extract_strided_slice %29 {offsets = [0, 192], sizes = [8, 64], strides = [1, 1]} : vector<8x1152xbf16> to vector<8x64xbf16>
    %101 = vector.shape_cast %100 : vector<8x64xbf16> to vector<1x8x64xbf16>
    %102 = vector.extract_strided_slice %29 {offsets = [0, 576], sizes = [8, 64], strides = [1, 1]} : vector<8x1152xbf16> to vector<8x64xbf16>
    %103 = vector.shape_cast %102 : vector<8x64xbf16> to vector<1x8x64xbf16>
    %104 = vector.extract_strided_slice %29 {offsets = [0, 960], sizes = [8, 64], strides = [1, 1]} : vector<8x1152xbf16> to vector<8x64xbf16>
    %105 = vector.shape_cast %104 : vector<8x64xbf16> to vector<1x8x64xbf16>
    "tpu.trace_start"() <{level = 10 : i32, message = "btd,bsd->bts"}> : () -> ()
    %cst_30 = arith.constant dense<0.000000e+00> : vector<1x8x8xf32>
    %106 = tpu.matmul %101, %103, %cst_30 {dimension_numbers = #tpu.dot_dimension_numbers<[2], [2], [1], [1], [0, 0, 0, 1, 1, 1], [0], [0]>} : vector<1x8x64xbf16>, vector<1x8x64xbf16>, vector<1x8x8xf32> -> vector<1x8x8xf32>
    "tpu.trace_stop"() : () -> ()
    %cst_31 = arith.constant 0.0510310382 : f32
    %107 = vector.broadcast %cst_31 : f32 to vector<1x8x8xf32>
    %108 = arith.mulf %106, %107 : vector<1x8x8xf32>
    %109 = vector.shape_cast %30 : vector<8x8xf32> to vector<1x8x8xf32>
    %110 = arith.addf %108, %109 : vector<1x8x8xf32>
    %cst_32 = arith.constant dense<0xFF800000> : vector<1x8xf32>
    %111 = vector.multi_reduction <maximumf>, %110, %cst_32 [2] : vector<1x8x8xf32> to vector<1x8xf32>
    %112 = vector.shape_cast %111 : vector<1x8xf32> to vector<1x8x1xf32>
    %113 = vector.broadcast %112 : vector<1x8x1xf32> to vector<1x8x8xf32>
    %114 = arith.subf %110, %113 : vector<1x8x8xf32>
    %115 = math.exp %114 : vector<1x8x8xf32>
    %cst_33 = arith.constant dense<0.000000e+00> : vector<1x8xf32>
    %116 = vector.multi_reduction <add>, %115, %cst_33 [2] : vector<1x8x8xf32> to vector<1x8xf32>
    %117 = vector.shape_cast %116 : vector<1x8xf32> to vector<1x8x1xf32>
    %118 = tpu.reciprocal %117 {approx = true} : vector<1x8x1xf32> -> vector<1x8x1xf32>
    %119 = vector.broadcast %118 : vector<1x8x1xf32> to vector<1x8x8xf32>
    %120 = arith.mulf %115, %119 : vector<1x8x8xf32>
    %121 = arith.truncf %120 : vector<1x8x8xf32> to vector<1x8x8xbf16>
    "tpu.trace_start"() <{level = 10 : i32, message = "bts,bsd->btd"}> : () -> ()
    %cst_34 = arith.constant dense<0.000000e+00> : vector<1x8x64xf32>
    %122 = tpu.matmul %121, %105, %cst_34 {dimension_numbers = #tpu.dot_dimension_numbers<[2], [1], [1], [2], [0, 0, 0, 1, 1, 2], [0], [0]>} : vector<1x8x8xbf16>, vector<1x8x64xbf16>, vector<1x8x64xf32> -> vector<1x8x64xf32>
    "tpu.trace_stop"() : () -> ()
    %123 = vector.extract_strided_slice %29 {offsets = [0, 256], sizes = [8, 64], strides = [1, 1]} : vector<8x1152xbf16> to vector<8x64xbf16>
    %124 = vector.shape_cast %123 : vector<8x64xbf16> to vector<1x8x64xbf16>
    %125 = vector.extract_strided_slice %29 {offsets = [0, 640], sizes = [8, 64], strides = [1, 1]} : vector<8x1152xbf16> to vector<8x64xbf16>
    %126 = vector.shape_cast %125 : vector<8x64xbf16> to vector<1x8x64xbf16>
    %127 = vector.extract_strided_slice %29 {offsets = [0, 1024], sizes = [8, 64], strides = [1, 1]} : vector<8x1152xbf16> to vector<8x64xbf16>
    %128 = vector.shape_cast %127 : vector<8x64xbf16> to vector<1x8x64xbf16>
    "tpu.trace_start"() <{level = 10 : i32, message = "btd,bsd->bts"}> : () -> ()
    %cst_35 = arith.constant dense<0.000000e+00> : vector<1x8x8xf32>
    %129 = tpu.matmul %124, %126, %cst_35 {dimension_numbers = #tpu.dot_dimension_numbers<[2], [2], [1], [1], [0, 0, 0, 1, 1, 1], [0], [0]>} : vector<1x8x64xbf16>, vector<1x8x64xbf16>, vector<1x8x8xf32> -> vector<1x8x8xf32>
    "tpu.trace_stop"() : () -> ()
    %cst_36 = arith.constant 0.0510310382 : f32
    %130 = vector.broadcast %cst_36 : f32 to vector<1x8x8xf32>
    %131 = arith.mulf %129, %130 : vector<1x8x8xf32>
    %132 = vector.shape_cast %30 : vector<8x8xf32> to vector<1x8x8xf32>
    %133 = arith.addf %131, %132 : vector<1x8x8xf32>
    %cst_37 = arith.constant dense<0xFF800000> : vector<1x8xf32>
    %134 = vector.multi_reduction <maximumf>, %133, %cst_37 [2] : vector<1x8x8xf32> to vector<1x8xf32>
    %135 = vector.shape_cast %134 : vector<1x8xf32> to vector<1x8x1xf32>
    %136 = vector.broadcast %135 : vector<1x8x1xf32> to vector<1x8x8xf32>
    %137 = arith.subf %133, %136 : vector<1x8x8xf32>
    %138 = math.exp %137 : vector<1x8x8xf32>
    %cst_38 = arith.constant dense<0.000000e+00> : vector<1x8xf32>
    %139 = vector.multi_reduction <add>, %138, %cst_38 [2] : vector<1x8x8xf32> to vector<1x8xf32>
    %140 = vector.shape_cast %139 : vector<1x8xf32> to vector<1x8x1xf32>
    %141 = tpu.reciprocal %140 {approx = true} : vector<1x8x1xf32> -> vector<1x8x1xf32>
    %142 = vector.broadcast %141 : vector<1x8x1xf32> to vector<1x8x8xf32>
    %143 = arith.mulf %138, %142 : vector<1x8x8xf32>
    %144 = arith.truncf %143 : vector<1x8x8xf32> to vector<1x8x8xbf16>
    "tpu.trace_start"() <{level = 10 : i32, message = "bts,bsd->btd"}> : () -> ()
    %cst_39 = arith.constant dense<0.000000e+00> : vector<1x8x64xf32>
    %145 = tpu.matmul %144, %128, %cst_39 {dimension_numbers = #tpu.dot_dimension_numbers<[2], [1], [1], [2], [0, 0, 0, 1, 1, 2], [0], [0]>} : vector<1x8x8xbf16>, vector<1x8x64xbf16>, vector<1x8x64xf32> -> vector<1x8x64xf32>
    "tpu.trace_stop"() : () -> ()
    %146 = vector.extract_strided_slice %29 {offsets = [0, 320], sizes = [8, 64], strides = [1, 1]} : vector<8x1152xbf16> to vector<8x64xbf16>
    %147 = vector.shape_cast %146 : vector<8x64xbf16> to vector<1x8x64xbf16>
    %148 = vector.extract_strided_slice %29 {offsets = [0, 704], sizes = [8, 64], strides = [1, 1]} : vector<8x1152xbf16> to vector<8x64xbf16>
    %149 = vector.shape_cast %148 : vector<8x64xbf16> to vector<1x8x64xbf16>
    %150 = vector.extract_strided_slice %29 {offsets = [0, 1088], sizes = [8, 64], strides = [1, 1]} : vector<8x1152xbf16> to vector<8x64xbf16>
    %151 = vector.shape_cast %150 : vector<8x64xbf16> to vector<1x8x64xbf16>
    "tpu.trace_start"() <{level = 10 : i32, message = "btd,bsd->bts"}> : () -> ()
    %cst_40 = arith.constant dense<0.000000e+00> : vector<1x8x8xf32>
    %152 = tpu.matmul %147, %149, %cst_40 {dimension_numbers = #tpu.dot_dimension_numbers<[2], [2], [1], [1], [0, 0, 0, 1, 1, 1], [0], [0]>} : vector<1x8x64xbf16>, vector<1x8x64xbf16>, vector<1x8x8xf32> -> vector<1x8x8xf32>
    "tpu.trace_stop"() : () -> ()
    %cst_41 = arith.constant 0.0510310382 : f32
    %153 = vector.broadcast %cst_41 : f32 to vector<1x8x8xf32>
    %154 = arith.mulf %152, %153 : vector<1x8x8xf32>
    %155 = vector.shape_cast %30 : vector<8x8xf32> to vector<1x8x8xf32>
    %156 = arith.addf %154, %155 : vector<1x8x8xf32>
    %cst_42 = arith.constant dense<0xFF800000> : vector<1x8xf32>
    %157 = vector.multi_reduction <maximumf>, %156, %cst_42 [2] : vector<1x8x8xf32> to vector<1x8xf32>
    %158 = vector.shape_cast %157 : vector<1x8xf32> to vector<1x8x1xf32>
    %159 = vector.broadcast %158 : vector<1x8x1xf32> to vector<1x8x8xf32>
    %160 = arith.subf %156, %159 : vector<1x8x8xf32>
    %161 = math.exp %160 : vector<1x8x8xf32>
    %cst_43 = arith.constant dense<0.000000e+00> : vector<1x8xf32>
    %162 = vector.multi_reduction <add>, %161, %cst_43 [2] : vector<1x8x8xf32> to vector<1x8xf32>
    %163 = vector.shape_cast %162 : vector<1x8xf32> to vector<1x8x1xf32>
    %164 = tpu.reciprocal %163 {approx = true} : vector<1x8x1xf32> -> vector<1x8x1xf32>
    %165 = vector.broadcast %164 : vector<1x8x1xf32> to vector<1x8x8xf32>
    %166 = arith.mulf %161, %165 : vector<1x8x8xf32>
    %167 = arith.truncf %166 : vector<1x8x8xf32> to vector<1x8x8xbf16>
    "tpu.trace_start"() <{level = 10 : i32, message = "bts,bsd->btd"}> : () -> ()
    %cst_44 = arith.constant dense<0.000000e+00> : vector<1x8x64xf32>
    %168 = tpu.matmul %167, %151, %cst_44 {dimension_numbers = #tpu.dot_dimension_numbers<[2], [1], [1], [2], [0, 0, 0, 1, 1, 2], [0], [0]>} : vector<1x8x8xbf16>, vector<1x8x64xbf16>, vector<1x8x64xf32> -> vector<1x8x64xf32>
    "tpu.trace_stop"() : () -> ()
    %169 = tpu.concatenate %53, %76, %99, %122, %145, %168 in 2 : vector<1x8x64xf32>, vector<1x8x64xf32>, vector<1x8x64xf32>, vector<1x8x64xf32>, vector<1x8x64xf32>, vector<1x8x64xf32> -> vector<1x8x384xf32>
    %170 = vector.shape_cast %169 : vector<1x8x384xf32> to vector<8x384xf32>
    %171 = arith.truncf %170 : vector<8x384xf32> to vector<8x384xbf16>
    %c0_45 = arith.constant 0 : index
    %c0_46 = arith.constant 0 : index
    %172 = vector.load %arg5[%c0_45, %c0_46] : memref<384x384xbf16, #tpu.memory_space<vmem>>, vector<384x384xbf16>
    %cst_47 = arith.constant dense<0.000000e+00> : vector<8x384xf32>
    %173 = tpu.matmul %171, %172, %cst_47 {dimension_numbers = #tpu.dot_dimension_numbers<[1], [1], [0], [0], [0, 0, 1, 0], [], []>} : vector<8x384xbf16>, vector<384x384xbf16>, vector<8x384xf32> -> vector<8x384xf32>
    %174 = arith.addf %1, %173 : vector<8x384xf32>
    %c0_48 = arith.constant 0 : index
    %c0_49 = arith.constant 0 : index
    %175 = vector.load %arg6[%c0_48, %c0_49] : memref<1x384xf32, #tpu.memory_space<vmem>>, vector<1x384xf32>
    %176 = vector.broadcast %175 : vector<1x384xf32> to vector<8x384xf32>
    %177 = arith.addf %174, %176 : vector<8x384xf32>
    %cst_50 = arith.constant dense<0.000000e+00> : vector<8xf32>
    %178 = vector.multi_reduction <add>, %177, %cst_50 [1] : vector<8x384xf32> to vector<8xf32>
    %179 = vector.shape_cast %178 : vector<8xf32> to vector<8x1xf32>
    %cst_51 = arith.constant 3.840000e+02 : f32
    %180 = vector.broadcast %cst_51 : f32 to vector<8x1xf32>
    %181 = arith.divf %179, %180 : vector<8x1xf32>
    %182 = vector.broadcast %181 : vector<8x1xf32> to vector<8x384xf32>
    %183 = arith.subf %177, %182 : vector<8x384xf32>
    %184 = arith.mulf %183, %183 : vector<8x384xf32>
    %cst_52 = arith.constant dense<0.000000e+00> : vector<8xf32>
    %185 = vector.multi_reduction <add>, %184, %cst_52 [1] : vector<8x384xf32> to vector<8xf32>
    %186 = vector.shape_cast %185 : vector<8xf32> to vector<8x1xf32>
    %cst_53 = arith.constant 3.840000e+02 : f32
    %187 = vector.broadcast %cst_53 : f32 to vector<8x1xf32>
    %188 = arith.divf %186, %187 : vector<8x1xf32>
    %189 = vector.broadcast %181 : vector<8x1xf32> to vector<8x384xf32>
    %190 = arith.subf %177, %189 : vector<8x384xf32>
    %cst_54 = arith.constant 9.99999974E-6 : f32
    %191 = vector.broadcast %cst_54 : f32 to vector<8x1xf32>
    %192 = arith.addf %188, %191 : vector<8x1xf32>
    %193 = math.rsqrt %192 : vector<8x1xf32>
    %194 = vector.broadcast %193 : vector<8x1xf32> to vector<8x384xf32>
    %195 = arith.mulf %190, %194 : vector<8x384xf32>
    %c0_55 = arith.constant 0 : index
    %c0_56 = arith.constant 0 : index
    %196 = vector.load %arg8[%c0_55, %c0_56] : memref<1x384xf32, #tpu.memory_space<vmem>>, vector<1x384xf32>
    %197 = vector.broadcast %196 : vector<1x384xf32> to vector<8x384xf32>
    %198 = arith.mulf %195, %197 : vector<8x384xf32>
    %c0_57 = arith.constant 0 : index
    %c0_58 = arith.constant 0 : index
    %199 = vector.load %arg9[%c0_57, %c0_58] : memref<1x384xf32, #tpu.memory_space<vmem>>, vector<1x384xf32>
    %200 = vector.broadcast %199 : vector<1x384xf32> to vector<8x384xf32>
    %201 = arith.addf %198, %200 : vector<8x384xf32>
    %202 = arith.truncf %201 : vector<8x384xf32> to vector<8x384xbf16>
    %c0_59 = arith.constant 0 : index
    %c0_60 = arith.constant 0 : index
    %203 = vector.load %arg10[%c0_59, %c0_60] : memref<384x384xbf16, #tpu.memory_space<vmem>>, vector<384x384xbf16>
    %cst_61 = arith.constant dense<0.000000e+00> : vector<8x384xf32>
    %204 = tpu.matmul %202, %203, %cst_61 {dimension_numbers = #tpu.dot_dimension_numbers<[1], [1], [0], [0], [0, 0, 1, 0], [], []>} : vector<8x384xbf16>, vector<384x384xbf16>, vector<8x384xf32> -> vector<8x384xf32>
    %c0_62 = arith.constant 0 : index
    %c0_63 = arith.constant 0 : index
    %205 = vector.load %arg11[%c0_62, %c0_63] : memref<1x384xf32, #tpu.memory_space<vmem>>, vector<1x384xf32>
    %206 = vector.broadcast %205 : vector<1x384xf32> to vector<8x384xf32>
    %207 = arith.addf %204, %206 : vector<8x384xf32>
    %cst_64 = arith.constant 0.000000e+00 : f32
    %208 = vector.broadcast %cst_64 : f32 to vector<8x384xf32>
    %209 = arith.maximumf %207, %208 : vector<8x384xf32>
    %210 = arith.truncf %209 : vector<8x384xf32> to vector<8x384xbf16>
    %c0_65 = arith.constant 0 : index
    %c0_66 = arith.constant 0 : index
    %211 = vector.load %arg12[%c0_65, %c0_66] : memref<384x384xbf16, #tpu.memory_space<vmem>>, vector<384x384xbf16>
    %cst_67 = arith.constant dense<0.000000e+00> : vector<8x384xf32>
    %212 = tpu.matmul %210, %211, %cst_67 {dimension_numbers = #tpu.dot_dimension_numbers<[1], [1], [0], [0], [0, 0, 1, 0], [], []>} : vector<8x384xbf16>, vector<384x384xbf16>, vector<8x384xf32> -> vector<8x384xf32>
    %c0_68 = arith.constant 0 : index
    %c0_69 = arith.constant 0 : index
    %213 = vector.load %arg13[%c0_68, %c0_69] : memref<1x384xf32, #tpu.memory_space<vmem>>, vector<1x384xf32>
    %214 = vector.broadcast %213 : vector<1x384xf32> to vector<8x384xf32>
    %215 = arith.addf %212, %214 : vector<8x384xf32>
    %216 = arith.addf %177, %215 : vector<8x384xf32>
    %217 = vector.shape_cast %216 : vector<8x384xf32> to vector<1x8x384xf32>
    %c0_70 = arith.constant 0 : index
    %c0_71 = arith.constant 0 : index
    %c0_72 = arith.constant 0 : index
    %218 = vector.load %arg14[%c0_70, %c0_71, %c0_72] : memref<1x8x384xf32, #tpu.memory_space<vmem>>, vector<1x8x384xf32>
    tpu.vector_store %arg14[%c0_70, %c0_71, %c0_72], %217 {strides = array<i32>} : memref<1x8x384xf32, #tpu.memory_space<vmem>>, vector<1x8x384xf32>,
    return
  }
  func.func @transform_0(%arg0: i32) -> (i32, i32, i32) {
    %c0_i32 = arith.constant 0 : i32
    %c0_i32_0 = arith.constant 0 : i32
    %c0_i32_1 = arith.constant 0 : i32
    return %arg0, %c0_i32, %c0_i32_0 : i32, i32, i32
  }
  func.func @transform_1(%arg0: i32) -> (i32, i32) {
    %c0_i32 = arith.constant 0 : i32
    %c0_i32_0 = arith.constant 0 : i32
    %c0_i32_1 = arith.constant 0 : i32
    return %c0_i32, %c0_i32_0 : i32, i32
  }
  func.func @transform_2(%arg0: i32) -> (i32, i32) {
    %c0_i32 = arith.constant 0 : i32
    %c0_i32_0 = arith.constant 0 : i32
    %c0_i32_1 = arith.constant 0 : i32
    return %c0_i32, %c0_i32_0 : i32, i32
  }
  func.func @transform_3(%arg0: i32) -> (i32, i32) {
    %c0_i32 = arith.constant 0 : i32
    %c0_i32_0 = arith.constant 0 : i32
    %c0_i32_1 = arith.constant 0 : i32
    return %c0_i32, %c0_i32_0 : i32, i32
  }
  func.func @transform_4(%arg0: i32) -> (i32, i32) {
    %c0_i32 = arith.constant 0 : i32
    %c0_i32_0 = arith.constant 0 : i32
    %c0_i32_1 = arith.constant 0 : i32
    return %c0_i32, %c0_i32_0 : i32, i32
  }
  func.func @transform_5(%arg0: i32) -> (i32, i32) {
    %c0_i32 = arith.constant 0 : i32
    %c0_i32_0 = arith.constant 0 : i32
    %c0_i32_1 = arith.constant 0 : i32
    return %c0_i32, %c0_i32_0 : i32, i32
  }
  func.func @transform_6(%arg0: i32) -> (i32, i32) {
    %c0_i32 = arith.constant 0 : i32
    %c0_i32_0 = arith.constant 0 : i32
    %c0_i32_1 = arith.constant 0 : i32
    return %c0_i32, %c0_i32_0 : i32, i32
  }
  func.func @transform_7(%arg0: i32) -> (i32, i32) {
    %c0_i32 = arith.constant 0 : i32
    %c0_i32_0 = arith.constant 0 : i32
    %c0_i32_1 = arith.constant 0 : i32
    return %c0_i32, %c0_i32_0 : i32, i32
  }
  func.func @transform_8(%arg0: i32) -> (i32, i32) {
    %c0_i32 = arith.constant 0 : i32
    %c0_i32_0 = arith.constant 0 : i32
    %c0_i32_1 = arith.constant 0 : i32
    return %c0_i32, %c0_i32_0 : i32, i32
  }
  func.func @transform_9(%arg0: i32) -> (i32, i32) {
    %c0_i32 = arith.constant 0 : i32
    %c0_i32_0 = arith.constant 0 : i32
    %c0_i32_1 = arith.constant 0 : i32
    return %c0_i32, %c0_i32_0 : i32, i32
  }
  func.func @transform_10(%arg0: i32) -> (i32, i32) {
    %c0_i32 = arith.constant 0 : i32
    %c0_i32_0 = arith.constant 0 : i32
    %c0_i32_1 = arith.constant 0 : i32
    return %c0_i32, %c0_i32_0 : i32, i32
  }
  func.func @transform_11(%arg0: i32) -> (i32, i32) {
    %c0_i32 = arith.constant 0 : i32
    %c0_i32_0 = arith.constant 0 : i32
    %c0_i32_1 = arith.constant 0 : i32
    return %c0_i32, %c0_i32_0 : i32, i32
  }
  func.func @transform_12(%arg0: i32) -> (i32, i32) {
    %c0_i32 = arith.constant 0 : i32
    %c0_i32_0 = arith.constant 0 : i32
    %c0_i32_1 = arith.constant 0 : i32
    return %c0_i32, %c0_i32_0 : i32, i32
  }
  func.func @transform_13(%arg0: i32) -> (i32, i32, i32) {
    %c0_i32 = arith.constant 0 : i32
    %c0_i32_0 = arith.constant 0 : i32
    %c0_i32_1 = arith.constant 0 : i32
    return %arg0, %c0_i32, %c0_i32_0 : i32, i32, i32
  }
}

</mosaic_0001>

<bundles_post_ra>
// kernel: tpu_custom_call.1
= control target key start
LH: loop header
LB: loop body
LE: loop exit
PB: predicated region body
PF: predicated region fallthrough
CT: control target
= control target key end

     0   :  { %s7842_s0 = inlined_call_operand.hbm [shape: f32[2,8,384], index: 0, kind: input, shape index: {}]   ;;  %s7843_s1 = inlined_call_operand.hbm [shape: f32[1,384], index: 1, kind: input, shape index: {}]   ;;  %s7844_s2 = inlined_call_operand.hbm [shape: f32[1,384], index: 2, kind: input, shape index: {}]   ;;  %s7845_s3 = inlined_call_operand.hbm [shape: bf16[1152,384], index: 3, kind: input, shape index: {}]   ;;  %s7846_s4 = inlined_call_operand.hbm [shape: bf16[384,384], index: 4, kind: input, shape index: {}]   ;;  %s7847_s5 = inlined_call_operand.hbm [shape: f32[1,384], index: 5, kind: input, shape index: {}]   ;;  %s7848_s6 = inlined_call_operand.vmem [shape: f32[8,8], index: 6, kind: input, shape index: {}]   ;;  %s7849_s7 = inlined_call_operand.vmem [shape: f32[1,384], index: 7, kind: input, shape index: {}]   ;;  %s7850_s8 = inlined_call_operand.vmem [shape: f32[1,384], index: 8, kind: input, shape index: {}]   ;;  %s7851_s9 = inlined_call_operand.hbm [shape: bf16[384,384], index: 9, kind: input, shape index: {}]   ;;  %s7852_s10 = inlined_call_operand.vmem [shape: f32[1,384], index: 10, kind: input, shape index: {}]   ;;  %s7853_s11 = inlined_call_operand.hbm [shape: bf16[384,384], index: 11, kind: input, shape index: {}]   ;;  %s7854_s12 = inlined_call_operand.vmem [shape: f32[1,384], index: 12, kind: input, shape index: {}]   ;;  %s7855_s13 = inlined_call_operand.hbm [shape: f32[2,8,384], index: 13, kind: output, shape index: {}]  }
   0x1   :  { %7864 = sst [smem:[#allocation24_spill]] %s7843_s1 }
   0x2   :  { %7865 = sst [smem:[#allocation25_spill]] %s7844_s2 }
   0x3   :  { %7866 = sst [smem:[#allocation26_spill]] %s7845_s3 }
   0x4   :  { %7867 = sst [smem:[#allocation27_spill]] %s7846_s4 }
   0x5   :  { %7868 = sst [smem:[#allocation28_spill]] %s7847_s5 }
   0x6   :  { %7869 = sst [smem:[#allocation29_spill]] %s7851_s9 }
   0x7   :  { %7870 = sst [smem:[#allocation30_spill]] %s7853_s11 }
   0x8   :  { %18 = vsyncpa [#allocation3], 0 }
   0x9   :  { %20 = vsyncpa [#allocation3 + $0x1], 0 }
   0xa   :  { %21 = vsyncpa [#allocation6], 0 }
   0xb   :  { %22 = vsyncpa [#allocation9], 0 }
   0xc   :  { %23 = vsyncpa [#allocation12], 0 }
   0xd   :  { %24 = vsyncpa [#allocation15], 0 }
   0xe   :  { %25 = vsyncpa [#allocation4], 0 }
   0xf   :  { %27 = vsyncpa [#allocation4 + $0x1], 0  ;;  %s7293_s25 = smov 0   ;;  %s7295_s26 = smov 0  }
  0x10   :  { %s7297_s27 = smov 0   ;;  %s7299_s28 = smov 0  }
  0x11 LB: > { %s7209_s29 = smov [#allocation5]   ;;  %s7314_s14 = sadd.s32 4294967295, %s7207_s28   ;;  %s7207_s28 = sphi %s7299_s28, %s7906_s28   ;;  %s7203_s27 = sphi %s7297_s27, %s7905_s27   ;;  %s7199_s26 = sphi %s7295_s26, %s7904_s26   ;;  %s7195_s25 = sphi %s7293_s25, %s7903_s25  }
  0x12   : > { %s355_s30 = sshll.u32 %s7209_s29, 4  ;;  %p5376_p0 = scmp.ge.s32.totalorder %s7207_s28, 1  ;;  %s356_s30 = int_to_ptr.vmem [resolvable:$true] %s355_s30 }
  0x13   : > { %p7860_p1 = scmp.eq.s32.totalorder %s7314_s14, 0  ;;  %p342_p2 = scmp.lt.s32.totalorder %s7207_s28, 3 }
  0x14   : > { %s7210_s16 = smov [#allocation8]   ;;  %s7211_s19 = smov [#allocation11]  }
  0x15   : > { %p7319_p3 = pnand %p5376_p0, %p342_p2  ;;  %s376_s17 = sshll.u32 %s7210_s16, 4  ;;  %s7326_s17 = int_to_ptr.vmem [resolvable:$true] %s376_s17 }
  0x16   : > { %s403_s20 = sshll.u32 %s7211_s19, 4  ;;  %s6928_s22 = scalar_lea.vmem %s356_s30, 48  ;;  %s7334_s20 = int_to_ptr.vmem [resolvable:$true] %s403_s20 }
  0x17   : > { %s7871_s15 = scalar_select %p7319_p3, 1, 0 }
  0x18   : > { %p6215_p5 = pneg %p7319_p3  ;;  %p6929_p8 = scmp.ne.s32.totalorder %s356_s30, %s6928_s22 }
  0x19   : > { %s6935_s23 = scalar_lea.vmem %s356_s30, 64  ;;  %p6936_p11 = scmp.lt.s32.totalorder %s356_s30, %s356_s30 }
  0x1a   : > { %p7330_p6 = pnand %p6215_p5, %p7860_p1  ;;  %p6937_p12 = scmp.lt.s32.totalorder %s6935_s23, %s6928_s22 }
  0x1c   : > { %p7338_p7 = pneg %p7330_p6  ;;  %p6938_p13 = por %p6937_p12, %p6936_p11 }
  0x1e   : > { %p6931_p9 = pnand %p6929_p8, %p7338_p7 }
  0x20   : > { %p6932_p10 = pneg %p6931_p9 }
  0x22   : > { %p6939_p0 = pnand %p6938_p13, %p6932_p10 }
  0x24   : > { %6942 = shalt.err (!%p6939_p0)
}
  0x25   : > { %s7874_s1 = sld [smem:[#allocation24_spill]]  ;;  %s6954_s16 = scalar_lea.vmem %s7326_s17, 27648 }
  0x26   : > { %p6955_p2 = scmp.ne.s32.totalorder %s7326_s17, %s6954_s16  ;;  %p6962_p9 = scmp.lt.s32.totalorder %s7326_s17, %s7326_s17 }
  0x27   : > { %p6963_p11 = scmp.lt.s32.totalorder %s6954_s16, %s6954_s16 }
  0x28   : > { %p6957_p5 = pnand %p6955_p2, %p7338_p7 }
  0x29   : > { %p6964_p10 = por %p6963_p11, %p6962_p9 }
  0x2a   : > { %p6958_p8 = pneg %p6957_p5 }
  0x2b   : > { %6218 = dma.hbm_to_vmem [thread:$0]  (!%p7330_p6), %s7874_s1, 48, %s356_s30, [#allocation6]  }
  0x2c   : > { %p6965_p12 = pnand %p6964_p10, %p6958_p8 }
  0x2e   : > { %6968 = shalt.err (!%p6965_p12)
}
  0x2f   : > { %s7856_s19 = smov 192   ;;  %s7858_s30 = smov 12  }
  0x30   : > { %s7875_s3 = sld [smem:[#allocation26_spill]]  ;;  %s6980_s24 = scalar_lea.vmem %s7334_s20, 48 }
  0x31   : > { %p6981_p13 = scmp.ne.s32.totalorder %s7334_s20, %s6980_s24  ;;  %s6987_s29 = scalar_lea.vmem %s7334_s20, 64 }
  0x32   : > { %p6988_p5 = scmp.lt.s32.totalorder %s7334_s20, %s7334_s20  ;;  %p6989_p8 = scmp.lt.s32.totalorder %s6987_s29, %s6980_s24 }
  0x33   : > { %p6983_p0 = pnand %p6981_p13, %p7338_p7 }
  0x34   : > { %p6990_p9 = por %p6989_p8, %p6988_p5 }
  0x35   : > { %p6984_p2 = pneg %p6983_p0 }
  0x36   : > { %6224 = dma.hbm_to_vmem [thread:$0]  (!%p7330_p6), %s7875_s3, 27648, %s7326_s17, [#allocation9], %s7856_s19, %s7856_s19, %s7858_s30  }
  0x37   : > { %p6991_p11 = pnand %p6990_p9, %p6984_p2 }
  0x39   : > { %6994 = shalt.err (!%p6991_p11)
}
  0x3a   : > { %s7876_s5 = sld [smem:[#allocation28_spill]]  ;;  %s7214_s17 = smov [#allocation7]  }
  0x3b   : > { %s366_s22 = sshll.u32 %s7214_s17, 4  ;;  %s7215_s23 = smov [#allocation10]   ;;  %s367_s22 = int_to_ptr.vmem [resolvable:$true] %s366_s22 }
  0x3c   : > { %s389_s19 = sshll.u32 %s7215_s23, 4  ;;  %s7006_s30 = scalar_lea.vmem %s367_s22, 48  ;;  %s390_s19 = int_to_ptr.vmem [resolvable:$true] %s389_s19 }
  0x3d   : > { %p7007_p10 = scmp.ne.s32.totalorder %s367_s22, %s7006_s30  ;;  %s7013_s24 = scalar_lea.vmem %s367_s22, 64 }
  0x3e   : > { %p7014_p0 = scmp.lt.s32.totalorder %s367_s22, %s367_s22  ;;  %p7015_p2 = scmp.lt.s32.totalorder %s7013_s24, %s7006_s30 }
  0x3f   : > { %p7009_p12 = pnand %p7007_p10, %p7338_p7 }
  0x40   : > { %6230 = dma.hbm_to_vmem [thread:$0]  (!%p7330_p6), %s7876_s5, 48, %s7334_s20, [#allocation12]  }
  0x41   : > { %p7010_p13 = pneg %p7009_p12  ;;  %p7016_p5 = por %p7015_p2, %p7014_p0 }
  0x43   : > { %p7017_p8 = pnand %p7016_p5, %p7010_p13 }
  0x45   : > { %7020 = shalt.err (!%p7017_p8)
}
  0x46   : > { %s7877_s2 = sld [smem:[#allocation25_spill]]  ;;  %s7032_s29 = scalar_lea.vmem %s390_s19, 9216 }
  0x47   : > { %p7033_p9 = scmp.ne.s32.totalorder %s390_s19, %s7032_s29  ;;  %p7040_p12 = scmp.lt.s32.totalorder %s390_s19, %s390_s19 }
  0x48   : > { %p7041_p4 = scmp.lt.s32.totalorder %s7032_s29, %s7032_s29 }
  0x49   : > { %p7035_p11 = pnand %p7033_p9, %p7338_p7 }
  0x4a   : > { %p7042_p1 = por %p7041_p4, %p7040_p12 }
  0x4b   : > { %p7036_p10 = pneg %p7035_p11 }
  0x4c   : > { %6221 = dma.hbm_to_vmem [thread:$0]  (!%p7330_p6), %s7877_s2, 48, %s367_s22, [#allocation6]  }
  0x4d   : > { %p7043_p3 = pnand %p7042_p1, %p7036_p10 }
  0x4f   : > { %7046 = shalt.err (!%p7043_p3)
}
  0x50   : > { %s7878_s30 = smov 12   ;;  %s7879_s16 = smov 192  }
  0x51   : > { %s7880_s4 = sld [smem:[#allocation27_spill]]  ;;  %s7216_s22 = smov [#allocation13]  }
  0x52   : > { %s422_s24 = sshll.u32 %s7216_s22, 4  ;;  %s7217_s1 = smov [#allocation14]   ;;  %s423_s24 = int_to_ptr.vmem [resolvable:$true] %s422_s24 }
  0x53   : > { %s438_s20 = sshll.u32 %s7217_s1, 4  ;;  %s7058_s2 = scalar_lea.vmem %s423_s24, 9216  ;;  %s439_s20 = int_to_ptr.vmem [resolvable:$true] %s438_s20 }
  0x54   : > { %p7059_p13 = scmp.ne.s32.totalorder %s423_s24, %s7058_s2  ;;  %p7066_p4 = scmp.lt.s32.totalorder %s423_s24, %s423_s24 }
  0x55   : > { %p7067_p0 = scmp.lt.s32.totalorder %s7058_s2, %s7058_s2 }
  0x56   : > { %p7061_p1 = pnand %p7059_p13, %p7338_p7 }
  0x57   : > { %6227 = dma.hbm_to_vmem [thread:$0]  (!%p7330_p6), %s7880_s4, 9216, %s390_s19, [#allocation9], %s7879_s16, %s7879_s16, %s7878_s30  }
  0x58   : > { %p7062_p3 = pneg %p7061_p1  ;;  %p7068_p2 = por %p7067_p0, %p7066_p4 }
  0x5a   : > { %p7069_p5 = pnand %p7068_p2, %p7062_p3 }
  0x5c   : > { %7072 = shalt.err (!%p7069_p5)
}
  0x5d   : > { %s7881_s9 = sld [smem:[#allocation29_spill]]  ;;  %s7084_s17 = scalar_lea.vmem %s439_s20, 9216 }
  0x5e   : > { %p7085_p8 = scmp.ne.s32.totalorder %s439_s20, %s7084_s17  ;;  %p7092_p10 = scmp.lt.s32.totalorder %s439_s20, %s439_s20 }
  0x5f   : > { %p7093_p12 = scmp.lt.s32.totalorder %s7084_s17, %s7084_s17 }
  0x60   : > { %p7087_p9 = pnand %p7085_p8, %p7338_p7 }
  0x61   : > { %p7094_p13 = por %p7093_p12, %p7092_p10 }
  0x62   : > { %p7088_p11 = pneg %p7087_p9 }
  0x63   : > { %6233 = dma.hbm_to_vmem [thread:$0]  (!%p7330_p6), %s7881_s9, 9216, %s423_s24, [#allocation12], %s7879_s16, %s7879_s16, %s7878_s30  }
  0x64   : > { %p7095_p1 = pnand %p7094_p13, %p7088_p11 }
  0x66   : > { %7098 = shalt.err (!%p7095_p1)
}
  0x67   : > { %s7882_s11 = sld [smem:[#allocation30_spill]]  ;;  %s5375_s18 = sadd.s32 4294967294, %s7207_s28  }
  0x68   : > { %s7416_s21 = sadd.s32 1, %s7207_s28   ;;  %s40_s22 = sadd.s32 1, %s7203_s27 }
  0x69   : > { %s37_s24 = ssub.s32 %s7207_s28, %s7416_s21  ;;  %p47_p7 = scmp.ne.s32.totalorder %s7203_s27, %s7199_s26 }
  0x6a   : > { %p38_p3 = scmp.eq.s32.totalorder %s37_s24, 0  ;;  %p48_p4 = scmp.eq.s32.totalorder %s7207_s28, 0 }
  0x6b   : > { %p53_p0 = scmp.ne.s32.totalorder %s7199_s26, %s7195_s25  ;;  %p329_p2 = scmp.eq.s32.totalorder %s7314_s14, 1 }
  0x6c   : > { %s7428_s1 = scalar_select %p38_p3, %s7203_s27, %s40_s22  }
  0x6d   : > { %6236 = dma.hbm_to_vmem [thread:$0]  (!%p7330_p6), %s7882_s11, 9216, %s439_s20, [#allocation15], %s7879_s16, %s7879_s16, %s7878_s30  }
  0x6e   : > { %7883 = sst [smem:[#allocation23_spill]] %s7428_s1  ;;  %p49_p5 = por %p48_p4, %p47_p7 }
  0x6f   : > { %p7884_p8 = scmp.eq.s32.totalorder %s7314_s14, 0  ;;  %p7436_p6 = por %p329_p2, %p47_p7 }
  0x70   : > { %p335_p11 = scmp.eq.s32.totalorder %s5375_s18, 1  ;;  %p6252_p10 = scmp.lt.s32.totalorder %s7207_s28, 2 }
  0x71   : > { %p7432_p9 = por %p7884_p8, %p53_p0  ;;  %s455_s16 = sand.u32 1, %s7203_s27  }
  0x72   : > { %s7886_s30 = scalar_select %p7436_p6, 1, 0 }
  0x73   : > { %s7885_s19 = scalar_select %p7432_p9, 1, 0 }
  0x74   : > { %p7442_p12 = por %p335_p11, %p53_p0  ;;  %s6179_s29 = smul.u32 24, %s455_s16 }
  0x75   : > { %p7446_p13 = pnand %p6252_p10, %p49_p5  ;;  %s6180_s2 = smul.u32 384, %s7207_s28 }
  0x76   : > { %s7887_s20 = scalar_select %p7442_p12, 1, 0 }
  0x77   : > { %s7454_s24 = scalar_lea.hbm %s7842_s0, %s6180_s2  ;;  %s459_s18 = scalar_lea.vmem [#allocation2], %s6179_s29 }
  0x78   : > { %s467_s3 = sshll.u32 %s459_s18, 4  ;;  %s456_s4 = scalar_lea.sflag [#allocation3], %s455_s16  ;;  %s468_s3 = int_to_ptr.vmem [resolvable:$true] %s467_s3 }
  0x79   : > { %s7099_s5 = scalar_lea.hbm %s7454_s24, 384  ;;  %p7101_p7 = pneg %p7446_p13 }
  0x7a   : > { %p7100_p1 = scmp.ne.s32.totalorder %s7454_s24, %s7099_s5  ;;  %s7104_s1 = scalar_lea.hbm %s7842_s0, 768 }
  0x7b   : > { %p7105_p0 = scmp.lt.s32.totalorder %s7454_s24, %s7842_s0  ;;  %p7106_p2 = scmp.lt.s32.totalorder %s7104_s1, %s7099_s5 }
  0x7c   : > { %p7102_p3 = pnand %p7101_p7, %p7100_p1 }
  0x7d   : > { %p7107_p5 = por %p7106_p2, %p7105_p0 }
  0x7e   : > { %p7103_p4 = pneg %p7102_p3 }
  0x80   : > { %p7108_p8 = pnand %p7107_p5, %p7103_p4 }
  0x82   : > { %7111 = shalt.err (!%p7108_p8)
}
  0x83   : > { %s7112_s29 = scalar_lea.vmem %s468_s3, 384  ;;  %s7218_s16 = smov [#allocation2]  }
  0x84   : > { %p7113_p11 = scmp.ne.s32.totalorder %s468_s3, %s7112_s29  ;;  %s7117_s22 = sshll.u32 %s7218_s16, 4  ;;  %s7118_s22 = int_to_ptr.vmem [resolvable:$false] %s7117_s22 }
  0x85   : > { %s7119_s18 = scalar_lea.vmem %s7118_s22, 768  ;;  %p7120_p1 = scmp.lt.s32.totalorder %s468_s3, %s7118_s22 }
  0x86   : > { %p7115_p10 = pnand %p7113_p11, %p7101_p7  ;;  %p7121_p3 = scmp.lt.s32.totalorder %s7119_s18, %s7112_s29 }
  0x88   : > { %p7116_p12 = pneg %p7115_p10  ;;  %p7122_p6 = por %p7121_p3, %p7120_p1 }
  0x8a   : > { %p7123_p9 = pnand %p7122_p6, %p7116_p12 }
  0x8c   : > { %7126 = shalt.err (!%p7123_p9)
}
  0x8d   : > { %6240 = dma.hbm_to_vmem [thread:$0]  (!%p7446_p13), %s7454_s24, 384, %s468_s3, %s456_s4  }
  0x8e   : > { %p7889_p4 = scmp.ne.s32.totalorder %s7871_s15, 0 }
  0x8f   : > { %s7473_s5 = sand.u32 (!%p7889_p4), 1, %s7199_s26   ;;  %p7890_p9 = scmp.ne.s32.totalorder (!%p7889_p4), %s7885_s19, 0 }
  0x90   : > { %476 = sbr.rel (%p7889_p4) target bundleno = 4393 (0x1129), region = 72  ;;  %s479_s11 = scalar_lea.sflag (!%p7889_p4), [#allocation3], %s7473_s5 }
  0x91   : > { %s6181_s9 = smul.u32 (!%p7889_p4), 24, %s7473_s5 }
  0x93   : > { %s7479_s1 = scalar_lea.vmem (!%p7889_p4), [#allocation2], %s6181_s9 }
  0x95   : > { %7170 = dma.done.wait (%p7890_p9), %s479_s11, 384  }
  0x96   : > { %7172 = vsyncadd (%p7890_p9), %s479_s11, 4294966912  ;;  %p7891_p6 = scmp.eq.s32.totalorder %s7314_s14, 0 }
  0x98   : > { %7174 = dma.done.wait (%p7891_p6), [#allocation6], 96   ;;  %p7892_p12 = pmov %p7891_p6 }
  0x99   : > { %p7893_p13 = pmov %p7891_p6 }
  0x9a   : > { %7176 = vsyncadd (%p7892_p12), [#allocation6], 4294967200 }
  0x9b   : > { %7178 = dma.done.wait (%p7893_p13), [#allocation9], 36864   ;;  %p7894_p7 = pmov %p7891_p6 }
  0x9c   : > { %p7895_p0 = pmov %p7891_p6 }
  0x9d   : > { %7180 = vsyncadd (%p7894_p7), [#allocation9], 4294930432 }
  0x9e   : > { %7182 = dma.done.wait (%p7895_p0), [#allocation12], 9264   ;;  %p7896_p2 = pmov %p7895_p0 }
  0x9f   : > { %p7897_p5 = pmov %p7895_p0 }
  0xa0   : > { %7184 = vsyncadd (%p7896_p2), [#allocation12], 4294958032 }
  0xa1   : > { %7186 = dma.done.wait (%p7897_p5), [#allocation15], 9216   ;;  %p7898_p8 = pmov %p7895_p0 }
  0xa2   : > { %v7502_v0 = vld [vmem:[%s7479_s1] sm:$0xff]  ;;  %v7505_v1 = vld [vmem:[%s7479_s1 + $0x8] sm:$0xff]  ;;  %v7508_v2 = vld [vmem:[%s7479_s1 + $0x10] sm:$0xff]  ;;  %vm7220_vm0 = vmmov 0   ;;  %s7221_s3 = smov 64   ;;  %vm2480_vm1 = vcmask 523264  }
  0xa3   : > { %7188 = vsyncadd (%p7898_p8), [#allocation15], 4294958080  ;;  %v557_v3 = vadd.f32 %v7505_v1, %v7502_v0  ;;  %v6310_v5 = vld [vmem:[#allocation8 + $0xac] ss:$12 sps:$4 sm:$0xff]   ;;  %v6312_v6 = vld [vmem:[#allocation8 + $0xa8] ss:$12 sps:$4 sm:$0xff]  }
  0xa4   : > { %v6313_v7 = vld [vmem:[#allocation8 + $0x94] ss:$12 sps:$4 sm:$0xff]   ;;  %2062 = vmatprep.subr.bf16.mxu0 %v6310_v5  ;;  %v6336_v8 = vld [vmem:[#allocation8 + $0x170] ss:$12 sps:$4 sm:$0xff]   ;;  %v6341_v11 = vld [vmem:[#allocation8 + $0x158] ss:$12 sps:$4 sm:$0xff]  }
  0xa5   : > { %v558_v4 = vadd.f32 %v557_v3, %v7508_v2  ;;  %2063 = vmatpush1.bf16.xpose.msra.mxu0 %v6312_v6  ;;  %v6338_v9 = vld [vmem:[#allocation8 + $0xb0] ss:$12 sps:$4 sm:$0xff]   ;;  %5841 = vmatprep.subr.bf16.mxu1 %v6336_v8  ;;  %v6343_v13 = vld [vmem:[#allocation8 + $0x98] ss:$12 sps:$4 sm:$0xff]   ;;  %v6346_v14 = vld [vmem:[#allocation8 + $0x140] ss:$12 sps:$4 sm:$0xff]  }
  0xa6   : > { %2064 = vmatprep.subr.bf16.mxu0 %v6313_v7  ;;  %v6315_v10 = vld [vmem:[#allocation8 + $0x90] ss:$12 sps:$4 sm:$0xff]   ;;  %5842 = vmatpush3.bf16.xpose.msra.mxu1 %v6338_v9  ;;  %v6318_v15 = vld [vmem:[#allocation8 + $0x78] ss:$12 sps:$4 sm:$0xff]   ;;  %v6348_v17 = vld [vmem:[#allocation8 + $0x80] ss:$12 sps:$4 sm:$0xff]  }
  0xa7   : > { %559 = vadd.xlane.f32.xlu0 %v558_v4  ;;  %v6316_v12 = vld [vmem:[#allocation8 + $0x7c] ss:$12 sps:$4 sm:$0xff]   ;;  %5843 = vmatprep.subr.bf16.mxu1 %v6341_v11  ;;  %v6319_v16 = vld [vmem:[#allocation8 + $0x64] ss:$12 sps:$4 sm:$0xff]   ;;  %v6321_v19 = vld [vmem:[#allocation8 + $0x60] ss:$12 sps:$4 sm:$0xff]   ;;  %v581_v4 = vlaneseq }
  0xa8   : > { %v6351_v18 = vld [vmem:[#allocation8 + $0x128] ss:$12 sps:$4 sm:$0xff]   ;;  %v6322_v20 = vld [vmem:[#allocation8 + $0x4c] ss:$12 sps:$4 sm:$0xff]   ;;  %v6356_v22 = vld [vmem:[#allocation8 + $0x110] ss:$12 sps:$4 sm:$0xff]  }
  0xa9   : > { %v6353_v21 = vld [vmem:[#allocation8 + $0x68] ss:$12 sps:$4 sm:$0xff]   ;;  %v6358_v25 = vld [vmem:[#allocation8 + $0x50] ss:$12 sps:$4 sm:$0xff]   ;;  %v6330_v28 = vld [vmem:[#allocation8 + $0x18] ss:$12 sps:$4 sm:$0xff]  }
  0xaa   : > { %v6324_v23 = vld [vmem:[#allocation8 + $0x48] ss:$12 sps:$4 sm:$0xff]   ;;  %v6327_v26 = vld [vmem:[#allocation8 + $0x30] ss:$12 sps:$4 sm:$0xff]   ;;  %v6333_v30 = vld [vmem:[#allocation8] ss:$12 sps:$4 sm:$0xff]  }
  0xab   : > { %v6325_v24 = vld [vmem:[#allocation8 + $0x34] ss:$12 sps:$4 sm:$0xff]   ;;  %v6328_v27 = vld [vmem:[#allocation8 + $0x1c] ss:$12 sps:$4 sm:$0xff]   ;;  %v6331_v29 = vld [vmem:[#allocation8 + $0x4] ss:$12 sps:$4 sm:$0xff]  }
  0xac   : > { %v6334_v31 = vld [vmem:[#allocation8 + $0x16c] ss:$12 sps:$4 sm:$0xff]   ;;  %v6337_v32 = vld [vmem:[#allocation8 + $0x168] ss:$12 sps:$4 sm:$0xff]   ;;  %v6342_v34 = vld [vmem:[#allocation8 + $0x150] ss:$12 sps:$4 sm:$0xff]  }
  0xad   : > { %2065 = vmatpush1.bf16.xpose.msra.mxu0 %v6315_v10  ;;  %v6339_v33 = vld [vmem:[#allocation8 + $0x154] ss:$12 sps:$4 sm:$0xff]   ;;  %v6344_v35 = vld [vmem:[#allocation8 + $0x13c] ss:$12 sps:$4 sm:$0xff]   ;;  %v6347_v36 = vld [vmem:[#allocation8 + $0x138] ss:$12 sps:$4 sm:$0xff]  }
  0xae   : > { %2066 = vmatprep.subr.bf16.mxu0 %v6316_v12  ;;  %5844 = vmatpush3.bf16.xpose.msra.mxu1 %v6343_v13  ;;  %v6349_v37 = vld [vmem:[#allocation8 + $0x124] ss:$12 sps:$4 sm:$0xff]   ;;  %v6352_v38 = vld [vmem:[#allocation8 + $0x120] ss:$12 sps:$4 sm:$0xff]   ;;  %v6357_v40 = vld [vmem:[#allocation8 + $0x108] ss:$12 sps:$4 sm:$0xff]  }
  0xaf   : > { %5845 = vmatprep.subr.bf16.mxu1 %v6346_v14  ;;  %v6354_v39 = vld [vmem:[#allocation8 + $0x10c] ss:$12 sps:$4 sm:$0xff]   ;;  %v6359_v51 = vld [vmem:[#allocation8 + $0xf4] ss:$12 sps:$4 sm:$0xff]   ;;  %v6362_v53 = vld [vmem:[#allocation8 + $0xf0] ss:$12 sps:$4 sm:$0xff]  }
  0xb0   : > { %v6361_v52 = vld [vmem:[#allocation8 + $0xf8] ss:$12 sps:$4 sm:$0xff]   ;;  %v6364_v55 = vld [vmem:[#allocation8 + $0xdc] ss:$12 sps:$4 sm:$0xff]   ;;  %v6366_v56 = vld [vmem:[#allocation8 + $0xe0] ss:$12 sps:$4 sm:$0xff]  }
  0xb1   : > { %v6363_v54 = vld [vmem:[#allocation8 + $0x38] ss:$12 sps:$4 sm:$0xff]   ;;  %v6368_v58 = vld [vmem:[#allocation8 + $0x20] ss:$12 sps:$4 sm:$0xff]   ;;  %v6371_v60 = vld [vmem:[#allocation8 + $0xc8] ss:$12 sps:$4 sm:$0xff]  }
  0xb2   : > { %v6367_v57 = vld [vmem:[#allocation8 + $0xd8] ss:$12 sps:$4 sm:$0xff]   ;;  %v6372_v61 = vld [vmem:[#allocation8 + $0xc0] ss:$12 sps:$4 sm:$0xff]   ;;  %v6373_v62 = vld [vmem:[#allocation8 + $0x8] ss:$12 sps:$4 sm:$0xff]  }
  0xb3   : > { %v6369_v59 = vld [vmem:[#allocation8 + $0xc4] ss:$12 sps:$4 sm:$0xff]   ;;  %v6376_v63 = vld [vmem:[#allocation8 + $0x22c] ss:$12 sps:$4 sm:$0xff]   ;;  %v582_v5 = vshrl.u32 %v581_v4, 7  ;;  %vm2545_vm2 = vcmask 1043456  }
  0xb4   : > { %v579_v9 = vld [vmem:[#allocation5] sm:$0x7]  ;;  %v599_v10 = vld [vmem:[#allocation7] sm:$0x7]  ;;  %vm2529_vm3 = vcmask 64512   ;;  %s552_s18 = scalar_lea.vmem [#allocation16], %s6181_s9 }
  0xb5   : > { %2067 = vmatpush1.bf16.xpose.msra.mxu0 %v6318_v15  ;;  %v7516_v6 = vsub.s32 1, %v582_v5  ;;  %v7518_v7 = vsub.s32 2, %v582_v5  ;;  %v7520_v8 = vsub.s32 0, %v582_v5  ;;  %v6428_v4 = vld [vmem:[#allocation8 + $0x2bc] ss:$12 sps:$4 sm:$0xff]   ;;  %s6182_s11 = smul.u32 384, %s7314_s14 }
  0xb6   : > { %2068 = vmatprep.subr.bf16.mxu0 %v6319_v16  ;;  %5846 = vmatpush3.bf16.xpose.msra.mxu1 %v6348_v17  ;;  %v6431_v5 = vld [vmem:[#allocation8 + $0x37c] ss:$12 sps:$4 sm:$0xff]   ;;  %s5224_s15 = scalar_lea.sflag [#allocation4], %s7473_s5  ;;  %p7899_p10 = scmp.ne.s32.totalorder %s7886_s30, 0 }
  0xb7   : > { %5847 = vmatprep.subr.bf16.mxu1 %v6351_v18  ;;  %v588_v11 = vrot.slane %v579_v9, %v7516_v6  ;;  %v592_v12 = vrot.slane %v579_v9, %v7518_v7  ;;  %v584_v13 = vrot.slane %v579_v9, %v7520_v8  ;;  %v608_v15 = vrot.slane %v599_v10, %v7516_v6  ;;  %v6426_v9 = vld [vmem:[#allocation8 + $0x2b8] ss:$12 sps:$4 sm:$0xff]   ;;  %s7805_s4 = scalar_lea.hbm %s7855_s13, %s6182_s11  ;;  %s7222_s14 = smov [#allocation16]  }
  0xb8   : > { %v612_v16 = vrot.slane %v599_v10, %v7518_v7  ;;  %s7131_s17 = sshll.u32 %s7222_s14, 4  ;;  %s7132_s17 = int_to_ptr.vmem [resolvable:$false] %s7131_s17 }
  0xb9   : > { %s7133_s24 = scalar_lea.vmem %s7132_s17, 768 }
  0xbd   : > { %2069 = vmatpush1.bf16.xpose.msra.mxu0 %v6321_v19 }
  0xbe   : > { %2070 = vmatprep.subr.bf16.mxu0 %v6322_v20  ;;  %5848 = vmatpush3.bf16.xpose.msra.mxu1 %v6353_v21  ;;  %v604_v20 = vrot.slane %v599_v10, %v7520_v8  ;;  %v6429_v10 = vld [vmem:[#allocation8 + $0x378] ss:$12 sps:$4 sm:$0xff]  }
  0xbf   : > { %5849 = vmatprep.subr.bf16.mxu1 %v6356_v22 }
  0xc5   : > { %2071 = vmatpush1.bf16.xpose.msra.mxu0 %v6324_v23 }
  0xc6   : > { %2072 = vmatprep.subr.bf16.mxu0 %v6325_v24  ;;  %5850 = vmatpush3.bf16.xpose.msra.mxu1 %v6358_v25 }
  0xc7   : > { %5851 = vmatprep.subr.bf16.mxu1 %v6361_v52  ;;  %v6406_v52 = vld [vmem:[#allocation8 + $0x19c] ss:$12 sps:$4 sm:$0xff]  }
  0xcd   : > { %2073 = vmatpush1.bf16.xpose.msra.mxu0 %v6327_v26 }
  0xce   : > { %2074 = vmatprep.subr.bf16.mxu0 %v6328_v27  ;;  %5852 = vmatpush3.bf16.xpose.msra.mxu1 %v6363_v54  ;;  %v6404_v54 = vld [vmem:[#allocation8 + $0x198] ss:$12 sps:$4 sm:$0xff]  }
  0xcf   : > { %5853 = vmatprep.subr.bf16.mxu1 %v6366_v56  ;;  %v6411_v56 = vld [vmem:[#allocation8 + $0x184] ss:$12 sps:$4 sm:$0xff]  }
  0xd5   : > { %2075 = vmatpush1.bf16.xpose.msra.mxu0 %v6330_v28 }
  0xd6   : > { %2076 = vmatprep.subr.bf16.mxu0 %v6331_v29  ;;  %5854 = vmatpush3.bf16.xpose.msra.mxu1 %v6368_v58  ;;  %v6374_v29 = vld [vmem:[#allocation8 + $0x228] ss:$12 sps:$4 sm:$0xff]   ;;  %v6409_v58 = vld [vmem:[#allocation8 + $0x180] ss:$12 sps:$4 sm:$0xff]  }
  0xd7   : > { %5855 = vmatprep.subr.bf16.mxu1 %v6371_v60  ;;  %v6416_v60 = vld [vmem:[#allocation8 + $0x2ec] ss:$12 sps:$4 sm:$0xff]  }
  0xdd   : > { %2077 = vmatpush1.bf16.xpose.msra.mxu0 %v6333_v30 }
  0xde   : > { %2078 = vmatprep.subr.bf16.mxu0 %v6334_v31  ;;  %5856 = vmatpush3.bf16.xpose.msra.mxu1 %v6373_v62  ;;  %v6378_v31 = vld [vmem:[#allocation8 + $0x230] ss:$12 sps:$4 sm:$0xff]   ;;  %v6414_v62 = vld [vmem:[#allocation8 + $0x2e8] ss:$12 sps:$4 sm:$0xff]  }
  0xdf   : > { %2144 = vmatprep.subr.bf16.mxu1 %v6376_v63  ;;  %v6417_v63 = vld [vmem:[#allocation8 + $0x3a8] ss:$12 sps:$4 sm:$0xff]  }
  0xe5   : > { %2079 = vmatpush2.bf16.xpose.msra.mxu0 %v6337_v32  ;;  %v6381_v32 = vld [vmem:[#allocation8 + $0x214] ss:$12 sps:$4 sm:$0xff]  }
  0xe6   : > { %2080 = vmatprep.subr.bf16.mxu0 %v6339_v33  ;;  %v6382_v33 = vld [vmem:[#allocation8 + $0x2d8] ss:$12 sps:$4 sm:$0xff]  }
  0xed   : > { %2081 = vmatpush2.bf16.xpose.msra.mxu0 %v6342_v34  ;;  %v6379_v34 = vld [vmem:[#allocation8 + $0x210] ss:$12 sps:$4 sm:$0xff]  }
  0xee   : > { %2082 = vmatprep.subr.bf16.mxu0 %v6344_v35  ;;  %v6383_v35 = vld [vmem:[#allocation8 + $0x218] ss:$12 sps:$4 sm:$0xff]  }
  0xf5   : > { %2083 = vmatpush2.bf16.xpose.msra.mxu0 %v6347_v36  ;;  %v6386_v36 = vld [vmem:[#allocation8 + $0x1fc] ss:$12 sps:$4 sm:$0xff]  }
  0xf6   : > { %2084 = vmatprep.subr.bf16.mxu0 %v6349_v37  ;;  %v6387_v37 = vld [vmem:[#allocation8 + $0x2c0] ss:$12 sps:$4 sm:$0xff]  }
  0xfd   : > { %2085 = vmatpush2.bf16.xpose.msra.mxu0 %v6352_v38  ;;  %v6384_v38 = vld [vmem:[#allocation8 + $0x1f8] ss:$12 sps:$4 sm:$0xff]  }
  0xfe   : > { %2086 = vmatprep.subr.bf16.mxu0 %v6354_v39  ;;  %v6388_v39 = vld [vmem:[#allocation8 + $0x200] ss:$12 sps:$4 sm:$0xff]  }
 0x105   : > { %2087 = vmatpush2.bf16.xpose.msra.mxu0 %v6357_v40  ;;  %v6391_v40 = vld [vmem:[#allocation8 + $0x1e4] ss:$12 sps:$4 sm:$0xff]  }
 0x106   : > { %2088 = vmatprep.subr.bf16.mxu0 %v6359_v51  ;;  %v6403_v51 = vld [vmem:[#allocation8 + $0x1b8] ss:$12 sps:$4 sm:$0xff]  }
 0x10d   : > { %2089 = vmatpush2.bf16.xpose.msra.mxu0 %v6362_v53  ;;  %v6407_v53 = vld [vmem:[#allocation8 + $0x260] ss:$12 sps:$4 sm:$0xff]  }
 0x10e   : > { %2090 = vmatprep.subr.bf16.mxu0 %v6364_v55  ;;  %v6408_v55 = vld [vmem:[#allocation8 + $0x1a0] ss:$12 sps:$4 sm:$0xff]  }
 0x115   : > { %2091 = vmatpush2.bf16.xpose.msra.mxu0 %v6367_v57  ;;  %v6412_v57 = vld [vmem:[#allocation8 + $0x248] ss:$12 sps:$4 sm:$0xff]  }
 0x116   : > { %2092 = vmatprep.subr.bf16.mxu0 %v6369_v59  ;;  %v6413_v59 = vld [vmem:[#allocation8 + $0x188] ss:$12 sps:$4 sm:$0xff]  }
 0x11d   : > { %2093 = vmatpush2.bf16.xpose.msra.mxu0 %v6372_v61  ;;  %v6419_v61 = vld [vmem:[#allocation8 + $0x3ac] ss:$12 sps:$4 sm:$0xff]  }
 0x130   : > { %v560_v41 = vpop.xlane.xlu0 %559 }
 0x131   : > { %v562_v42 = vmul.f32 0.0026041667, %v560_v41  ;;  %v6392_v41 = vld [vmem:[#allocation8 + $0x2a8] ss:$12 sps:$4 sm:$0xff]  }
 0x133   : > { %v563_v43 = vsub.f32 %v7502_v0, %v562_v42  ;;  %v564_v44 = vsub.f32 %v7505_v1, %v562_v42  ;;  %v565_v45 = vsub.f32 %v7508_v2, %v562_v42  ;;  %v6377_v0 = vld [vmem:[#allocation8 + $0x2f0] ss:$12 sps:$4 sm:$0xff]   ;;  %v6389_v42 = vld [vmem:[#allocation8 + $0x1e0] ss:$12 sps:$4 sm:$0xff]  }
 0x134   : > { %5859 = vmatprep.subr.bf16.mxu0 %v6377_v0  ;;  %v6422_v0 = vld [vmem:[#allocation8 + $0x2d4] ss:$12 sps:$4 sm:$0xff]  }
 0x135   : > { %v566_v46 = vmul.f32 %v563_v43, %v563_v43  ;;  %v567_v47 = vmul.f32 %v564_v44, %v564_v44  ;;  %v568_v48 = vmul.f32 %v565_v45, %v565_v45 }
 0x137   : > { %v569_v49 = vadd.f32 %v567_v47, %v566_v46  ;;  %v6394_v46 = vld [vmem:[#allocation8 + $0x1c8] ss:$12 sps:$4 sm:$0xff]   ;;  %v6398_v47 = vld [vmem:[#allocation8 + $0x1d0] ss:$12 sps:$4 sm:$0xff]  }
 0x139   : > { %v570_v50 = vadd.f32 %v569_v49, %v568_v48  ;;  %v6401_v48 = vld [vmem:[#allocation8 + $0x1b4] ss:$12 sps:$4 sm:$0xff]   ;;  %v6402_v49 = vld [vmem:[#allocation8 + $0x278] ss:$12 sps:$4 sm:$0xff]  }
 0x13b   : > { %571 = vadd.xlane.f32.xlu0 %v570_v50  ;;  %v6399_v50 = vld [vmem:[#allocation8 + $0x1b0] ss:$12 sps:$4 sm:$0xff]  }
 0x1c4   : > { %v572_v1 = vpop.xlane.xlu0 %571 }
 0x1c5   : > { %v573_v2 = vmul.f32 0.0026041667, %v572_v1  ;;  %v6425_v1 = vld [vmem:[#allocation8 + $0x394] ss:$12 sps:$4 sm:$0xff]  }
 0x1c7   : > { %v574_v3 = vadd.f32 1e-05, %v573_v2  ;;  %v6420_v2 = vld [vmem:[#allocation8 + $0x2d0] ss:$12 sps:$4 sm:$0xff]  }
 0x1c9   : > { %6886 = vrsqrt.f32 %v574_v3  ;;  %v6423_v3 = vld [vmem:[#allocation8 + $0x390] ss:$12 sps:$4 sm:$0xff]  }
 0x1d6   : > { %v6887_v14 = vpop.eup %6886 }
 0x1d7   : > { %v577_v17 = vmul.f32 %v6887_v14, %v564_v44  ;;  %v578_v18 = vmul.f32 %v6887_v14, %v565_v45  ;;  %v576_v19 = vmul.f32 %v6887_v14, %v563_v43  ;;  %v6393_v43 = vld [vmem:[#allocation8 + $0x1e8] ss:$12 sps:$4 sm:$0xff]   ;;  %v6396_v44 = vld [vmem:[#allocation8 + $0x1cc] ss:$12 sps:$4 sm:$0xff]   ;;  %v6397_v45 = vld [vmem:[#allocation8 + $0x290] ss:$12 sps:$4 sm:$0xff]  }
 0x1d8   : > { %v6435_v14 = vld [vmem:[#allocation8 + $0x360] ss:$12 sps:$4 sm:$0xff]  }
 0x1d9   : > { %v597_v21 = vmul.f32 %v588_v11, %v577_v17  ;;  %v598_v22 = vmul.f32 %v592_v12, %v578_v18  ;;  %v596_v23 = vmul.f32 %v584_v13, %v576_v19  ;;  %v6434_v11 = vld [vmem:[#allocation8 + $0x2a4] ss:$12 sps:$4 sm:$0xff]   ;;  %v6432_v13 = vld [vmem:[#allocation8 + $0x2a0] ss:$12 sps:$4 sm:$0xff]   ;;  %v6438_v17 = vld [vmem:[#allocation8 + $0x288] ss:$12 sps:$4 sm:$0xff]  }
 0x1da   : > { %v6437_v12 = vld [vmem:[#allocation8 + $0x364] ss:$12 sps:$4 sm:$0xff]   ;;  %v6441_v18 = vld [vmem:[#allocation8 + $0x348] ss:$12 sps:$4 sm:$0xff]  }
 0x1db   : > { %v617_v24 = vadd.f32 %v608_v15, %v597_v21  ;;  %v618_v25 = vadd.f32 %v612_v16, %v598_v22  ;;  %v616_v26 = vadd.f32 %v604_v20, %v596_v23  ;;  %v6440_v15 = vld [vmem:[#allocation8 + $0x28c] ss:$12 sps:$4 sm:$0xff]   ;;  %v6446_v19 = vld [vmem:[#allocation8 + $0x274] ss:$12 sps:$4 sm:$0xff]   ;;  %v6444_v21 = vld [vmem:[#allocation8 + $0x270] ss:$12 sps:$4 sm:$0xff]  }
 0x1dc   : > { %v6443_v16 = vld [vmem:[#allocation8 + $0x34c] ss:$12 sps:$4 sm:$0xff]   ;;  %v6449_v20 = vld [vmem:[#allocation8 + $0x334] ss:$12 sps:$4 sm:$0xff]   ;;  %v6447_v22 = vld [vmem:[#allocation8 + $0x330] ss:$12 sps:$4 sm:$0xff]  }
 0x1dd   : > { %v7528_v27 = vpack.c.bf16 %v617_v24, %v617_v24  ;;  %v7530_v28 = vpack.c.bf16 %v618_v25, %v618_v25  ;;  %v7532_v30 = vpack.c.bf16 %v616_v26, %v616_v26  ;;  %v6452_v23 = vld [vmem:[#allocation8 + $0x25c] ss:$12 sps:$4 sm:$0xff]   ;;  %v6450_v25 = vld [vmem:[#allocation8 + $0x258] ss:$12 sps:$4 sm:$0xff]  }
 0x1de   : > { %v6455_v24 = vld [vmem:[#allocation8 + $0x31c] ss:$12 sps:$4 sm:$0xff]   ;;  %v6453_v26 = vld [vmem:[#allocation8 + $0x318] ss:$12 sps:$4 sm:$0xff]  }
 0x1df   : > { %2094 = vmatprep.mubr.bf16.mxu0 %v7528_v27  ;;  %5857 = vmatprep.mubr.bf16.mxu1 %v7530_v28 }
 0x1e0   : > { %2095 = vmatmul.mubr.bf16.vlgmr.msra.gmra.mxu0 %v7532_v30  ;;  %5858 = vmatmul.mubr.bf16.vlgmr.msra.gmra.mxu1 %v7530_v28 }
 0x1e1   : > { %2145 = vmatpush1.bf16.xpose.msra.mxu1 %v6374_v29  ;;  %5860 = vmatpush3.bf16.xpose.msra.mxu0 %v6378_v31  ;;  %v6458_v29 = vld [vmem:[#allocation8 + $0x244] ss:$12 sps:$4 sm:$0xff]  }
 0x1e2   : > { %2176 = vmatprep.mubr.bf16.mxu1 %v7528_v27  ;;  %5875 = vmatprep.mubr.bf16.mxu0 %v7530_v28  ;;  %v6461_v31 = vld [vmem:[#allocation8 + $0x304] ss:$12 sps:$4 sm:$0xff]  }
 0x1e3   : > { %2146 = vmatprep.subr.bf16.mxu1 %v6381_v32  ;;  %5861 = vmatprep.subr.bf16.mxu0 %v6382_v33  ;;  %v6456_v32 = vld [vmem:[#allocation8 + $0x240] ss:$12 sps:$4 sm:$0xff]  }
 0x1e4   : > { %v6459_v33 = vld [vmem:[#allocation8 + $0x300] ss:$12 sps:$4 sm:$0xff]  }
 0x1e9   : > { %2147 = vmatpush1.bf16.xpose.msra.mxu1 %v6379_v34  ;;  %5862 = vmatpush3.bf16.xpose.msra.mxu0 %v6383_v35  ;;  %v6464_v34 = vld [vmem:[#allocation8 + $0x46c] ss:$12 sps:$4 sm:$0xff]   ;;  %v6465_v35 = vld [vmem:[#allocation8 + $0x470] ss:$12 sps:$4 sm:$0xff]  }
 0x1ea   : > { %2148 = vmatprep.subr.bf16.mxu1 %v6386_v36  ;;  %5863 = vmatprep.subr.bf16.mxu0 %v6387_v37  ;;  %v6462_v36 = vld [vmem:[#allocation8 + $0x468] ss:$12 sps:$4 sm:$0xff]   ;;  %v6466_v37 = vld [vmem:[#allocation8 + $0x3b0] ss:$12 sps:$4 sm:$0xff]  }
 0x1f1   : > { %2149 = vmatpush1.bf16.xpose.msra.mxu1 %v6384_v38  ;;  %5864 = vmatpush3.bf16.xpose.msra.mxu0 %v6388_v39  ;;  %v6469_v38 = vld [vmem:[#allocation8 + $0x454] ss:$12 sps:$4 sm:$0xff]   ;;  %v6470_v39 = vld [vmem:[#allocation8 + $0x458] ss:$12 sps:$4 sm:$0xff]  }
 0x1f2   : > { %2150 = vmatprep.subr.bf16.mxu1 %v6391_v40  ;;  %5865 = vmatprep.subr.bf16.mxu0 %v6392_v41  ;;  %v6467_v40 = vld [vmem:[#allocation8 + $0x450] ss:$12 sps:$4 sm:$0xff]   ;;  %v6471_v41 = vld [vmem:[#allocation8 + $0x398] ss:$12 sps:$4 sm:$0xff]  }
 0x1f9   : > { %2151 = vmatpush1.bf16.xpose.msra.mxu1 %v6389_v42  ;;  %5866 = vmatpush3.bf16.xpose.msra.mxu0 %v6393_v43  ;;  %v6474_v42 = vld [vmem:[#allocation8 + $0x43c] ss:$12 sps:$4 sm:$0xff]   ;;  %v6475_v43 = vld [vmem:[#allocation8 + $0x440] ss:$12 sps:$4 sm:$0xff]  }
 0x1fa   : > { %2152 = vmatprep.subr.bf16.mxu1 %v6396_v44  ;;  %5867 = vmatprep.subr.bf16.mxu0 %v6397_v45  ;;  %v6472_v44 = vld [vmem:[#allocation8 + $0x438] ss:$12 sps:$4 sm:$0xff]   ;;  %v6476_v45 = vld [vmem:[#allocation8 + $0x380] ss:$12 sps:$4 sm:$0xff]  }
 0x201   : > { %2153 = vmatpush1.bf16.xpose.msra.mxu1 %v6394_v46  ;;  %5868 = vmatpush3.bf16.xpose.msra.mxu0 %v6398_v47  ;;  %v6479_v46 = vld [vmem:[#allocation8 + $0x424] ss:$12 sps:$4 sm:$0xff]   ;;  %v6480_v47 = vld [vmem:[#allocation8 + $0x428] ss:$12 sps:$4 sm:$0xff]  }
 0x202   : > { %2154 = vmatprep.subr.bf16.mxu1 %v6401_v48  ;;  %5869 = vmatprep.subr.bf16.mxu0 %v6402_v49  ;;  %v6477_v48 = vld [vmem:[#allocation8 + $0x420] ss:$12 sps:$4 sm:$0xff]   ;;  %v6481_v49 = vld [vmem:[#allocation8 + $0x368] ss:$12 sps:$4 sm:$0xff]  }
 0x209   : > { %2155 = vmatpush1.bf16.xpose.msra.mxu1 %v6399_v50  ;;  %5870 = vmatpush3.bf16.xpose.msra.mxu0 %v6403_v51  ;;  %v6484_v50 = vld [vmem:[#allocation8 + $0x40c] ss:$12 sps:$4 sm:$0xff]   ;;  %v6485_v51 = vld [vmem:[#allocation8 + $0x410] ss:$12 sps:$4 sm:$0xff]  }
 0x20a   : > { %2156 = vmatprep.subr.bf16.mxu1 %v6406_v52  ;;  %5871 = vmatprep.subr.bf16.mxu0 %v6407_v53  ;;  %v6482_v52 = vld [vmem:[#allocation8 + $0x408] ss:$12 sps:$4 sm:$0xff]   ;;  %v6486_v53 = vld [vmem:[#allocation8 + $0x350] ss:$12 sps:$4 sm:$0xff]  }
 0x211   : > { %2157 = vmatpush1.bf16.xpose.msra.mxu1 %v6404_v54  ;;  %5872 = vmatpush3.bf16.xpose.msra.mxu0 %v6408_v55  ;;  %v6489_v54 = vld [vmem:[#allocation8 + $0x3f4] ss:$12 sps:$4 sm:$0xff]   ;;  %v6490_v55 = vld [vmem:[#allocation8 + $0x3f8] ss:$12 sps:$4 sm:$0xff]  }
 0x212   : > { %2158 = vmatprep.subr.bf16.mxu1 %v6411_v56  ;;  %5873 = vmatprep.subr.bf16.mxu0 %v6412_v57  ;;  %v6487_v56 = vld [vmem:[#allocation8 + $0x3f0] ss:$12 sps:$4 sm:$0xff]   ;;  %v6491_v57 = vld [vmem:[#allocation8 + $0x338] ss:$12 sps:$4 sm:$0xff]  }
 0x219   : > { %2159 = vmatpush1.bf16.xpose.msra.mxu1 %v6409_v58  ;;  %5874 = vmatpush3.bf16.xpose.msra.mxu0 %v6413_v59  ;;  %v6494_v58 = vld [vmem:[#allocation8 + $0x3dc] ss:$12 sps:$4 sm:$0xff]   ;;  %v6495_v59 = vld [vmem:[#allocation8 + $0x3e0] ss:$12 sps:$4 sm:$0xff]  }
 0x21a   : > { %2160 = vmatprep.subr.bf16.mxu1 %v6416_v60  ;;  %2226 = vmatprep.subr.bf16.mxu0 %v6419_v61  ;;  %v6492_v60 = vld [vmem:[#allocation8 + $0x3d8] ss:$12 sps:$4 sm:$0xff]   ;;  %v6496_v61 = vld [vmem:[#allocation8 + $0x320] ss:$12 sps:$4 sm:$0xff]  }
 0x220   : > { %5876 = vmatmul.mubr.bf16.vlgmr.msra.gmra.mxu0 %v7530_v28 }
 0x221   : > { %2161 = vmatpush2.bf16.xpose.msra.mxu1 %v6414_v62  ;;  %2227 = vmatpush1.bf16.xpose.msra.mxu0 %v6417_v63  ;;  %v6499_v62 = vld [vmem:[#allocation8 + $0x3c4] ss:$12 sps:$4 sm:$0xff]   ;;  %v6500_v63 = vld [vmem:[#allocation8 + $0x3c8] ss:$12 sps:$4 sm:$0xff]  }
 0x222   : > { %2258 = vmatprep.mubr.bf16.mxu0 %v7528_v27  ;;  %2162 = vmatprep.subr.bf16.mxu1 %v6422_v0  ;;  %v6497_v0 = vld [vmem:[#allocation8 + $0x3c0] ss:$12 sps:$4 sm:$0xff]  }
 0x223   : > { %2228 = vmatprep.subr.bf16.mxu0 %v6425_v1  ;;  %v6501_v1 = vld [vmem:[#allocation8 + $0x308] ss:$12 sps:$4 sm:$0xff]  }
 0x229   : > { %2163 = vmatpush2.bf16.xpose.msra.mxu1 %v6420_v2  ;;  %2229 = vmatpush1.bf16.xpose.msra.mxu0 %v6423_v3  ;;  %v6504_v2 = vld [vmem:[#allocation8 + $0x52c] ss:$12 sps:$4 sm:$0xff]   ;;  %v6505_v3 = vld [vmem:[#allocation8 + $0x5f0] ss:$12 sps:$4 sm:$0xff]  }
 0x22a   : > { %2164 = vmatprep.subr.bf16.mxu1 %v6428_v4  ;;  %2230 = vmatprep.subr.bf16.mxu0 %v6431_v5  ;;  %v6502_v4 = vld [vmem:[#allocation8 + $0x528] ss:$12 sps:$4 sm:$0xff]   ;;  %v6506_v5 = vld [vmem:[#allocation8 + $0x530] ss:$12 sps:$4 sm:$0xff]  }
 0x231   : > { %2165 = vmatpush2.bf16.xpose.msra.mxu1 %v6426_v9  ;;  %2231 = vmatpush1.bf16.xpose.msra.mxu0 %v6429_v10  ;;  %v6509_v9 = vld [vmem:[#allocation8 + $0x514] ss:$12 sps:$4 sm:$0xff]   ;;  %v6510_v10 = vld [vmem:[#allocation8 + $0x5d8] ss:$12 sps:$4 sm:$0xff]  }
 0x232   : > { %2166 = vmatprep.subr.bf16.mxu1 %v6434_v11  ;;  %2232 = vmatprep.subr.bf16.mxu0 %v6437_v12 }
 0x239   : > { %2167 = vmatpush2.bf16.xpose.msra.mxu1 %v6432_v13  ;;  %2233 = vmatpush1.bf16.xpose.msra.mxu0 %v6435_v14 }
 0x23a   : > { %2168 = vmatprep.subr.bf16.mxu1 %v6440_v15  ;;  %2234 = vmatprep.subr.bf16.mxu0 %v6443_v16 }
 0x241   : > { %2169 = vmatpush2.bf16.xpose.msra.mxu1 %v6438_v17  ;;  %2235 = vmatpush1.bf16.xpose.msra.mxu0 %v6441_v18 }
 0x242   : > { %2170 = vmatprep.subr.bf16.mxu1 %v6446_v19  ;;  %2236 = vmatprep.subr.bf16.mxu0 %v6449_v20  ;;  %v6507_v19 = vld [vmem:[#allocation8 + $0x510] ss:$12 sps:$4 sm:$0xff]  }
 0x249   : > { %2171 = vmatpush2.bf16.xpose.msra.mxu1 %v6444_v21  ;;  %2237 = vmatpush1.bf16.xpose.msra.mxu0 %v6447_v22  ;;  %v6511_v22 = vld [vmem:[#allocation8 + $0x518] ss:$12 sps:$4 sm:$0xff]  }
 0x24a   : > { %2172 = vmatprep.subr.bf16.mxu1 %v6452_v23  ;;  %2238 = vmatprep.subr.bf16.mxu0 %v6455_v24  ;;  %v6514_v23 = vld [vmem:[#allocation8 + $0x4fc] ss:$12 sps:$4 sm:$0xff]   ;;  %v6515_v24 = vld [vmem:[#allocation8 + $0x5c0] ss:$12 sps:$4 sm:$0xff]  }
 0x251   : > { %2173 = vmatpush2.bf16.xpose.msra.mxu1 %v6450_v25  ;;  %2239 = vmatpush1.bf16.xpose.msra.mxu0 %v6453_v26  ;;  %v6512_v25 = vld [vmem:[#allocation8 + $0x4f8] ss:$12 sps:$4 sm:$0xff]   ;;  %v6516_v26 = vld [vmem:[#allocation8 + $0x500] ss:$12 sps:$4 sm:$0xff]  }
 0x252   : > { %2174 = vmatprep.subr.bf16.mxu1 %v6458_v29  ;;  %2240 = vmatprep.subr.bf16.mxu0 %v6461_v31  ;;  %v6519_v29 = vld [vmem:[#allocation8 + $0x4e4] ss:$12 sps:$4 sm:$0xff]   ;;  %v6520_v31 = vld [vmem:[#allocation8 + $0x5a8] ss:$12 sps:$4 sm:$0xff]  }
 0x259   : > { %2175 = vmatpush2.bf16.xpose.msra.mxu1 %v6456_v32  ;;  %2241 = vmatpush1.bf16.xpose.msra.mxu0 %v6459_v33  ;;  %v6517_v32 = vld [vmem:[#allocation8 + $0x4e0] ss:$12 sps:$4 sm:$0xff]   ;;  %v6521_v33 = vld [vmem:[#allocation8 + $0x4e8] ss:$12 sps:$4 sm:$0xff]  }
 0x25a   : > { %2242 = vmatprep.subr.bf16.mxu0 %v6464_v34  ;;  %5877 = vmatprep.subr.bf16.mxu1 %v6465_v35  ;;  %v6524_v34 = vld [vmem:[#allocation8 + $0x4cc] ss:$12 sps:$4 sm:$0xff]   ;;  %v6525_v35 = vld [vmem:[#allocation8 + $0x590] ss:$12 sps:$4 sm:$0xff]  }
 0x260   : > { %2177 = vmatmul.mubr.bf16.vlgmr.msra.gmra.mxu1 %v7532_v30 }
 0x261   : > { %2243 = vmatpush2.bf16.xpose.msra.mxu0 %v6462_v36  ;;  %5878 = vmatpush3.bf16.xpose.msra.mxu1 %v6466_v37  ;;  %v6522_v36 = vld [vmem:[#allocation8 + $0x4c8] ss:$12 sps:$4 sm:$0xff]   ;;  %v6526_v37 = vld [vmem:[#allocation8 + $0x4d0] ss:$12 sps:$4 sm:$0xff]  }
 0x262   : > { %5893 = vmatprep.mubr.bf16.mxu1 %v7530_v28  ;;  %2244 = vmatprep.subr.bf16.mxu0 %v6469_v38  ;;  %v6529_v38 = vld [vmem:[#allocation8 + $0x4b4] ss:$12 sps:$4 sm:$0xff]  }
 0x263   : > { %5879 = vmatprep.subr.bf16.mxu1 %v6470_v39  ;;  %v6530_v39 = vld [vmem:[#allocation8 + $0x578] ss:$12 sps:$4 sm:$0xff]  }
 0x269   : > { %2245 = vmatpush2.bf16.xpose.msra.mxu0 %v6467_v40  ;;  %5880 = vmatpush3.bf16.xpose.msra.mxu1 %v6471_v41  ;;  %v6527_v40 = vld [vmem:[#allocation8 + $0x4b0] ss:$12 sps:$4 sm:$0xff]   ;;  %v6531_v41 = vld [vmem:[#allocation8 + $0x4b8] ss:$12 sps:$4 sm:$0xff]  }
 0x26a   : > { %2246 = vmatprep.subr.bf16.mxu0 %v6474_v42  ;;  %5881 = vmatprep.subr.bf16.mxu1 %v6475_v43  ;;  %v6534_v42 = vld [vmem:[#allocation8 + $0x49c] ss:$12 sps:$4 sm:$0xff]   ;;  %v6535_v43 = vld [vmem:[#allocation8 + $0x560] ss:$12 sps:$4 sm:$0xff]  }
 0x271   : > { %2247 = vmatpush2.bf16.xpose.msra.mxu0 %v6472_v44  ;;  %5882 = vmatpush3.bf16.xpose.msra.mxu1 %v6476_v45  ;;  %v6532_v44 = vld [vmem:[#allocation8 + $0x498] ss:$12 sps:$4 sm:$0xff]   ;;  %v6536_v45 = vld [vmem:[#allocation8 + $0x4a0] ss:$12 sps:$4 sm:$0xff]  }
 0x272   : > { %2248 = vmatprep.subr.bf16.mxu0 %v6479_v46  ;;  %5883 = vmatprep.subr.bf16.mxu1 %v6480_v47  ;;  %v6539_v46 = vld [vmem:[#allocation8 + $0x484] ss:$12 sps:$4 sm:$0xff]   ;;  %v6540_v47 = vld [vmem:[#allocation8 + $0x548] ss:$12 sps:$4 sm:$0xff]  }
 0x279   : > { %2249 = vmatpush2.bf16.xpose.msra.mxu0 %v6477_v48  ;;  %5884 = vmatpush3.bf16.xpose.msra.mxu1 %v6481_v49  ;;  %v6537_v48 = vld [vmem:[#allocation8 + $0x480] ss:$12 sps:$4 sm:$0xff]   ;;  %v6541_v49 = vld [vmem:[#allocation8 + $0x488] ss:$12 sps:$4 sm:$0xff]  }
 0x27a   : > { %2250 = vmatprep.subr.bf16.mxu0 %v6484_v50  ;;  %5885 = vmatprep.subr.bf16.mxu1 %v6485_v51  ;;  %v6544_v50 = vld [vmem:[#allocation8 + $0x5ec] ss:$12 sps:$4 sm:$0xff]  }
 0x27b   : > { %v6547_v51 = vld [vmem:[#allocation8 + $0x6ac] ss:$12 sps:$4 sm:$0xff]  }
 0x281   : > { %2251 = vmatpush2.bf16.xpose.msra.mxu0 %v6482_v52  ;;  %5886 = vmatpush3.bf16.xpose.msra.mxu1 %v6486_v53  ;;  %v6542_v52 = vld [vmem:[#allocation8 + $0x5e8] ss:$12 sps:$4 sm:$0xff]  }
 0x282   : > { %2252 = vmatprep.subr.bf16.mxu0 %v6489_v54  ;;  %5887 = vmatprep.subr.bf16.mxu1 %v6490_v55  ;;  %v6545_v53 = vld [vmem:[#allocation8 + $0x6a8] ss:$12 sps:$4 sm:$0xff]  }
 0x283   : > { %v6550_v54 = vld [vmem:[#allocation8 + $0x5d4] ss:$12 sps:$4 sm:$0xff]  }
 0x284   : > { %v6553_v55 = vld [vmem:[#allocation8 + $0x694] ss:$12 sps:$4 sm:$0xff]  }
 0x289   : > { %2253 = vmatpush2.bf16.xpose.msra.mxu0 %v6487_v56  ;;  %5888 = vmatpush3.bf16.xpose.msra.mxu1 %v6491_v57 }
 0x28a   : > { %2254 = vmatprep.subr.bf16.mxu0 %v6494_v58  ;;  %5889 = vmatprep.subr.bf16.mxu1 %v6495_v59  ;;  %v6548_v59 = vld [vmem:[#allocation8 + $0x5d0] ss:$12 sps:$4 sm:$0xff]  }
 0x291   : > { %2255 = vmatpush2.bf16.xpose.msra.mxu0 %v6492_v60  ;;  %5890 = vmatpush3.bf16.xpose.msra.mxu1 %v6496_v61  ;;  %v6551_v61 = vld [vmem:[#allocation8 + $0x690] ss:$12 sps:$4 sm:$0xff]  }
 0x292   : > { %2256 = vmatprep.subr.bf16.mxu0 %v6499_v62  ;;  %5891 = vmatprep.subr.bf16.mxu1 %v6500_v63  ;;  %v6556_v62 = vld [vmem:[#allocation8 + $0x5bc] ss:$12 sps:$4 sm:$0xff]  }
 0x293   : > { %v6559_v63 = vld [vmem:[#allocation8 + $0x67c] ss:$12 sps:$4 sm:$0xff]  }
 0x299   : > { %2257 = vmatpush2.bf16.xpose.msra.mxu0 %v6497_v0  ;;  %5892 = vmatpush3.bf16.xpose.msra.mxu1 %v6501_v1  ;;  %v6554_v0 = vld [vmem:[#allocation8 + $0x5b8] ss:$12 sps:$4 sm:$0xff]  }
 0x29a   : > { %2308 = vmatprep.subr.bf16.mxu1 %v6504_v2  ;;  %5895 = vmatprep.subr.bf16.mxu0 %v6505_v3  ;;  %v6557_v1 = vld [vmem:[#allocation8 + $0x678] ss:$12 sps:$4 sm:$0xff]  }
 0x29b   : > { %v6562_v2 = vld [vmem:[#allocation8 + $0x5a4] ss:$12 sps:$4 sm:$0xff]  }
 0x29c   : > { %v6565_v3 = vld [vmem:[#allocation8 + $0x664] ss:$12 sps:$4 sm:$0xff]  }
 0x2a0   : > { %2259 = vmatmul.mubr.bf16.vlgmr.msra.gmra.mxu0 %v7532_v30  ;;  %5894 = vmatmul.mubr.bf16.vlgmr.msra.gmra.mxu1 %v7530_v28  ;;  %v2096_v11 = vpop.f32.mrf.mxu0  ;;  %v2137_v12 = vpop.f32.mrf.mxu1 }
 0x2a1   : > { %v7546_v13 = vadd.f32 %v2137_v12, %v2096_v11  ;;  %2309 = vmatpush1.bf16.xpose.msra.mxu1 %v6502_v4  ;;  %2340 = vmatprep.mubr.bf16.mxu1 %v7528_v27  ;;  %v6563_v4 = vld [vmem:[#allocation8 + $0x660] ss:$12 sps:$4 sm:$0xff]   ;;  %v6569_v11 = vld [vmem:[#allocation8 + $0x648] ss:$12 sps:$4 sm:$0xff]  }
 0x2a2   : > { %5896 = vmatpush3.bf16.xpose.msra.mxu0 %v6506_v5  ;;  %5911 = vmatprep.mubr.bf16.mxu0 %v7530_v28  ;;  %v2098_v14 = vpop.f32.mrf.mxu0  ;;  %v2139_v15 = vpop.f32.mrf.mxu1  ;;  %v6568_v5 = vld [vmem:[#allocation8 + $0x58c] ss:$12 sps:$4 sm:$0xff]   ;;  %v6574_v12 = vld [vmem:[#allocation8 + $0x574] ss:$12 sps:$4 sm:$0xff]  }
 0x2a3   : > { %v7550_v16 = vadd.f32 %v2139_v15, %v2098_v14  ;;  %2310 = vmatprep.subr.bf16.mxu1 %v6509_v9  ;;  %5897 = vmatprep.subr.bf16.mxu0 %v6510_v10  ;;  %v6571_v9 = vld [vmem:[#allocation8 + $0x64c] ss:$12 sps:$4 sm:$0xff]   ;;  %v6566_v10 = vld [vmem:[#allocation8 + $0x588] ss:$12 sps:$4 sm:$0xff]   ;;  %v6572_v15 = vld [vmem:[#allocation8 + $0x570] ss:$12 sps:$4 sm:$0xff]  }
 0x2a4   : > { %v2100_v17 = vpop.f32.mrf.mxu0  ;;  %v2141_v18 = vpop.f32.mrf.mxu1  ;;  %v6577_v14 = vld [vmem:[#allocation8 + $0x634] ss:$12 sps:$4 sm:$0xff]  }
 0x2a5   : > { %v6575_v17 = vld [vmem:[#allocation8 + $0x630] ss:$12 sps:$4 sm:$0xff]  }
 0x2a6   : > { %v2101_v20 = vpop.f32.mrf.mxu0  ;;  %v2142_v21 = vpop.f32.mrf.mxu1  ;;  %v6580_v18 = vld [vmem:[#allocation8 + $0x55c] ss:$12 sps:$4 sm:$0xff]  }
 0x2a7   : > { %v6578_v20 = vld [vmem:[#allocation8 + $0x558] ss:$12 sps:$4 sm:$0xff]  }
 0x2a8   : > { %v6581_v21 = vld [vmem:[#allocation8 + $0x618] ss:$12 sps:$4 sm:$0xff]  }
 0x2a9   : > { %2311 = vmatpush1.bf16.xpose.msra.mxu1 %v6507_v19  ;;  %v6583_v19 = vld [vmem:[#allocation8 + $0x61c] ss:$12 sps:$4 sm:$0xff]  }
 0x2aa   : > { %5898 = vmatpush3.bf16.xpose.msra.mxu0 %v6511_v22  ;;  %2312 = vmatprep.subr.bf16.mxu1 %v6514_v23  ;;  %v6586_v22 = vld [vmem:[#allocation8 + $0x544] ss:$12 sps:$4 sm:$0xff]  }
 0x2ab   : > { %5899 = vmatprep.subr.bf16.mxu0 %v6515_v24  ;;  %v6589_v23 = vld [vmem:[#allocation8 + $0x604] ss:$12 sps:$4 sm:$0xff]   ;;  %v6584_v24 = vld [vmem:[#allocation8 + $0x540] ss:$12 sps:$4 sm:$0xff]  }
 0x2b1   : > { %2313 = vmatpush1.bf16.xpose.msra.mxu1 %v6512_v25  ;;  %v6587_v25 = vld [vmem:[#allocation8 + $0x600] ss:$12 sps:$4 sm:$0xff]  }
 0x2b2   : > { %5900 = vmatpush3.bf16.xpose.msra.mxu0 %v6516_v26  ;;  %2314 = vmatprep.subr.bf16.mxu1 %v6519_v29  ;;  %v7219_v26 = vmov 0.0   ;;  %v6590_v29 = vld [vmem:[#allocation8 + $0x6b0] ss:$12 sps:$4 sm:$0xff]  }
 0x2b3   : > { %5901 = vmatprep.subr.bf16.mxu0 %v6520_v31 }
 0x2b9   : > { %2315 = vmatpush1.bf16.xpose.msra.mxu1 %v6517_v32 }
 0x2ba   : > { %5902 = vmatpush3.bf16.xpose.msra.mxu0 %v6521_v33  ;;  %2316 = vmatprep.subr.bf16.mxu1 %v6524_v34 }
 0x2bb   : > { %5903 = vmatprep.subr.bf16.mxu0 %v6525_v35 }
 0x2c1   : > { %2317 = vmatpush1.bf16.xpose.msra.mxu1 %v6522_v36 }
 0x2c2   : > { %5904 = vmatpush3.bf16.xpose.msra.mxu0 %v6526_v37  ;;  %2318 = vmatprep.subr.bf16.mxu1 %v6529_v38  ;;  %v6591_v37 = vld [vmem:[#allocation8 + $0x698] ss:$12 sps:$4 sm:$0xff]  }
 0x2c3   : > { %5905 = vmatprep.subr.bf16.mxu0 %v6530_v39  ;;  %v6593_v39 = vld [vmem:[#allocation8 + $0x668] ss:$12 sps:$4 sm:$0xff]  }
 0x2c9   : > { %2319 = vmatpush1.bf16.xpose.msra.mxu1 %v6527_v40  ;;  %v6594_v40 = vld [vmem:[#allocation8 + $0x650] ss:$12 sps:$4 sm:$0xff]  }
 0x2ca   : > { %5906 = vmatpush3.bf16.xpose.msra.mxu0 %v6531_v41  ;;  %2320 = vmatprep.subr.bf16.mxu1 %v6534_v42  ;;  %v6595_v41 = vld [vmem:[#allocation8 + $0x638] ss:$12 sps:$4 sm:$0xff]   ;;  %v6596_v42 = vld [vmem:[#allocation8 + $0x620] ss:$12 sps:$4 sm:$0xff]  }
 0x2cb   : > { %5907 = vmatprep.subr.bf16.mxu0 %v6535_v43  ;;  %v6597_v43 = vld [vmem:[#allocation8 + $0x608] ss:$12 sps:$4 sm:$0xff]  }
 0x2d1   : > { %2321 = vmatpush1.bf16.xpose.msra.mxu1 %v6532_v44 }
 0x2d2   : > { %5908 = vmatpush3.bf16.xpose.msra.mxu0 %v6536_v45  ;;  %2322 = vmatprep.subr.bf16.mxu1 %v6539_v46 }
 0x2d3   : > { %5909 = vmatprep.subr.bf16.mxu0 %v6540_v47 }
 0x2d9   : > { %2323 = vmatpush1.bf16.xpose.msra.mxu1 %v6537_v48 }
 0x2da   : > { %5910 = vmatpush3.bf16.xpose.msra.mxu0 %v6541_v49  ;;  %2324 = vmatprep.subr.bf16.mxu1 %v6544_v50 }
 0x2db   : > { %2390 = vmatprep.subr.bf16.mxu0 %v6547_v51 }
 0x2e0   : > { %v7552_v56 = vpop.f32.mrf.mxu0 }
 0x2e1   : > { %5912 = vmatmul.mubr.bf16.vlgmr.msra.gmra.mxu0 %v7530_v28  ;;  %2325 = vmatpush2.bf16.xpose.msra.mxu1 %v6542_v52 }
 0x2e2   : > { %2391 = vmatpush1.bf16.xpose.msra.mxu0 %v6545_v53  ;;  %2422 = vmatprep.mubr.bf16.mxu0 %v7528_v27  ;;  %v7556_v57 = vpop.f32.mrf.mxu0  ;;  %v6560_v27 = vld [vmem:[#allocation8 + $0x5a0] ss:$12 sps:$4 sm:$0xff]  }
 0x2e3   : > { %2326 = vmatprep.subr.bf16.mxu1 %v6550_v54  ;;  %2392 = vmatprep.subr.bf16.mxu0 %v6553_v55  ;;  %v2470_v54 = vpack.c.bf16 %v7546_v13, %v7546_v13 }
 0x2e4   : > { %v2223_v58 = vpop.f32.mrf.mxu0 }
 0x2e6   : > { %v2224_v60 = vpop.f32.mrf.mxu0 }
 0x2e9   : > { %2327 = vmatpush2.bf16.xpose.msra.mxu1 %v6548_v59 }
 0x2ea   : > { %2393 = vmatpush1.bf16.xpose.msra.mxu0 %v6551_v61  ;;  %2328 = vmatprep.subr.bf16.mxu1 %v6556_v62 }
 0x2eb   : > { %2394 = vmatprep.subr.bf16.mxu0 %v6559_v63 }
 0x2f1   : > { %2329 = vmatpush2.bf16.xpose.msra.mxu1 %v6554_v0 }
 0x2f2   : > { %2395 = vmatpush1.bf16.xpose.msra.mxu0 %v6557_v1  ;;  %2330 = vmatprep.subr.bf16.mxu1 %v6562_v2 }
 0x2f3   : > { %2396 = vmatprep.subr.bf16.mxu0 %v6565_v3 }
 0x2f9   : > { %2331 = vmatpush2.bf16.xpose.msra.mxu1 %v6560_v27 }
 0x2fa   : > { %2397 = vmatpush1.bf16.xpose.msra.mxu0 %v6563_v4  ;;  %2332 = vmatprep.subr.bf16.mxu1 %v6568_v5 }
 0x2fb   : > { %2398 = vmatprep.subr.bf16.mxu0 %v6571_v9 }
 0x301   : > { %2333 = vmatpush2.bf16.xpose.msra.mxu1 %v6566_v10 }
 0x302   : > { %2399 = vmatpush1.bf16.xpose.msra.mxu0 %v6569_v11  ;;  %2334 = vmatprep.subr.bf16.mxu1 %v6574_v12 }
 0x303   : > { %2400 = vmatprep.subr.bf16.mxu0 %v6577_v14 }
 0x309   : > { %2335 = vmatpush2.bf16.xpose.msra.mxu1 %v6572_v15 }
 0x30a   : > { %2401 = vmatpush1.bf16.xpose.msra.mxu0 %v6575_v17  ;;  %2336 = vmatprep.subr.bf16.mxu1 %v6580_v18 }
 0x30b   : > { %2402 = vmatprep.subr.bf16.mxu0 %v6583_v19  ;;  %v7612_v19 = vld [vmem:[%s7848_s6] sm:$0xff] }
 0x311   : > { %2337 = vmatpush2.bf16.xpose.msra.mxu1 %v6578_v20 }
 0x312   : > { %2403 = vmatpush1.bf16.xpose.msra.mxu0 %v6581_v21  ;;  %2338 = vmatprep.subr.bf16.mxu1 %v6586_v22 }
 0x313   : > { %2404 = vmatprep.subr.bf16.mxu0 %v6589_v23 }
 0x319   : > { %2339 = vmatpush2.bf16.xpose.msra.mxu1 %v6584_v24 }
 0x31a   : > { %2405 = vmatpush1.bf16.xpose.msra.mxu0 %v6587_v25  ;;  %6027 = vmatprep.subr.bf16.mxu1 %v7219_v26 }
 0x31b   : > { %6095 = vmatprep.subr.bf16.mxu0 %v7219_v26 }
 0x320   : > { %v2178_v31 = vpop.f32.mrf.mxu1  ;;  %2341 = vmatmul.mubr.bf16.vlgmr.msra.gmra.mxu1 %v7532_v30 }
 0x321   : > { %v2220_v32 = vadd.f32 %v7552_v56, %v2178_v31  ;;  %2423 = vmatmul.mubr.bf16.vlgmr.msra.gmra.mxu0 %v7532_v30  ;;  %6028 = vmatpush3.bf16.xpose.msra.mxu1 %v6590_v29  ;;  %v6592_v30 = vld [vmem:[#allocation8 + $0x680] ss:$12 sps:$4 sm:$0xff]  }
 0x322   : > { %v2180_v33 = vpop.f32.mrf.mxu1  ;;  %6029 = vmatprep.subr.bf16.mxu1 %v7219_v26  ;;  %6043 = vmatprep.mubr.msk.bf16.mxu1 %vm7220_vm0, %v7219_v26 }
 0x323   : > { %v2222_v34 = vadd.f32 %v7556_v57, %v2180_v33  ;;  %6097 = vmatprep.mubr.msk.bf16.mxu0 %vm7220_vm0, %v7219_v26  ;;  %v7594_v57 = vpack.c.bf16 %v2220_v32, %v2220_v32 }
 0x324   : > { %v2182_v35 = vpop.f32.mrf.mxu1 }
 0x325   : > { %v2473_v36 = vpack.c.bf16 %v2222_v34, %v2222_v34 }
 0x326   : > { %v2183_v38 = vpop.f32.mrf.mxu1 }
 0x327   : > { %2593 = vrot.lane.b32.xlu0 %v2473_v36, %s7221_s3  ;;  %v2485_v44 = vsel %vm2480_vm1, %v2473_v36, 0 }
 0x329   : > { %6030 = vmatpush3.bf16.xpose.msra.mxu1 %v6591_v37 }
 0x32a   : > { %6031 = vmatprep.subr.bf16.mxu1 %v7219_v26 }
 0x331   : > { %6032 = vmatpush3.bf16.xpose.msra.mxu1 %v6592_v30 }
 0x332   : > { %6033 = vmatprep.subr.bf16.mxu1 %v7219_v26 }
 0x339   : > { %6034 = vmatpush3.bf16.xpose.msra.mxu1 %v6593_v39 }
 0x33a   : > { %6035 = vmatprep.subr.bf16.mxu1 %v7219_v26 }
 0x341   : > { %6036 = vmatpush3.bf16.xpose.msra.mxu1 %v6594_v40 }
 0x342   : > { %6037 = vmatprep.subr.bf16.mxu1 %v7219_v26 }
 0x349   : > { %6038 = vmatpush3.bf16.xpose.msra.mxu1 %v6595_v41 }
 0x34a   : > { %6039 = vmatprep.subr.bf16.mxu1 %v7219_v26 }
 0x351   : > { %6040 = vmatpush3.bf16.xpose.msra.mxu1 %v6596_v42 }
 0x352   : > { %6041 = vmatprep.subr.bf16.mxu1 %v7219_v26 }
 0x359   : > { %6042 = vmatpush3.bf16.xpose.msra.mxu1 %v6597_v43 }
 0x35a   : > { %6047 = vmatprep.subr.bf16.mxu1 %v7219_v26 }
 0x360   : > { %v2260_v45 = vpop.f32.mrf.mxu0  ;;  %v2301_v46 = vpop.f32.mrf.mxu1  ;;  %6044 = vmatmul.mubr.bf16.vlgmr.msra.gmra.mxu1 %v7530_v28 }
 0x361   : > { %v7579_v47 = vadd.f32 %v2301_v46, %v2260_v45  ;;  %6048 = vmatpush3.bf16.xpose.msra.mxu1 %v2485_v44  ;;  %6049 = vmatprep.mubr.msk.bf16.mxu1 %vm7220_vm0, %v7219_v26 }
 0x362   : > { %v2262_v48 = vpop.f32.mrf.mxu0  ;;  %v2303_v49 = vpop.f32.mrf.mxu1  ;;  %6053 = vmatprep.subr.bf16.mxu1 %v7219_v26 }
 0x363   : > { %v2304_v50 = vadd.f32 %v2303_v49, %v2262_v48 }
 0x364   : > { %v2264_v51 = vpop.f32.mrf.mxu0  ;;  %v2305_v52 = vpop.f32.mrf.mxu1 }
 0x365   : > { %v7584_v53 = vpack.c.bf16 %v2304_v50, %v2304_v50 }
 0x366   : > { %v2265_v55 = vpop.f32.mrf.mxu0  ;;  %v2306_v28 = vpop.f32.mrf.mxu1 }
 0x367   : > { %v2929_v56 = vsel %vm2480_vm1, %v7584_v53, 0 }
 0x368   : > { %6050 = vmatmul.mubr.msk.bf16.vlgmr.msra.gmra.mxu1 %vm2480_vm1, %v2470_v54  ;;  %6096 = vmatpush3.bf16.xpose.msra.mxu0 %v2929_v56 }
 0x369   : > { %6055 = vmatprep.mubr.msk.bf16.mxu1 %vm7220_vm0, %v7219_v26  ;;  %6107 = vmatprep.subr.bf16.mxu0 %v7219_v26 }
 0x36f   : > { %6098 = vmatmul.mubr.msk.bf16.vlgmr.msra.gmra.mxu0 %vm2480_vm1, %v7594_v57 }
 0x370   : > { %6109 = vmatprep.mubr.msk.bf16.mxu0 %vm7220_vm0, %v7219_v26 }
 0x399   : > { %v2594_v41 = vpop.permute.xlu0 %2593 }
 0x39a   : > { %v2599_v43 = vsel %vm2480_vm1, %v2594_v41, 0 }
 0x3a1   : > { %v2383_v13 = vpop.f32.mrf.mxu0 }
 0x3a3   : > { %v2385_v58 = vpop.f32.mrf.mxu0 }
 0x3a5   : > { %v2387_v59 = vpop.f32.mrf.mxu0 }
 0x3a7   : > { %v2388_v60 = vpop.f32.mrf.mxu0 }
 0x3e0   : > { %v2342_v61 = vpop.f32.mrf.mxu1 }
 0x3e1   : > { %v2384_v62 = vadd.f32 %v2383_v13, %v2342_v61  ;;  %v2424_v63 = vpop.f32.mrf.mxu0 }
 0x3e2   : > { %v2344_v0 = vpop.f32.mrf.mxu1 }
 0x3e3   : > { %v7600_v1 = vpack.c.bf16 %v2384_v62, %v2384_v62  ;;  %v7602_v2 = vadd.f32 %v2385_v58, %v2344_v0  ;;  %v2426_v3 = vpop.f32.mrf.mxu0  ;;  %v2471_v62 = vpack.c.bf16 %v7550_v16, %v7550_v16 }
 0x3e4   : > { %v2346_v27 = vpop.f32.mrf.mxu1 }
 0x3e5   : > { %v2547_v4 = vsel %vm2545_vm2, %v7600_v1, 0  ;;  %v2427_v5 = vpop.f32.mrf.mxu0 }
 0x3e6   : > { %v2347_v9 = vpop.f32.mrf.mxu1  ;;  %6054 = vmatpush3.bf16.msra.mxu1 %v2547_v4 }
 0x3e7   : > { %v2428_v10 = vpop.f32.mrf.mxu0  ;;  %6059 = vmatprep.subr.bf16.mxu1 %v7219_v26 }
 0x420   : > { %v2464_v11 = vpop.f32.mrf.mxu1 }
 0x421   : > { %v7607_v12 = vadd.f32 %v2464_v11, %v2424_v63  ;;  %v7654_v11 = vpack.c.bf16 %v7602_v2, %v7602_v2 }
 0x422   : > { %v6045_v14 = vpop.f32.mrf.mxu1 }
 0x423   : > { %v2768_v14 = vsel %vm2545_vm2, %v7654_v11, 0 }
 0x424   : > { %v2467_v15 = vpop.f32.mrf.mxu1 }
 0x426   : > { %v6046_v17 = vpop.f32.mrf.mxu1 }
 0x428   : > { %v2521_v18 = vpop.f32.mrf.mxu1 }
 0x429   : > { %v2527_v20 = vmul.f32 0.05103104, %v2521_v18 }
 0x42a   : > { %v6051_v21 = vpop.f32.mrf.mxu1 }
 0x42b   : > { %v2528_v22 = vadd.f32 %v2527_v20, %v7612_v19 }
 0x42c   : > { %v2524_v23 = vpop.f32.mrf.mxu1 }
 0x42d   : > { %v2530_v24 = vsel %vm2529_vm3, %v2528_v22, -inf }
 0x42e   : > { %2531 = vmax.xlane.f32.xlu1 %v2530_v24  ;;  %v6052_v25 = vpop.f32.mrf.mxu1 }
 0x42f   : > { %v2965_v29 = vpop.f32.mrf.mxu0 }
 0x430   : > { %v2971_v63 = vmul.f32 0.05103104, %v2965_v29 }
 0x431   : > { %v6099_v31 = vpop.f32.mrf.mxu0 }
 0x432   : > { %v7639_v0 = vadd.f32 %v2971_v63, %v7612_v19 }
 0x433   : > { %v2968_v32 = vpop.f32.mrf.mxu0 }
 0x434   : > { %v2973_v3 = vsel %vm2529_vm3, %v7639_v0, -inf }
 0x435   : > { %v6100_v33 = vpop.f32.mrf.mxu0 }
 0x4b7   : > { %v2532_v34 = vpop.xlane.xlu1 %2531 }
 0x4b8   : > { %v2533_v35 = vsub.f32 %v2528_v22, %v2532_v34 }
 0x4ba   : > { %v2534_v36 = vmul.f32 1.442695, %v2533_v35 }
 0x4bc   : > { %6888 = vpow2.f32 %v2534_v36 }
 0x4c9   : > { %v6889_v37 = vpop.eup %6888 }
 0x4ca   : > { %v2536_v38 = vsel %vm2529_vm3, %v6889_v37, 0.0 }
 0x4cb   : > { %2537 = vadd.xlane.f32.xlu1 %v2536_v38 }
 0x4dc   : > { %2590 = vrot.lane.b32.xlu1 %v2470_v54, %s7221_s3 }
 0x554   : > { %v2538_v30 = vpop.xlane.xlu1 %2537 }
 0x555   : > { %6890 = vrcp.f32 %v2538_v30 }
 0x558   : > { %v2591_v44 = vpop.permute.xlu1 %2590 }
 0x562   : > { %v6891_v39 = vpop.eup %6890 }
 0x563   : > { %v2540_v40 = vmul.f32 %v6891_v39, %v6889_v37 }
 0x565   : > { %v2541_v42 = vpack.c.bf16 %v2540_v40, %v2540_v40 }
 0x567   : > { %6056 = vmatmul.mubr.msk.bf16.vlgmr.msra.gmra.mxu1 %vm2529_vm3, %v2541_v42 }
 0x568   : > { %6060 = vmatpush3.bf16.xpose.msra.mxu1 %v2599_v43  ;;  %6061 = vmatprep.mubr.msk.bf16.mxu1 %vm7220_vm0, %v7219_v26 }
 0x569   : > { %6065 = vmatprep.subr.bf16.mxu1 %v7219_v26 }
 0x56f   : > { %6062 = vmatmul.mubr.msk.bf16.vlgmr.msra.gmra.mxu1 %vm2480_vm1, %v2591_v44 }
 0x570   : > { %6067 = vmatprep.mubr.msk.bf16.mxu1 %vm7220_vm0, %v7219_v26 }
 0x627   : > { %v7626_v45 = vpop.f32.mrf.mxu1 }
 0x629   : > { %v6057_v46 = vpop.f32.mrf.mxu1 }
 0x62b   : > { %v2586_v48 = vpop.f32.mrf.mxu1 }
 0x62d   : > { %v6058_v49 = vpop.f32.mrf.mxu1 }
 0x62f   : > { %v2635_v50 = vpop.f32.mrf.mxu1 }
 0x630   : > { %v2641_v51 = vmul.f32 0.05103104, %v2635_v50 }
 0x631   : > { %v6063_v52 = vpop.f32.mrf.mxu1 }
 0x632   : > { %v2642_v54 = vadd.f32 %v2641_v51, %v7612_v19 }
 0x633   : > { %v2638_v55 = vpop.f32.mrf.mxu1 }
 0x634   : > { %v2643_v28 = vsel %vm2529_vm3, %v2642_v54, -inf }
 0x635   : > { %2644 = vmax.xlane.f32.xlu1 %v2643_v28  ;;  %v6064_v56 = vpop.f32.mrf.mxu1 }
 0x6be   : > { %v2645_v13 = vpop.xlane.xlu1 %2644 }
 0x6bf   : > { %v2646_v58 = vsub.f32 %v2642_v54, %v2645_v13 }
 0x6c1   : > { %v2647_v59 = vmul.f32 1.442695, %v2646_v58 }
 0x6c3   : > { %6892 = vpow2.f32 %v2647_v59 }
 0x6d0   : > { %v6893_v60 = vpop.eup %6892 }
 0x6d1   : > { %v2649_v61 = vsel %vm2529_vm3, %v6893_v60, 0.0 }
 0x6d2   : > { %2650 = vadd.xlane.f32.xlu0 %v2649_v61 }
 0x6e8   : > { %2656 = vrot.lane.b32.xlu0 %v7600_v1, %s7221_s3 }
 0x6ec   : > { %2811 = vrot.lane.b32.xlu0 %v2471_v62, %s7221_s3 }
 0x6f0   : > { %3032 = vrot.lane.b32.xlu0 %v7594_v57, %s7221_s3  ;;  %v2474_v57 = vpack.c.bf16 %v7579_v47, %v7579_v47 }
 0x6f2   : > { %v2708_v10 = vsel %vm2480_vm1, %v2474_v57, 0 }
 0x70f   : > { %2974 = vmax.xlane.f32.xlu0 %v2973_v3 }
 0x75b   : > { %v2651_v27 = vpop.xlane.xlu0 %2650 }
 0x75c   : > { %6894 = vrcp.f32 %v2651_v27 }
 0x75f   : > { %v2657_v4 = vpop.permute.xlu0 %2656 }
 0x760   : > { %v2662_v1 = vsel %vm2545_vm2, %v2657_v4, 0 }
 0x761   : > { %6066 = vmatpush3.bf16.msra.mxu1 %v2662_v1 }
 0x762   : > { %6071 = vmatprep.subr.bf16.mxu1 %v7219_v26 }
 0x763   : > { %v2812_v30 = vpop.permute.xlu0 %2811 }
 0x767   : > { %v3033_v41 = vpop.permute.xlu0 %3032 }
 0x769   : > { %v6895_v16 = vpop.eup %6894 }
 0x76a   : > { %v2653_v5 = vmul.f32 %v6895_v16, %v6893_v60 }
 0x76c   : > { %v2654_v9 = vpack.c.bf16 %v2653_v5, %v2653_v5 }
 0x76e   : > { %6068 = vmatmul.mubr.msk.bf16.vlgmr.msra.gmra.mxu1 %vm2529_vm3, %v2654_v9 }
 0x76f   : > { %6072 = vmatpush3.bf16.xpose.msra.mxu1 %v2708_v10  ;;  %6073 = vmatprep.mubr.msk.bf16.mxu1 %vm7220_vm0, %v7219_v26 }
 0x770   : > { %6077 = vmatprep.subr.bf16.mxu1 %v7219_v26 }
 0x776   : > { %6074 = vmatmul.mubr.msk.bf16.vlgmr.msra.gmra.mxu1 %vm2480_vm1, %v2471_v62 }
 0x777   : > { %6078 = vmatpush3.bf16.msra.mxu1 %v2768_v14  ;;  %6079 = vmatprep.mubr.msk.bf16.mxu1 %vm7220_vm0, %v7219_v26 }
 0x778   : > { %6083 = vmatprep.subr.bf16.mxu1 %v7219_v26 }
 0x82e   : > { %v7662_v47 = vpop.f32.mrf.mxu1 }
 0x830   : > { %v6069_v15 = vpop.f32.mrf.mxu1 }
 0x832   : > { %v2701_v17 = vpop.f32.mrf.mxu1 }
 0x834   : > { %v6070_v18 = vpop.f32.mrf.mxu1 }
 0x836   : > { %v2744_v20 = vpop.f32.mrf.mxu1 }
 0x837   : > { %v2750_v21 = vmul.f32 0.05103104, %v2744_v20 }
 0x838   : > { %v6075_v2 = vpop.f32.mrf.mxu1 }
 0x839   : > { %v2751_v22 = vadd.f32 %v2750_v21, %v7612_v19  ;;  %v2478_v21 = vpack.c.bf16 %v7607_v12, %v7607_v12 }
 0x83a   : > { %v2747_v23 = vpop.f32.mrf.mxu1 }
 0x83b   : > { %v2752_v24 = vsel %vm2529_vm3, %v2751_v22, -inf }
 0x83c   : > { %2753 = vmax.xlane.f32.xlu1 %v2752_v24  ;;  %v6076_v25 = vpop.f32.mrf.mxu1 }
 0x8c5   : > { %v2754_v29 = vpop.xlane.xlu1 %2753 }
 0x8c6   : > { %v2755_v31 = vsub.f32 %v2751_v22, %v2754_v29 }
 0x8c8   : > { %v2756_v32 = vmul.f32 1.442695, %v2755_v31  ;;  %v2989_v31 = vsel %vm2545_vm2, %v2478_v21, 0 }
 0x8ca   : > { %6896 = vpow2.f32 %v2756_v32 }
 0x8d7   : > { %v6897_v33 = vpop.eup %6896 }
 0x8d8   : > { %v2758_v34 = vsel %vm2529_vm3, %v6897_v33, 0.0 }
 0x8d9   : > { %2759 = vadd.xlane.f32.xlu1 %v2758_v34 }
 0x8ea   : > { %2814 = vrot.lane.b32.xlu1 %v2474_v57, %s7221_s3 }
 0x8ee   : > { %3035 = vrot.lane.b32.xlu1 %v7584_v53, %s7221_s3  ;;  %v2975_v53 = vpop.xlane.xlu0 %2974 }
 0x8ef   : > { %v2976_v44 = vsub.f32 %v7639_v0, %v2975_v53  ;;  %v6622_v53 = vld [vmem:[#allocation10 + $0x170] ss:$12 sps:$4 sm:$0xff]  }
 0x8f1   : > { %v2977_v46 = vmul.f32 1.442695, %v2976_v44  ;;  %v6626_v44 = vld [vmem:[#allocation10 + $0xb0] ss:$12 sps:$4 sm:$0xff]  }
 0x962   : > { %v2760_v35 = vpop.xlane.xlu1 %2759 }
 0x963   : > { %6898 = vrcp.f32 %v2760_v35 }
 0x964   : > { %6900 = vpow2.f32 %v2977_v46  ;;  %v6627_v46 = vld [vmem:[#allocation10 + $0x158] ss:$12 sps:$4 sm:$0xff]  }
 0x966   : > { %v2815_v36 = vpop.permute.xlu1 %2814 }
 0x967   : > { %v2820_v43 = vsel %vm2480_vm1, %v2815_v36, 0 }
 0x96a   : > { %v3036_v37 = vpop.permute.xlu1 %3035 }
 0x96b   : > { %v3041_v38 = vsel %vm2480_vm1, %v3036_v37, 0 }
 0x96c   : > { %6108 = vmatpush3.bf16.xpose.msra.mxu0 %v3041_v38  ;;  %v6600_v38 = vld [vmem:[#allocation10 + $0xac] ss:$12 sps:$4 sm:$0xff]  }
 0x96d   : > { %3644 = vmatprep.subr.bf16.mxu0 %v6600_v38 }
 0x970   : > { %v6899_v39 = vpop.eup %6898 }
 0x971   : > { %v2762_v40 = vmul.f32 %v6899_v39, %v6897_v33  ;;  %v6901_v3 = vpop.eup %6900  ;;  %v6603_v39 = vld [vmem:[#allocation10 + $0x94] ss:$12 sps:$4 sm:$0xff]  }
 0x972   : > { %v2979_v4 = vsel %vm2529_vm3, %v6901_v3, 0.0 }
 0x973   : > { %6110 = vmatmul.mubr.msk.bf16.vlgmr.msra.gmra.mxu0 %vm2480_vm1, %v3033_v41  ;;  %v2763_v42 = vpack.c.bf16 %v2762_v40, %v2762_v40  ;;  %v6601_v40 = vld [vmem:[#allocation10 + $0x90] ss:$12 sps:$4 sm:$0xff]  }
 0x974   : > { %v6606_v41 = vld [vmem:[#allocation10 + $0x7c] ss:$12 sps:$4 sm:$0xff]  }
 0x975   : > { %6080 = vmatmul.mubr.msk.bf16.vlgmr.msra.gmra.mxu1 %vm2529_vm3, %v2763_v42  ;;  %v6604_v42 = vld [vmem:[#allocation10 + $0x78] ss:$12 sps:$4 sm:$0xff]  }
 0x976   : > { %6084 = vmatpush3.bf16.xpose.msra.mxu1 %v2820_v43  ;;  %6085 = vmatprep.mubr.msk.bf16.mxu1 %vm7220_vm0, %v7219_v26  ;;  %v6609_v43 = vld [vmem:[#allocation10 + $0x64] ss:$12 sps:$4 sm:$0xff]  }
 0x977   : > { %6089 = vmatprep.subr.bf16.mxu1 %v7219_v26 }
 0x97d   : > { %6086 = vmatmul.mubr.msk.bf16.vlgmr.msra.gmra.mxu1 %vm2480_vm1, %v2812_v30  ;;  %v6598_v30 = vld [vmem:[#allocation10 + $0xa8] ss:$12 sps:$4 sm:$0xff]  }
 0x97e   : > { %6091 = vmatprep.mubr.msk.bf16.mxu1 %vm7220_vm0, %v7219_v26  ;;  %3645 = vmatpush1.bf16.xpose.msra.mxu0 %v6598_v30 }
 0x97f   : > { %3646 = vmatprep.subr.bf16.mxu0 %v6603_v39 }
 0x986   : > { %3647 = vmatpush1.bf16.xpose.msra.mxu0 %v6601_v40 }
 0x987   : > { %3648 = vmatprep.subr.bf16.mxu0 %v6606_v41 }
 0x98e   : > { %3649 = vmatpush1.bf16.xpose.msra.mxu0 %v6604_v42 }
 0x98f   : > { %3650 = vmatprep.subr.bf16.mxu0 %v6609_v43 }
 0xa33   : > { %v3077_v48 = vpop.f32.mrf.mxu0 }
 0xa34   : > { %v3083_v49 = vmul.f32 0.05103104, %v3077_v48  ;;  %v6607_v48 = vld [vmem:[#allocation10 + $0x60] ss:$12 sps:$4 sm:$0xff]  }
 0xa35   : > { %v7681_v50 = vpop.f32.mrf.mxu1  ;;  %v6111_v51 = vpop.f32.mrf.mxu0  ;;  %3651 = vmatpush1.bf16.xpose.msra.mxu0 %v6607_v48 }
 0xa36   : > { %v3084_v52 = vadd.f32 %v3083_v49, %v7612_v19  ;;  %v6631_v49 = vld [vmem:[#allocation10 + $0x98] ss:$12 sps:$4 sm:$0xff]  }
 0xa37   : > { %v6081_v54 = vpop.f32.mrf.mxu1  ;;  %v3080_v55 = vpop.f32.mrf.mxu0  ;;  %v6612_v51 = vld [vmem:[#allocation10 + $0x4c] ss:$12 sps:$4 sm:$0xff]  }
 0xa38   : > { %v3085_v28 = vsel %vm2529_vm3, %v3084_v52, -inf  ;;  %3652 = vmatprep.subr.bf16.mxu0 %v6612_v51  ;;  %v6610_v54 = vld [vmem:[#allocation10 + $0x48] ss:$12 sps:$4 sm:$0xff]   ;;  %v6636_v55 = vld [vmem:[#allocation10 + $0x80] ss:$12 sps:$4 sm:$0xff]  }
 0xa39   : > { %v2807_v56 = vpop.f32.mrf.mxu1  ;;  %3086 = vmax.xlane.f32.xlu0 %v3085_v28  ;;  %v6112_v13 = vpop.f32.mrf.mxu0  ;;  %v6615_v28 = vld [vmem:[#allocation10 + $0x34] ss:$12 sps:$4 sm:$0xff]  }
 0xa3a   : > { %v6637_v56 = vld [vmem:[#allocation10 + $0x128] ss:$12 sps:$4 sm:$0xff]   ;;  %v6613_v13 = vld [vmem:[#allocation10 + $0x30] ss:$12 sps:$4 sm:$0xff]  }
 0xa3b   : > { %v6082_v58 = vpop.f32.mrf.mxu1 }
 0xa3c   : > { %v6641_v58 = vld [vmem:[#allocation10 + $0x68] ss:$12 sps:$4 sm:$0xff]  }
 0xa3d   : > { %v2856_v59 = vpop.f32.mrf.mxu1  ;;  %3653 = vmatpush1.bf16.xpose.msra.mxu0 %v6610_v54 }
 0xa3e   : > { %v2862_v60 = vmul.f32 0.05103104, %v2856_v59  ;;  %3654 = vmatprep.subr.bf16.mxu0 %v6615_v28  ;;  %v6618_v59 = vld [vmem:[#allocation10 + $0x1c] ss:$12 sps:$4 sm:$0xff]  }
 0xa3f   : > { %v6087_v61 = vpop.f32.mrf.mxu1 }
 0xa40   : > { %v2863_v62 = vadd.f32 %v2862_v60, %v7612_v19  ;;  %v6642_v60 = vld [vmem:[#allocation10 + $0x110] ss:$12 sps:$4 sm:$0xff]   ;;  %v6616_v61 = vld [vmem:[#allocation10 + $0x18] ss:$12 sps:$4 sm:$0xff]  }
 0xa41   : > { %v2859_v63 = vpop.f32.mrf.mxu1 }
 0xa42   : > { %v2864_v0 = vsel %vm2529_vm3, %v2863_v62, -inf  ;;  %v6621_v63 = vld [vmem:[#allocation10 + $0x4] ss:$12 sps:$4 sm:$0xff]  }
 0xa43   : > { %2865 = vmax.xlane.f32.xlu1 %v2864_v0  ;;  %v6088_v27 = vpop.f32.mrf.mxu1  ;;  %v6647_v0 = vld [vmem:[#allocation10 + $0xf8] ss:$12 sps:$4 sm:$0xff]  }
 0xa44   : > { %v6651_v27 = vld [vmem:[#allocation10 + $0x38] ss:$12 sps:$4 sm:$0xff]  }
 0xa45   : > { %3655 = vmatpush1.bf16.xpose.msra.mxu0 %v6613_v13  ;;  %v6672_v13 = vld [vmem:[#allocation10 + $0x1fc] ss:$12 sps:$4 sm:$0xff]  }
 0xa46   : > { %3656 = vmatprep.subr.bf16.mxu0 %v6618_v59  ;;  %v6676_v59 = vld [vmem:[#allocation10 + $0x1e4] ss:$12 sps:$4 sm:$0xff]  }
 0xa47   : > { %2980 = vadd.xlane.f32.xlu1 %v2979_v4  ;;  %v6625_v4 = vld [vmem:[#allocation10 + $0x16c] ss:$12 sps:$4 sm:$0xff]  }
 0xa4d   : > { %3657 = vmatpush1.bf16.xpose.msra.mxu0 %v6616_v61  ;;  %v6677_v61 = vld [vmem:[#allocation10 + $0x1e8] ss:$12 sps:$4 sm:$0xff]  }
 0xa4e   : > { %3658 = vmatprep.subr.bf16.mxu0 %v6621_v63  ;;  %v6678_v63 = vld [vmem:[#allocation10 + $0x1c8] ss:$12 sps:$4 sm:$0xff]  }
 0xa58   : > { %2877 = vrot.lane.b32.xlu1 %v7654_v11, %s7221_s3 }
 0xac2   : > { %v3087_v1 = vpop.xlane.xlu0 %3086 }
 0xac3   : > { %v3088_v16 = vsub.f32 %v3084_v52, %v3087_v1  ;;  %v6632_v52 = vld [vmem:[#allocation10 + $0x140] ss:$12 sps:$4 sm:$0xff]  }
 0xac4   : > { %v6652_v1 = vld [vmem:[#allocation10 + $0xe0] ss:$12 sps:$4 sm:$0xff]  }
 0xac5   : > { %v3089_v9 = vmul.f32 1.442695, %v3088_v16  ;;  %v6623_v16 = vld [vmem:[#allocation10 + $0x168] ss:$12 sps:$4 sm:$0xff]  }
 0xacc   : > { %v2866_v57 = vpop.xlane.xlu1 %2865 }
 0xacd   : > { %v2867_v5 = vsub.f32 %v2863_v62, %v2866_v57  ;;  %v6646_v62 = vld [vmem:[#allocation10 + $0x50] ss:$12 sps:$4 sm:$0xff]   ;;  %v6656_v57 = vld [vmem:[#allocation10 + $0x20] ss:$12 sps:$4 sm:$0xff]  }
 0xacf   : > { %v2868_v10 = vmul.f32 1.442695, %v2867_v5  ;;  %v6630_v5 = vld [vmem:[#allocation10 + $0x154] ss:$12 sps:$4 sm:$0xff]  }
 0xad0   : > { %v2981_v14 = vpop.xlane.xlu1 %2980 }
 0xad1   : > { %6902 = vpow2.f32 %v2868_v10  ;;  %v6628_v10 = vld [vmem:[#allocation10 + $0x150] ss:$12 sps:$4 sm:$0xff]  }
 0xad2   : > { %6904 = vpow2.f32 %v3089_v9  ;;  %v6657_v9 = vld [vmem:[#allocation10 + $0xc8] ss:$12 sps:$4 sm:$0xff]  }
 0xad4   : > { %v2878_v19 = vpop.permute.xlu1 %2877 }
 0xad5   : > { %v2883_v15 = vsel %vm2545_vm2, %v2878_v19, 0  ;;  %v6635_v19 = vld [vmem:[#allocation10 + $0x13c] ss:$12 sps:$4 sm:$0xff]  }
 0xad6   : > { %6090 = vmatpush3.bf16.msra.mxu1 %v2883_v15  ;;  %v6633_v15 = vld [vmem:[#allocation10 + $0x138] ss:$12 sps:$4 sm:$0xff]  }
 0xad7   : > { %6101 = vmatprep.subr.bf16.mxu1 %v7219_v26 }
 0xade   : > { %v6903_v17 = vpop.eup %6902 }
 0xadf   : > { %v2870_v18 = vsel %vm2529_vm3, %v6903_v17, 0.0  ;;  %v6905_v20 = vpop.eup %6904 }
 0xae0   : > { %2871 = vadd.xlane.f32.xlu0 %v2870_v18  ;;  %v3091_v11 = vsel %vm2529_vm3, %v6905_v20, 0.0  ;;  %v6638_v18 = vld [vmem:[#allocation10 + $0x120] ss:$12 sps:$4 sm:$0xff]  }
 0xae4   : > { %3092 = vadd.xlane.f32.xlu0 %v3091_v11  ;;  %v6643_v11 = vld [vmem:[#allocation10 + $0x108] ss:$12 sps:$4 sm:$0xff]  }
 0xafa   : > { %3098 = vrot.lane.b32.xlu0 %v2478_v21, %s7221_s3  ;;  %v6650_v21 = vld [vmem:[#allocation10 + $0xf4] ss:$12 sps:$4 sm:$0xff]  }
 0xb69   : > { %v2872_v2 = vpop.xlane.xlu0 %2871 }
 0xb6a   : > { %6906 = vrcp.f32 %v2872_v2  ;;  %v6648_v2 = vld [vmem:[#allocation10 + $0xf0] ss:$12 sps:$4 sm:$0xff]  }
 0xb6b   : > { %6908 = vrcp.f32 %v2981_v14  ;;  %v6661_v14 = vld [vmem:[#allocation10 + $0x8] ss:$12 sps:$4 sm:$0xff]  }
 0xb6d   : > { %v3093_v22 = vpop.xlane.xlu0 %3092 }
 0xb6e   : > { %6910 = vrcp.f32 %v3093_v22  ;;  %v6655_v22 = vld [vmem:[#allocation10 + $0xdc] ss:$12 sps:$4 sm:$0xff]  }
 0xb71   : > { %v3099_v32 = vpop.permute.xlu0 %3098 }
 0xb72   : > { %v3104_v35 = vsel %vm2545_vm2, %v3099_v32, 0 }
 0xb77   : > { %v6907_v23 = vpop.eup %6906 }
 0xb78   : > { %v2874_v24 = vmul.f32 %v6907_v23, %v6903_v17  ;;  %v6909_v29 = vpop.eup %6908  ;;  %v6640_v17 = vld [vmem:[#allocation10 + $0x124] ss:$12 sps:$4 sm:$0xff]  }
 0xb79   : > { %v2983_v12 = vmul.f32 %v6909_v29, %v6901_v3  ;;  %v6619_v3 = vld [vmem:[#allocation10] ss:$12 sps:$4 sm:$0xff]   ;;  %v6653_v23 = vld [vmem:[#allocation10 + $0xd8] ss:$12 sps:$4 sm:$0xff]  }
 0xb7a   : > { %v2875_v25 = vpack.c.bf16 %v2874_v24, %v2874_v24  ;;  %3659 = vmatpush1.bf16.xpose.msra.mxu0 %v6619_v3  ;;  %v6660_v24 = vld [vmem:[#allocation10 + $0xc4] ss:$12 sps:$4 sm:$0xff]   ;;  %v6684_v3 = vld [vmem:[#allocation10 + $0x1b4] ss:$12 sps:$4 sm:$0xff]  }
 0xb7b   : > { %v2984_v33 = vpack.c.bf16 %v2983_v12, %v2983_v12  ;;  %v6911_v34 = vpop.eup %6910  ;;  %3660 = vmatprep.subr.bf16.mxu0 %v6625_v4  ;;  %v6685_v4 = vld [vmem:[#allocation10 + $0x1b8] ss:$12 sps:$4 sm:$0xff]  }
 0xb7c   : > { %6092 = vmatmul.mubr.msk.bf16.vlgmr.msra.gmra.mxu1 %vm2529_vm3, %v2875_v25  ;;  %v3095_v36 = vmul.f32 %v6911_v34, %v6905_v20  ;;  %v6645_v20 = vld [vmem:[#allocation10 + $0x10c] ss:$12 sps:$4 sm:$0xff]  }
 0xb7d   : > { %6102 = vmatpush3.bf16.msra.mxu1 %v2989_v31  ;;  %6103 = vmatprep.mubr.msk.bf16.mxu1 %vm7220_vm0, %v7219_v26  ;;  %v6658_v31 = vld [vmem:[#allocation10 + $0xc0] ss:$12 sps:$4 sm:$0xff]  }
 0xb7e   : > { %6113 = vmatprep.subr.bf16.mxu1 %v7219_v26  ;;  %v3096_v37 = vpack.c.bf16 %v3095_v36, %v3095_v36 }
 0xb82   : > { %3661 = vmatpush2.bf16.xpose.msra.mxu0 %v6623_v16  ;;  %v6686_v16 = vld [vmem:[#allocation10 + $0x198] ss:$12 sps:$4 sm:$0xff]  }
 0xb83   : > { %3662 = vmatprep.subr.bf16.mxu0 %v6630_v5  ;;  %v6692_v5 = vld [vmem:[#allocation10 + $0x184] ss:$12 sps:$4 sm:$0xff]  }
 0xb84   : > { %6104 = vmatmul.mubr.msk.bf16.vlgmr.msra.gmra.mxu1 %vm2529_vm3, %v2984_v33 }
 0xb85   : > { %6114 = vmatpush3.bf16.msra.mxu1 %v3104_v35  ;;  %6115 = vmatprep.mubr.msk.bf16.mxu1 %vm7220_vm0, %v7219_v26  ;;  %v6664_v35 = vld [vmem:[#allocation10 + $0x22c] ss:$12 sps:$4 sm:$0xff]  }
 0xb86   : > { %5946 = vmatprep.subr.bf16.mxu1 %v6622_v53 }
 0xb8a   : > { %3663 = vmatpush2.bf16.xpose.msra.mxu0 %v6628_v10  ;;  %v6693_v10 = vld [vmem:[#allocation10 + $0x188] ss:$12 sps:$4 sm:$0xff]  }
 0xb8b   : > { %3664 = vmatprep.subr.bf16.mxu0 %v6635_v19 }
 0xb8c   : > { %6116 = vmatmul.mubr.msk.bf16.vlgmr.msra.gmra.mxu1 %vm2529_vm3, %v3096_v37 }
 0xb8d   : > { %5947 = vmatpush3.bf16.xpose.msra.mxu1 %v6626_v44 }
 0xb8e   : > { %5948 = vmatprep.subr.bf16.mxu1 %v6627_v46 }
 0xb92   : > { %3665 = vmatpush2.bf16.xpose.msra.mxu0 %v6633_v15 }
 0xb93   : > { %3666 = vmatprep.subr.bf16.mxu0 %v6640_v17 }
 0xb95   : > { %5949 = vmatpush3.bf16.xpose.msra.mxu1 %v6631_v49 }
 0xb96   : > { %5950 = vmatprep.subr.bf16.mxu1 %v6632_v52  ;;  %v6662_v52 = vld [vmem:[#allocation10 + $0x228] ss:$12 sps:$4 sm:$0xff]  }
 0xb9a   : > { %3667 = vmatpush2.bf16.xpose.msra.mxu0 %v6638_v18 }
 0xb9b   : > { %3668 = vmatprep.subr.bf16.mxu0 %v6645_v20 }
 0xb9d   : > { %5951 = vmatpush3.bf16.xpose.msra.mxu1 %v6636_v55  ;;  %v6665_v55 = vld [vmem:[#allocation10 + $0x230] ss:$12 sps:$4 sm:$0xff]  }
 0xb9e   : > { %5952 = vmatprep.subr.bf16.mxu1 %v6637_v56  ;;  %v6669_v56 = vld [vmem:[#allocation10 + $0x218] ss:$12 sps:$4 sm:$0xff]  }
 0xba2   : > { %3669 = vmatpush2.bf16.xpose.msra.mxu0 %v6643_v11 }
 0xba3   : > { %3670 = vmatprep.subr.bf16.mxu0 %v6650_v21 }
 0xba5   : > { %5953 = vmatpush3.bf16.xpose.msra.mxu1 %v6641_v58  ;;  %v6673_v58 = vld [vmem:[#allocation10 + $0x200] ss:$12 sps:$4 sm:$0xff]  }
 0xba6   : > { %5954 = vmatprep.subr.bf16.mxu1 %v6642_v60  ;;  %v6674_v60 = vld [vmem:[#allocation10 + $0x1e0] ss:$12 sps:$4 sm:$0xff]  }
 0xbaa   : > { %3671 = vmatpush2.bf16.xpose.msra.mxu0 %v6648_v2 }
 0xbab   : > { %3672 = vmatprep.subr.bf16.mxu0 %v6655_v22 }
 0xbad   : > { %5955 = vmatpush3.bf16.xpose.msra.mxu1 %v6646_v62  ;;  %v6680_v62 = vld [vmem:[#allocation10 + $0x1cc] ss:$12 sps:$4 sm:$0xff]  }
 0xbae   : > { %5956 = vmatprep.subr.bf16.mxu1 %v6647_v0  ;;  %v6681_v0 = vld [vmem:[#allocation10 + $0x1d0] ss:$12 sps:$4 sm:$0xff]  }
 0xbb2   : > { %3673 = vmatpush2.bf16.xpose.msra.mxu0 %v6653_v23  ;;  %v3809_v23 = vld [vmem:[#allocation11] sm:$0x7] }
 0xbb3   : > { %3674 = vmatprep.subr.bf16.mxu0 %v6660_v24  ;;  %v6914_v24 = vld [vmem:[%s7479_s1 + $0x8] sm:$0xff] }
 0xbb5   : > { %5957 = vmatpush3.bf16.xpose.msra.mxu1 %v6651_v27  ;;  %v6682_v27 = vld [vmem:[#allocation10 + $0x1b0] ss:$12 sps:$4 sm:$0xff]  }
 0xbb6   : > { %5958 = vmatprep.subr.bf16.mxu1 %v6652_v1  ;;  %v6688_v1 = vld [vmem:[#allocation10 + $0x19c] ss:$12 sps:$4 sm:$0xff]  }
 0xbba   : > { %3675 = vmatpush2.bf16.xpose.msra.mxu0 %v6658_v31  ;;  %v6915_v31 = vld [vmem:[%s7479_s1] sm:$0xff] }
 0xbbb   : > { %6119 = vmatprep.subr.bf16.mxu0 %v7219_v26 }
 0xbbd   : > { %5959 = vmatpush3.bf16.xpose.msra.mxu1 %v6656_v57  ;;  %v6689_v57 = vld [vmem:[#allocation10 + $0x1a0] ss:$12 sps:$4 sm:$0xff]  }
 0xbbe   : > { %5960 = vmatprep.subr.bf16.mxu1 %v6657_v9  ;;  %v6690_v9 = vld [vmem:[#allocation10 + $0x180] ss:$12 sps:$4 sm:$0xff]  }
 0xbc5   : > { %5961 = vmatpush3.bf16.xpose.msra.mxu1 %v6661_v14 }
 0xbc6   : > { %3726 = vmatprep.subr.bf16.mxu1 %v6664_v35 }
 0xc3c   : > { %v2919_v25 = vpop.f32.mrf.mxu1 }
 0xc3e   : > { %v6093_v29 = vpop.f32.mrf.mxu1 }
 0xc3f   : > { %v3818_v29 = vrot.slane %v3809_v23, %v7516_v6 }
 0xc40   : > { %v2922_v12 = vpop.f32.mrf.mxu1 }
 0xc42   : > { %v6094_v32 = vpop.f32.mrf.mxu1 }
 0xc43   : > { %v3814_v32 = vrot.slane %v3809_v23, %v7520_v8 }
 0xc44   : > { %v3025_v33 = vpop.f32.mrf.mxu1 }
 0xc46   : > { %v6105_v34 = vpop.f32.mrf.mxu1 }
 0xc48   : > { %v3028_v36 = vpop.f32.mrf.mxu1 }
 0xc4a   : > { %v6106_v37 = vpop.f32.mrf.mxu1 }
 0xc4b   : > { %v3822_v37 = vrot.slane %v3809_v23, %v7518_v7 }
 0xc4c   : > { %v3140_v38 = vpop.f32.mrf.mxu1 }
 0xc4d   : > { %v6305_v30 = vpack.i.bf16 %v3140_v38, %v2919_v25 }
 0xc4e   : > { %v6117_v39 = vpop.f32.mrf.mxu1 }
 0xc4f   : > { %6306 = vrot.lane.b32.xlu1 %v6305_v30, %s7221_s3 }
 0xc50   : > { %v3143_v40 = vpop.f32.mrf.mxu1 }
 0xc51   : > { %v6916_v40 = vld [vmem:[%s7479_s1 + $0x10] sm:$0xff]  ;;  %s5238_s1 = sshll.u32 %s552_s18, 4  ;;  %s5239_s1 = int_to_ptr.vmem [resolvable:$true] %s5238_s1 }
 0xc52   : > { %v6118_v41 = vpop.f32.mrf.mxu1  ;;  %s7127_s19 = scalar_lea.vmem %s5239_s1, 384  ;;  %p7134_p4 = scmp.lt.s32.totalorder %s5239_s1, %s7132_s17 }
 0xc53   : > { %3147 = vrot.lane.b32.xlu1 %v7662_v47, %s7221_s3  ;;  %v6668_v47 = vld [vmem:[#allocation10 + $0x214] ss:$12 sps:$4 sm:$0xff]   ;;  %p7128_p11 = scmp.ne.s32.totalorder %s5239_s1, %s7127_s19  ;;  %p7135_p9 = scmp.lt.s32.totalorder %s7133_s24, %s7127_s19 }
 0xc55   : > { %p7129_p1 = pnand %p7128_p11, %p7899_p10  ;;  %p7136_p6 = por %p7135_p9, %p7134_p4 }
 0xc57   : > { %p7130_p3 = pneg %p7129_p1 }
 0xc59   : > { %p7137_p12 = pnand %p7136_p6, %p7130_p3 }
 0xcc1   : > { %v6307_v42 = vpop.permute.xlu1 %6306 }
 0xcc2   : > { %v6309_v43 = vunpack.i.h.bf16 %v6307_v42  ;;  %v6308_v53 = vunpack.i.l.bf16 %v6307_v42 }
 0xcc4   : > { %v3159_v44 = vsel %vm2480_vm1, %v7681_v50, %v6308_v53  ;;  %v3160_v46 = vsel %vm2480_vm1, %v3025_v33, %v6309_v43  ;;  %v6666_v50 = vld [vmem:[#allocation10 + $0x210] ss:$12 sps:$4 sm:$0xff]  }
 0xcc5   : > { %v3148_v48 = vpop.permute.xlu1 %3147  ;;  %v3162_v49 = vpack.c.bf16 %v3159_v44, %v3159_v44  ;;  %v3163_v51 = vpack.c.bf16 %v3160_v46, %v3160_v46 }
 0xcc6   : > { %v3158_v54 = vsel %vm2480_vm1, %v7626_v45, %v3148_v48  ;;  %v6670_v45 = vld [vmem:[#allocation10 + $0x1f8] ss:$12 sps:$4 sm:$0xff]  }
 0xcc7   : > { %v3161_v28 = vpack.c.bf16 %v3158_v54, %v3158_v54  ;;  %3676 = vmatprep.mubr.bf16.mxu0 %v3162_v49  ;;  %5962 = vmatprep.mubr.bf16.mxu1 %v3163_v51  ;;  %v6699_v54 = vld [vmem:[#allocation13 + $0x94] ss:$12 sps:$4 sm:$0xff]  }
 0xcc8   : > { %5963 = vmatmul.mubr.bf16.vlgmr.msra.gmra.mxu1 %v3163_v51 }
 0xcc9   : > { %3727 = vmatpush1.bf16.xpose.msra.mxu1 %v6662_v52  ;;  %3677 = vmatmul.mubr.bf16.vlgmr.msra.gmra.mxu0 %v3161_v28  ;;  %v6696_v52 = vld [vmem:[#allocation13 + $0xac] ss:$12 sps:$4 sm:$0xff]  }
 0xcca   : > { %3758 = vmatprep.mubr.bf16.mxu1 %v3162_v49  ;;  %6120 = vmatpush3.bf16.xpose.msra.mxu0 %v6665_v55  ;;  %v6721_v55 = vld [vmem:[#allocation13 + $0x170] ss:$12 sps:$4 sm:$0xff]  }
 0xccb   : > { %3728 = vmatprep.subr.bf16.mxu1 %v6668_v47  ;;  %6121 = vmatprep.subr.bf16.mxu0 %v7219_v26  ;;  %v6697_v47 = vld [vmem:[#allocation13 + $0x90] ss:$12 sps:$4 sm:$0xff]  }
 0xccc   : > { %6135 = vmatprep.mubr.msk.bf16.mxu0 %vm7220_vm0, %v7219_v26 }
 0xcd1   : > { %3729 = vmatpush1.bf16.xpose.msra.mxu1 %v6666_v50  ;;  %v6726_v50 = vld [vmem:[#allocation13 + $0x158] ss:$12 sps:$4 sm:$0xff]  }
 0xcd2   : > { %6122 = vmatpush3.bf16.xpose.msra.mxu0 %v6669_v56  ;;  %3730 = vmatprep.subr.bf16.mxu1 %v6672_v13  ;;  %v6702_v56 = vld [vmem:[#allocation13 + $0x7c] ss:$12 sps:$4 sm:$0xff]   ;;  %v6727_v13 = vld [vmem:[#allocation13 + $0x98] ss:$12 sps:$4 sm:$0xff]  }
 0xcd3   : > { %6123 = vmatprep.subr.bf16.mxu0 %v7219_v26 }
 0xcd9   : > { %3731 = vmatpush1.bf16.xpose.msra.mxu1 %v6670_v45  ;;  %v6731_v45 = vld [vmem:[#allocation13 + $0x140] ss:$12 sps:$4 sm:$0xff]  }
 0xcda   : > { %6124 = vmatpush3.bf16.xpose.msra.mxu0 %v6673_v58  ;;  %3732 = vmatprep.subr.bf16.mxu1 %v6676_v59  ;;  %v6700_v58 = vld [vmem:[#allocation13 + $0x78] ss:$12 sps:$4 sm:$0xff]  }
 0xcdb   : > { %6125 = vmatprep.subr.bf16.mxu0 %v7219_v26  ;;  %v6705_v59 = vld [vmem:[#allocation13 + $0x64] ss:$12 sps:$4 sm:$0xff]  }
 0xce1   : > { %3733 = vmatpush1.bf16.xpose.msra.mxu1 %v6674_v60  ;;  %v6732_v60 = vld [vmem:[#allocation13 + $0x80] ss:$12 sps:$4 sm:$0xff]  }
 0xce2   : > { %6126 = vmatpush3.bf16.xpose.msra.mxu0 %v6677_v61  ;;  %3734 = vmatprep.subr.bf16.mxu1 %v6680_v62  ;;  %v6736_v61 = vld [vmem:[#allocation13 + $0x128] ss:$12 sps:$4 sm:$0xff]   ;;  %v6703_v62 = vld [vmem:[#allocation13 + $0x60] ss:$12 sps:$4 sm:$0xff]  }
 0xce3   : > { %6127 = vmatprep.subr.bf16.mxu0 %v7219_v26 }
 0xce9   : > { %3735 = vmatpush1.bf16.xpose.msra.mxu1 %v6678_v63  ;;  %v6708_v63 = vld [vmem:[#allocation13 + $0x4c] ss:$12 sps:$4 sm:$0xff]  }
 0xcea   : > { %6128 = vmatpush3.bf16.xpose.msra.mxu0 %v6681_v0  ;;  %3736 = vmatprep.subr.bf16.mxu1 %v6684_v3  ;;  %v6737_v0 = vld [vmem:[#allocation13 + $0x68] ss:$12 sps:$4 sm:$0xff]   ;;  %v6741_v3 = vld [vmem:[#allocation13 + $0x110] ss:$12 sps:$4 sm:$0xff]  }
 0xceb   : > { %6129 = vmatprep.subr.bf16.mxu0 %v7219_v26 }
 0xcf1   : > { %3737 = vmatpush1.bf16.xpose.msra.mxu1 %v6682_v27  ;;  %v6706_v27 = vld [vmem:[#allocation13 + $0x48] ss:$12 sps:$4 sm:$0xff]  }
 0xcf2   : > { %6130 = vmatpush3.bf16.xpose.msra.mxu0 %v6685_v4  ;;  %3738 = vmatprep.subr.bf16.mxu1 %v6688_v1  ;;  %v6711_v4 = vld [vmem:[#allocation13 + $0x34] ss:$12 sps:$4 sm:$0xff]   ;;  %v6742_v1 = vld [vmem:[#allocation13 + $0x50] ss:$12 sps:$4 sm:$0xff]  }
 0xcf3   : > { %6131 = vmatprep.subr.bf16.mxu0 %v7219_v26 }
 0xcf9   : > { %3739 = vmatpush1.bf16.xpose.msra.mxu1 %v6686_v16  ;;  %v6709_v16 = vld [vmem:[#allocation13 + $0x30] ss:$12 sps:$4 sm:$0xff]  }
 0xcfa   : > { %6132 = vmatpush3.bf16.xpose.msra.mxu0 %v6689_v57  ;;  %3740 = vmatprep.subr.bf16.mxu1 %v6692_v5  ;;  %v6714_v57 = vld [vmem:[#allocation13 + $0x1c] ss:$12 sps:$4 sm:$0xff]   ;;  %v6712_v5 = vld [vmem:[#allocation13 + $0x18] ss:$12 sps:$4 sm:$0xff]  }
 0xcfb   : > { %6133 = vmatprep.subr.bf16.mxu0 %v7219_v26 }
 0xd01   : > { %3741 = vmatpush1.bf16.xpose.msra.mxu1 %v6690_v9  ;;  %v6717_v9 = vld [vmem:[#allocation13 + $0x4] ss:$12 sps:$4 sm:$0xff]  }
 0xd02   : > { %6134 = vmatpush3.bf16.xpose.msra.mxu0 %v6693_v10  ;;  %4390 = vmatprep.subr.bf16.mxu1 %v6696_v52  ;;  %v6715_v10 = vld [vmem:[#allocation13] ss:$12 sps:$4 sm:$0xff]  }
 0xd03   : > { %5973 = vmatprep.subr.bf16.mxu0 %v6721_v55  ;;  %v6760_v52 = vld [vmem:[#allocation13 + $0x22c] ss:$12 sps:$4 sm:$0xff]  }
 0xd08   : > { %3759 = vmatmul.mubr.bf16.vlgmr.msra.gmra.mxu1 %v3161_v28  ;;  %v6722_v28 = vld [vmem:[#allocation13 + $0xb0] ss:$12 sps:$4 sm:$0xff]  }
 0xd09   : > { %6136 = vmatmul.mubr.bf16.vlgmr.msra.gmra.mxu0 %v3163_v51  ;;  %v6694_v51 = vld [vmem:[#allocation13 + $0xa8] ss:$12 sps:$4 sm:$0xff]  }
 0xd0a   : > { %4391 = vmatpush1.bf16.xpose.msra.mxu1 %v6694_v51  ;;  %5974 = vmatpush3.bf16.xpose.msra.mxu0 %v6722_v28  ;;  %v6757_v51 = vld [vmem:[#allocation13 + $0x8] ss:$12 sps:$4 sm:$0xff]  }
 0xd0b   : > { %4392 = vmatprep.subr.bf16.mxu1 %v6699_v54  ;;  %5975 = vmatprep.subr.bf16.mxu0 %v6726_v50  ;;  %v3870_v50 = vld [vmem:[%s7850_s8] sm:$0x7] }
 0xd12   : > { %4393 = vmatpush1.bf16.xpose.msra.mxu1 %v6697_v47  ;;  %5976 = vmatpush3.bf16.xpose.msra.mxu0 %v6727_v13  ;;  %v3850_v47 = vld [vmem:[%s7849_s7] sm:$0x7] }
 0xd13   : > { %4394 = vmatprep.subr.bf16.mxu1 %v6702_v56  ;;  %5977 = vmatprep.subr.bf16.mxu0 %v6731_v45  ;;  %v3859_v56 = vrot.slane %v3850_v47, %v7516_v6  ;;  %v3863_v13 = vrot.slane %v3850_v47, %v7518_v7  ;;  %v3855_v45 = vrot.slane %v3850_v47, %v7520_v8  ;;  %v6804_v47 = vld [vmem:[#allocation14 + $0x4c] ss:$12 sps:$4 sm:$0xff]  }
 0xd1a   : > { %4395 = vmatpush1.bf16.xpose.msra.mxu1 %v6700_v58  ;;  %5978 = vmatpush3.bf16.xpose.msra.mxu0 %v6732_v60  ;;  %v3883_v60 = vrot.slane %v3870_v50, %v7518_v7 }
 0xd1b   : > { %4396 = vmatprep.subr.bf16.mxu1 %v6705_v59  ;;  %5979 = vmatprep.subr.bf16.mxu0 %v6736_v61  ;;  %v3879_v59 = vrot.slane %v3870_v50, %v7516_v6 }
 0xd22   : > { %4397 = vmatpush1.bf16.xpose.msra.mxu1 %v6703_v62  ;;  %5980 = vmatpush3.bf16.xpose.msra.mxu0 %v6737_v0  ;;  %v3875_v0 = vrot.slane %v3870_v50, %v7520_v8  ;;  %v6845_v50 = vld [vmem:[#allocation14 + $0x80] ss:$12 sps:$4 sm:$0xff]  }
 0xd23   : > { %4398 = vmatprep.subr.bf16.mxu1 %v6708_v63  ;;  %5981 = vmatprep.subr.bf16.mxu0 %v6741_v3 }
 0xd2a   : > { %4399 = vmatpush1.bf16.xpose.msra.mxu1 %v6706_v27  ;;  %5982 = vmatpush3.bf16.xpose.msra.mxu0 %v6742_v1 }
 0xd2b   : > { %4400 = vmatprep.subr.bf16.mxu1 %v6711_v4 }
 0xd32   : > { %4401 = vmatpush1.bf16.xpose.msra.mxu1 %v6709_v16 }
 0xd33   : > { %4402 = vmatprep.subr.bf16.mxu1 %v6714_v57 }
 0xd3a   : > { %4403 = vmatpush1.bf16.xpose.msra.mxu1 %v6712_v5 }
 0xd3b   : > { %4404 = vmatprep.subr.bf16.mxu1 %v6717_v9 }
 0xd42   : > { %4405 = vmatpush1.bf16.xpose.msra.mxu1 %v6715_v10  ;;  %v6758_v10 = vld [vmem:[#allocation13 + $0x228] ss:$12 sps:$4 sm:$0xff]  }
 0xd88   : > { %v3719_v14 = vpop.f32.mrf.mxu1 }
 0xd89   : > { %v3678_v19 = vpop.f32.mrf.mxu0 }
 0xd8a   : > { %v3721_v15 = vpop.f32.mrf.mxu1  ;;  %v3720_v22 = vadd.f32 %v3719_v14, %v3678_v19  ;;  %v6720_v14 = vld [vmem:[#allocation13 + $0x16c] ss:$12 sps:$4 sm:$0xff]   ;;  %v6718_v19 = vld [vmem:[#allocation13 + $0x168] ss:$12 sps:$4 sm:$0xff]  }
 0xd8b   : > { %v3680_v17 = vpop.f32.mrf.mxu0  ;;  %4406 = vmatprep.subr.bf16.mxu1 %v6720_v14 }
 0xd8c   : > { %v3723_v18 = vpop.f32.mrf.mxu1  ;;  %v3722_v2 = vadd.f32 %v3721_v15, %v3680_v17  ;;  %v3806_v12 = vadd.f32 %v6915_v31, %v3720_v22  ;;  %v6725_v15 = vld [vmem:[#allocation13 + $0x154] ss:$12 sps:$4 sm:$0xff]   ;;  %4407 = vmatpush2.bf16.xpose.msra.mxu1 %v6718_v19  ;;  %v6723_v17 = vld [vmem:[#allocation13 + $0x150] ss:$12 sps:$4 sm:$0xff]  }
 0xd8d   : > { %v3682_v20 = vpop.f32.mrf.mxu0  ;;  %4408 = vmatprep.subr.bf16.mxu1 %v6725_v15  ;;  %v6730_v18 = vld [vmem:[#allocation13 + $0x13c] ss:$12 sps:$4 sm:$0xff]   ;;  %v6764_v15 = vld [vmem:[#allocation13 + $0x214] ss:$12 sps:$4 sm:$0xff]  }
 0xd8e   : > { %v3724_v11 = vpop.f32.mrf.mxu1  ;;  %v3807_v25 = vadd.f32 %v6914_v24, %v3722_v2  ;;  %v7732_v39 = vadd.f32 %v3814_v32, %v3806_v12  ;;  %v6728_v20 = vld [vmem:[#allocation13 + $0x138] ss:$12 sps:$4 sm:$0xff]   ;;  %v6738_v22 = vld [vmem:[#allocation13 + $0x108] ss:$12 sps:$4 sm:$0xff]   ;;  %v6761_v19 = vld [vmem:[#allocation13 + $0x230] ss:$12 sps:$4 sm:$0xff]  }
 0xd8f   : > { %v3683_v21 = vpop.f32.mrf.mxu0  ;;  %v6735_v11 = vld [vmem:[#allocation13 + $0x124] ss:$12 sps:$4 sm:$0xff]   ;;  %v6740_v2 = vld [vmem:[#allocation13 + $0x10c] ss:$12 sps:$4 sm:$0xff]  }
 0xd90   : > { %v7729_v35 = vadd.f32 %v3818_v29, %v3807_v25  ;;  %v6733_v21 = vld [vmem:[#allocation13 + $0x120] ss:$12 sps:$4 sm:$0xff]  }
 0xd92   : > { %v3829_v46 = vadd.f32 %v7729_v35, %v7732_v39 }
 0xd94   : > { %4409 = vmatpush2.bf16.xpose.msra.mxu1 %v6723_v17  ;;  %v6762_v17 = vld [vmem:[#allocation13 + $0x210] ss:$12 sps:$4 sm:$0xff]  }
 0xd95   : > { %4410 = vmatprep.subr.bf16.mxu1 %v6730_v18  ;;  %v6765_v18 = vld [vmem:[#allocation13 + $0x218] ss:$12 sps:$4 sm:$0xff]  }
 0xd9c   : > { %4411 = vmatpush2.bf16.xpose.msra.mxu1 %v6728_v20  ;;  %v6768_v20 = vld [vmem:[#allocation13 + $0x1fc] ss:$12 sps:$4 sm:$0xff]  }
 0xd9d   : > { %4412 = vmatprep.subr.bf16.mxu1 %v6735_v11  ;;  %v6766_v11 = vld [vmem:[#allocation13 + $0x1f8] ss:$12 sps:$4 sm:$0xff]  }
 0xda4   : > { %4413 = vmatpush2.bf16.xpose.msra.mxu1 %v6733_v21  ;;  %v6769_v21 = vld [vmem:[#allocation13 + $0x200] ss:$12 sps:$4 sm:$0xff]  }
 0xda5   : > { %4414 = vmatprep.subr.bf16.mxu1 %v6740_v2  ;;  %v6772_v2 = vld [vmem:[#allocation13 + $0x1e4] ss:$12 sps:$4 sm:$0xff]  }
 0xdac   : > { %4415 = vmatpush2.bf16.xpose.msra.mxu1 %v6738_v22  ;;  %v6770_v22 = vld [vmem:[#allocation13 + $0x1e0] ss:$12 sps:$4 sm:$0xff]  }
 0xdc8   : > { %v3760_v33 = vpop.f32.mrf.mxu1 }
 0xdc9   : > { %v3800_v34 = vpop.f32.mrf.mxu0 }
 0xdca   : > { %v3801_v36 = vadd.f32 %v3800_v34, %v3760_v33  ;;  %v3762_v38 = vpop.f32.mrf.mxu1 }
 0xdcb   : > { %v6137_v30 = vpop.f32.mrf.mxu0  ;;  %v6746_v38 = vld [vmem:[#allocation13 + $0xf8] ss:$12 sps:$4 sm:$0xff]  }
 0xdcc   : > { %v3808_v41 = vadd.f32 %v6916_v40, %v3801_v36  ;;  %v3763_v42 = vpop.f32.mrf.mxu1  ;;  %v6743_v30 = vld [vmem:[#allocation13 + $0xf0] ss:$12 sps:$4 sm:$0xff]   ;;  %v6747_v40 = vld [vmem:[#allocation13 + $0x38] ss:$12 sps:$4 sm:$0xff]   ;;  %5983 = vmatprep.subr.bf16.mxu0 %v6746_v38  ;;  %v6786_v38 = vld [vmem:[#allocation13 + $0x180] ss:$12 sps:$4 sm:$0xff]  }
 0xdcd   : > { %v3803_v43 = vpop.f32.mrf.mxu0  ;;  %5984 = vmatpush3.bf16.xpose.msra.mxu0 %v6747_v40  ;;  %v6751_v42 = vld [vmem:[#allocation13 + $0xe0] ss:$12 sps:$4 sm:$0xff]  }
 0xdce   : > { %v7735_v53 = vadd.f32 %v3822_v37, %v3808_v41  ;;  %v3764_v44 = vpop.f32.mrf.mxu1  ;;  %v6745_v37 = vld [vmem:[#allocation13 + $0xf4] ss:$12 sps:$4 sm:$0xff]   ;;  %v6750_v41 = vld [vmem:[#allocation13 + $0xdc] ss:$12 sps:$4 sm:$0xff]   ;;  %5985 = vmatprep.subr.bf16.mxu0 %v6751_v42  ;;  %v6748_v43 = vld [vmem:[#allocation13 + $0xd8] ss:$12 sps:$4 sm:$0xff]  }
 0xdcf   : > { %v6138_v48 = vpop.f32.mrf.mxu0  ;;  %4416 = vmatprep.subr.bf16.mxu1 %v6745_v37  ;;  %v6752_v44 = vld [vmem:[#allocation13 + $0x20] ss:$12 sps:$4 sm:$0xff]   ;;  %v6788_v37 = vld [vmem:[#allocation13 + $0x184] ss:$12 sps:$4 sm:$0xff]  }
 0xdd0   : > { %v3830_v49 = vadd.f32 %v3829_v46, %v7735_v53  ;;  %4417 = vmatpush2.bf16.xpose.msra.mxu1 %v6743_v30  ;;  %v6755_v46 = vld [vmem:[#allocation13 + $0xc4] ss:$12 sps:$4 sm:$0xff]   ;;  %v6756_v48 = vld [vmem:[#allocation13 + $0xc8] ss:$12 sps:$4 sm:$0xff]   ;;  %v6792_v40 = vld [vmem:[#allocation14 + $0xac] ss:$12 sps:$4 sm:$0xff]  }
 0xdd1   : > { %4418 = vmatprep.subr.bf16.mxu1 %v6750_v41  ;;  %v6789_v30 = vld [vmem:[#allocation13 + $0x188] ss:$12 sps:$4 sm:$0xff]  }
 0xdd2   : > { %3831 = vadd.xlane.f32.xlu1 %v3830_v49  ;;  %v6753_v49 = vld [vmem:[#allocation13 + $0xc0] ss:$12 sps:$4 sm:$0xff]   ;;  %v6790_v41 = vld [vmem:[#allocation14 + $0xa8] ss:$12 sps:$4 sm:$0xff]  }
 0xdd3   : > { %v6795_v42 = vld [vmem:[#allocation14 + $0x94] ss:$12 sps:$4 sm:$0xff]  }
 0xdd5   : > { %5986 = vmatpush3.bf16.xpose.msra.mxu0 %v6752_v44  ;;  %v6798_v44 = vld [vmem:[#allocation14 + $0x7c] ss:$12 sps:$4 sm:$0xff]  }
 0xdd6   : > { %5987 = vmatprep.subr.bf16.mxu0 %v6756_v48  ;;  %v6839_v48 = vld [vmem:[#allocation14 + $0xb0] ss:$12 sps:$4 sm:$0xff]  }
 0xdd8   : > { %4419 = vmatpush2.bf16.xpose.msra.mxu1 %v6748_v43  ;;  %v6793_v43 = vld [vmem:[#allocation14 + $0x90] ss:$12 sps:$4 sm:$0xff]  }
 0xdd9   : > { %4420 = vmatprep.subr.bf16.mxu1 %v6755_v46  ;;  %v6838_v46 = vld [vmem:[#allocation14 + $0x170] ss:$12 sps:$4 sm:$0xff]  }
 0xddd   : > { %5988 = vmatpush3.bf16.xpose.msra.mxu0 %v6757_v51  ;;  %v6841_v51 = vld [vmem:[#allocation14 + $0x158] ss:$12 sps:$4 sm:$0xff]  }
 0xdde   : > { %4472 = vmatprep.subr.bf16.mxu0 %v6760_v52  ;;  %v6801_v52 = vld [vmem:[#allocation14 + $0x64] ss:$12 sps:$4 sm:$0xff]  }
 0xde0   : > { %4421 = vmatpush2.bf16.xpose.msra.mxu1 %v6753_v49  ;;  %v6796_v49 = vld [vmem:[#allocation14 + $0x78] ss:$12 sps:$4 sm:$0xff]  }
 0xde1   : > { %6139 = vmatprep.subr.bf16.mxu1 %v7219_v26 }
 0xe5b   : > { %v3832_v23 = vpop.xlane.xlu1 %3831 }
 0xe5c   : > { %v3833_v24 = vmul.f32 0.0026041667, %v3832_v23  ;;  %v6773_v23 = vld [vmem:[#allocation13 + $0x1e8] ss:$12 sps:$4 sm:$0xff]  }
 0xe5e   : > { %v3834_v25 = vsub.f32 %v7732_v39, %v3833_v24  ;;  %v3835_v29 = vsub.f32 %v7729_v35, %v3833_v24  ;;  %v3836_v31 = vsub.f32 %v7735_v53, %v3833_v24  ;;  %v6776_v24 = vld [vmem:[#allocation13 + $0x1cc] ss:$12 sps:$4 sm:$0xff]  }
 0xe60   : > { %v3837_v12 = vmul.f32 %v3834_v25, %v3834_v25  ;;  %v3838_v32 = vmul.f32 %v3835_v29, %v3835_v29  ;;  %v3839_v33 = vmul.f32 %v3836_v31, %v3836_v31 }
 0xe62   : > { %v3840_v34 = vadd.f32 %v3838_v32, %v3837_v12  ;;  %v6778_v12 = vld [vmem:[#allocation13 + $0x1b0] ss:$12 sps:$4 sm:$0xff]   ;;  %v6781_v32 = vld [vmem:[#allocation13 + $0x1b8] ss:$12 sps:$4 sm:$0xff]  }
 0xe64   : > { %v3841_v36 = vadd.f32 %v3840_v34, %v3839_v33  ;;  %v6784_v33 = vld [vmem:[#allocation13 + $0x19c] ss:$12 sps:$4 sm:$0xff]   ;;  %v6782_v34 = vld [vmem:[#allocation13 + $0x198] ss:$12 sps:$4 sm:$0xff]  }
 0xe66   : > { %3842 = vadd.xlane.f32.xlu0 %v3841_v36  ;;  %v6785_v36 = vld [vmem:[#allocation13 + $0x1a0] ss:$12 sps:$4 sm:$0xff]  }
 0xeef   : > { %v3843_v54 = vpop.xlane.xlu0 %3842 }
 0xef0   : > { %v3844_v55 = vmul.f32 0.0026041667, %v3843_v54  ;;  %v6842_v54 = vld [vmem:[#allocation14 + $0x98] ss:$12 sps:$4 sm:$0xff]  }
 0xef2   : > { %v3845_v28 = vadd.f32 1e-05, %v3844_v55  ;;  %v6799_v55 = vld [vmem:[#allocation14 + $0x60] ss:$12 sps:$4 sm:$0xff]  }
 0xef4   : > { %6912 = vrsqrt.f32 %v3845_v28  ;;  %v6844_v28 = vld [vmem:[#allocation14 + $0x140] ss:$12 sps:$4 sm:$0xff]  }
 0xf01   : > { %v6913_v58 = vpop.eup %6912 }
 0xf02   : > { %v3848_v61 = vmul.f32 %v6913_v58, %v3835_v29  ;;  %v3849_v62 = vmul.f32 %v6913_v58, %v3836_v31  ;;  %v3847_v63 = vmul.f32 %v6913_v58, %v3834_v25  ;;  %v6774_v25 = vld [vmem:[#allocation13 + $0x1c8] ss:$12 sps:$4 sm:$0xff]   ;;  %v6777_v29 = vld [vmem:[#allocation13 + $0x1d0] ss:$12 sps:$4 sm:$0xff]  }
 0xf03   : > { %v6780_v31 = vld [vmem:[#allocation13 + $0x1b4] ss:$12 sps:$4 sm:$0xff]  }
 0xf04   : > { %v3868_v3 = vmul.f32 %v3859_v56, %v3848_v61  ;;  %v3869_v27 = vmul.f32 %v3863_v13, %v3849_v62  ;;  %v3867_v4 = vmul.f32 %v3855_v45, %v3847_v63  ;;  %v6802_v56 = vld [vmem:[#allocation14 + $0x48] ss:$12 sps:$4 sm:$0xff]   ;;  %v6851_v62 = vld [vmem:[#allocation14 + $0x50] ss:$12 sps:$4 sm:$0xff]   ;;  %v6808_v63 = vld [vmem:[#allocation14 + $0x18] ss:$12 sps:$4 sm:$0xff]  }
 0xf05   : > { %v6847_v13 = vld [vmem:[#allocation14 + $0x128] ss:$12 sps:$4 sm:$0xff]  }
 0xf06   : > { %v3888_v1 = vadd.f32 %v3879_v59, %v3868_v3  ;;  %v3889_v16 = vadd.f32 %v3883_v60, %v3869_v27  ;;  %v3887_v57 = vadd.f32 %v3875_v0, %v3867_v4  ;;  %v6807_v45 = vld [vmem:[#allocation14 + $0x34] ss:$12 sps:$4 sm:$0xff]   ;;  %v6805_v59 = vld [vmem:[#allocation14 + $0x30] ss:$12 sps:$4 sm:$0xff]   ;;  %v6853_v0 = vld [vmem:[#allocation14 + $0xf8] ss:$12 sps:$4 sm:$0xff]  }
 0xf07   : > { %v6848_v58 = vld [vmem:[#allocation14 + $0x68] ss:$12 sps:$4 sm:$0xff]   ;;  %v6850_v60 = vld [vmem:[#allocation14 + $0x110] ss:$12 sps:$4 sm:$0xff]   ;;  %v6854_v27 = vld [vmem:[#allocation14 + $0x38] ss:$12 sps:$4 sm:$0xff]  }
 0xf08   : > { %v3891_v5 = vpack.c.bf16 %v3888_v1, %v3888_v1  ;;  %v7756_v9 = vpack.c.bf16 %v3889_v16, %v3889_v16  ;;  %v3890_v14 = vpack.c.bf16 %v3887_v57, %v3887_v57  ;;  %v6810_v61 = vld [vmem:[#allocation14 + $0x1c] ss:$12 sps:$4 sm:$0xff]   ;;  %v6813_v3 = vld [vmem:[#allocation14 + $0x4] ss:$12 sps:$4 sm:$0xff]   ;;  %v6811_v4 = vld [vmem:[#allocation14] ss:$12 sps:$4 sm:$0xff]  }
 0xf09   : > { %v6856_v1 = vld [vmem:[#allocation14 + $0xe0] ss:$12 sps:$4 sm:$0xff]  }
 0xf0a   : > { %4422 = vmatprep.mubr.bf16.mxu1 %v3891_v5  ;;  %5989 = vmatprep.mubr.bf16.mxu0 %v7756_v9  ;;  %v6816_v16 = vld [vmem:[#allocation14 + $0x16c] ss:$12 sps:$4 sm:$0xff]  }
 0xf0b   : > { %4423 = vmatmul.mubr.bf16.vlgmr.msra.gmra.mxu1 %v3890_v14  ;;  %5990 = vmatmul.mubr.bf16.vlgmr.msra.gmra.mxu0 %v7756_v9  ;;  %v6857_v57 = vld [vmem:[#allocation14 + $0x20] ss:$12 sps:$4 sm:$0xff]  }
 0xf0c   : > { %4473 = vmatpush1.bf16.xpose.msra.mxu0 %v6758_v10  ;;  %6140 = vmatpush3.bf16.xpose.msra.mxu1 %v6761_v19  ;;  %v6859_v10 = vld [vmem:[#allocation14 + $0xc8] ss:$12 sps:$4 sm:$0xff]   ;;  %v6817_v19 = vld [vmem:[#allocation14 + $0x150] ss:$12 sps:$4 sm:$0xff]  }
 0xf0d   : > { %4504 = vmatprep.mubr.bf16.mxu0 %v3891_v5  ;;  %4474 = vmatprep.subr.bf16.mxu0 %v6764_v15  ;;  %v6814_v5 = vld [vmem:[#allocation14 + $0x168] ss:$12 sps:$4 sm:$0xff]  }
 0xf0e   : > { %6141 = vmatprep.subr.bf16.mxu1 %v7219_v26  ;;  %6155 = vmatprep.mubr.msk.bf16.mxu1 %vm7220_vm0, %v7219_v26  ;;  %v6822_v15 = vld [vmem:[#allocation14 + $0x13c] ss:$12 sps:$4 sm:$0xff]  }
 0xf14   : > { %4475 = vmatpush1.bf16.xpose.msra.mxu0 %v6762_v17  ;;  %6142 = vmatpush3.bf16.xpose.msra.mxu1 %v6765_v18  ;;  %v6864_v17 = vld [vmem:[#allocation14 + $0x22c] ss:$12 sps:$4 sm:$0xff]  }
 0xf15   : > { %4476 = vmatprep.subr.bf16.mxu0 %v6768_v20  ;;  %6143 = vmatprep.subr.bf16.mxu1 %v7219_v26  ;;  %v6820_v18 = vld [vmem:[#allocation14 + $0x138] ss:$12 sps:$4 sm:$0xff]  }
 0xf16   : > { %v6825_v20 = vld [vmem:[#allocation14 + $0x124] ss:$12 sps:$4 sm:$0xff]  }
 0xf1c   : > { %4477 = vmatpush1.bf16.xpose.msra.mxu0 %v6766_v11  ;;  %6144 = vmatpush3.bf16.xpose.msra.mxu1 %v6769_v21  ;;  %v6823_v11 = vld [vmem:[#allocation14 + $0x120] ss:$12 sps:$4 sm:$0xff]  }
 0xf1d   : > { %4478 = vmatprep.subr.bf16.mxu0 %v6772_v2  ;;  %6145 = vmatprep.subr.bf16.mxu1 %v7219_v26  ;;  %v6828_v21 = vld [vmem:[#allocation14 + $0x10c] ss:$12 sps:$4 sm:$0xff]   ;;  %v6826_v2 = vld [vmem:[#allocation14 + $0x108] ss:$12 sps:$4 sm:$0xff]  }
 0xf24   : > { %4479 = vmatpush1.bf16.xpose.msra.mxu0 %v6770_v22  ;;  %6146 = vmatpush3.bf16.xpose.msra.mxu1 %v6773_v23  ;;  %v6831_v22 = vld [vmem:[#allocation14 + $0xf4] ss:$12 sps:$4 sm:$0xff]   ;;  %v6829_v23 = vld [vmem:[#allocation14 + $0xf0] ss:$12 sps:$4 sm:$0xff]  }
 0xf25   : > { %4480 = vmatprep.subr.bf16.mxu0 %v6776_v24  ;;  %6147 = vmatprep.subr.bf16.mxu1 %v7219_v26  ;;  %v6834_v24 = vld [vmem:[#allocation14 + $0xdc] ss:$12 sps:$4 sm:$0xff]  }
 0xf2c   : > { %4481 = vmatpush1.bf16.xpose.msra.mxu0 %v6774_v25  ;;  %6148 = vmatpush3.bf16.xpose.msra.mxu1 %v6777_v29  ;;  %v6832_v25 = vld [vmem:[#allocation14 + $0xd8] ss:$12 sps:$4 sm:$0xff]  }
 0xf2d   : > { %4482 = vmatprep.subr.bf16.mxu0 %v6780_v31  ;;  %6149 = vmatprep.subr.bf16.mxu1 %v7219_v26  ;;  %v6837_v29 = vld [vmem:[#allocation14 + $0xc4] ss:$12 sps:$4 sm:$0xff]   ;;  %v6835_v31 = vld [vmem:[#allocation14 + $0xc0] ss:$12 sps:$4 sm:$0xff]  }
 0xf34   : > { %4483 = vmatpush1.bf16.xpose.msra.mxu0 %v6778_v12  ;;  %6150 = vmatpush3.bf16.xpose.msra.mxu1 %v6781_v32  ;;  %v3989_v12 = vld [vmem:[%s7852_s10] sm:$0x7] }
 0xf35   : > { %4484 = vmatprep.subr.bf16.mxu0 %v6784_v33  ;;  %6151 = vmatprep.subr.bf16.mxu1 %v7219_v26  ;;  %v3994_v32 = vrot.slane %v3989_v12, %v7520_v8  ;;  %v3998_v33 = vrot.slane %v3989_v12, %v7516_v6 }
 0xf3c   : > { %4485 = vmatpush1.bf16.xpose.msra.mxu0 %v6782_v34  ;;  %6152 = vmatpush3.bf16.xpose.msra.mxu1 %v6785_v36 }
 0xf3d   : > { %4486 = vmatprep.subr.bf16.mxu0 %v6788_v37  ;;  %6153 = vmatprep.subr.bf16.mxu1 %v7219_v26 }
 0xf44   : > { %4487 = vmatpush1.bf16.xpose.msra.mxu0 %v6786_v38  ;;  %6154 = vmatpush3.bf16.xpose.msra.mxu1 %v6789_v30 }
 0xf45   : > { %5055 = vmatprep.subr.bf16.mxu0 %v6792_v40  ;;  %6000 = vmatprep.subr.bf16.mxu1 %v6838_v46 }
 0xf4b   : > { %4505 = vmatmul.mubr.bf16.vlgmr.msra.gmra.mxu0 %v3890_v14  ;;  %6156 = vmatmul.mubr.bf16.vlgmr.msra.gmra.mxu1 %v7756_v9  ;;  %v6819_v9 = vld [vmem:[#allocation14 + $0x154] ss:$12 sps:$4 sm:$0xff]  }
 0xf4c   : > { %5056 = vmatpush1.bf16.xpose.msra.mxu0 %v6790_v41  ;;  %6001 = vmatpush3.bf16.xpose.msra.mxu1 %v6839_v48  ;;  %v6860_v14 = vld [vmem:[#allocation14 + $0x8] ss:$12 sps:$4 sm:$0xff]  }
 0xf4d   : > { %5057 = vmatprep.subr.bf16.mxu0 %v6795_v42  ;;  %6002 = vmatprep.subr.bf16.mxu1 %v6841_v51 }
 0xf54   : > { %5058 = vmatpush1.bf16.xpose.msra.mxu0 %v6793_v43  ;;  %6003 = vmatpush3.bf16.xpose.msra.mxu1 %v6842_v54  ;;  %v6840_v54 = vld [vmem:[#allocation14 + $0x230] ss:$12 sps:$4 sm:$0xff]  }
 0xf55   : > { %5059 = vmatprep.subr.bf16.mxu0 %v6798_v44  ;;  %6004 = vmatprep.subr.bf16.mxu1 %v6844_v28  ;;  %v6843_v28 = vld [vmem:[#allocation14 + $0x218] ss:$12 sps:$4 sm:$0xff]  }
 0xf5c   : > { %5060 = vmatpush1.bf16.xpose.msra.mxu0 %v6796_v49  ;;  %6005 = vmatpush3.bf16.xpose.msra.mxu1 %v6845_v50  ;;  %v6849_v50 = vld [vmem:[#allocation14 + $0x1e8] ss:$12 sps:$4 sm:$0xff]  }
 0xf5d   : > { %5061 = vmatprep.subr.bf16.mxu0 %v6801_v52  ;;  %6006 = vmatprep.subr.bf16.mxu1 %v6847_v13  ;;  %v6855_v13 = vld [vmem:[#allocation14 + $0x1b8] ss:$12 sps:$4 sm:$0xff]  }
 0xf64   : > { %5062 = vmatpush1.bf16.xpose.msra.mxu0 %v6799_v55  ;;  %6007 = vmatpush3.bf16.xpose.msra.mxu1 %v6848_v58  ;;  %v4002_v58 = vrot.slane %v3989_v12, %v7518_v7 }
 0xf65   : > { %5063 = vmatprep.subr.bf16.mxu0 %v6804_v47  ;;  %6008 = vmatprep.subr.bf16.mxu1 %v6850_v60  ;;  %v6846_v47 = vld [vmem:[#allocation14 + $0x200] ss:$12 sps:$4 sm:$0xff]  }
 0xf6c   : > { %5064 = vmatpush1.bf16.xpose.msra.mxu0 %v6802_v56  ;;  %6009 = vmatpush3.bf16.xpose.msra.mxu1 %v6851_v62  ;;  %v6852_v56 = vld [vmem:[#allocation14 + $0x1d0] ss:$12 sps:$4 sm:$0xff]   ;;  %v6861_v62 = vld [vmem:[#allocation14 + $0x188] ss:$12 sps:$4 sm:$0xff]  }
 0xf6d   : > { %5065 = vmatprep.subr.bf16.mxu0 %v6807_v45  ;;  %6010 = vmatprep.subr.bf16.mxu1 %v6853_v0  ;;  %v6858_v45 = vld [vmem:[#allocation14 + $0x1a0] ss:$12 sps:$4 sm:$0xff]  }
 0xf74   : > { %5066 = vmatpush1.bf16.xpose.msra.mxu0 %v6805_v59  ;;  %6011 = vmatpush3.bf16.xpose.msra.mxu1 %v6854_v27 }
 0xf75   : > { %5067 = vmatprep.subr.bf16.mxu0 %v6810_v61  ;;  %6012 = vmatprep.subr.bf16.mxu1 %v6856_v1 }
 0xf7c   : > { %5068 = vmatpush1.bf16.xpose.msra.mxu0 %v6808_v63  ;;  %6013 = vmatpush3.bf16.xpose.msra.mxu1 %v6857_v57 }
 0xf7d   : > { %5069 = vmatprep.subr.bf16.mxu0 %v6813_v3  ;;  %6014 = vmatprep.subr.bf16.mxu1 %v6859_v10  ;;  %v6867_v10 = vld [vmem:[#allocation14 + $0x214] ss:$12 sps:$4 sm:$0xff]  }
 0xf84   : > { %5070 = vmatpush1.bf16.xpose.msra.mxu0 %v6811_v4  ;;  %6015 = vmatpush3.bf16.xpose.msra.mxu1 %v6860_v14  ;;  %v6870_v14 = vld [vmem:[#allocation14 + $0x1fc] ss:$12 sps:$4 sm:$0xff]  }
 0xf85   : > { %5071 = vmatprep.subr.bf16.mxu0 %v6816_v16  ;;  %5137 = vmatprep.subr.bf16.mxu1 %v6864_v17  ;;  %v6871_v17 = vld [vmem:[#allocation14 + $0x1e0] ss:$12 sps:$4 sm:$0xff]  }
 0xf8c   : > { %5072 = vmatpush2.bf16.xpose.msra.mxu0 %v6814_v5 }
 0xf8d   : > { %5073 = vmatprep.subr.bf16.mxu0 %v6819_v9  ;;  %v6862_v9 = vld [vmem:[#allocation14 + $0x228] ss:$12 sps:$4 sm:$0xff]  }
 0xf94   : > { %5074 = vmatpush2.bf16.xpose.msra.mxu0 %v6817_v19  ;;  %v6868_v19 = vld [vmem:[#allocation14 + $0x1f8] ss:$12 sps:$4 sm:$0xff]  }
 0xf95   : > { %5075 = vmatprep.subr.bf16.mxu0 %v6822_v15  ;;  %v6873_v15 = vld [vmem:[#allocation14 + $0x1e4] ss:$12 sps:$4 sm:$0xff]  }
 0xf9c   : > { %5076 = vmatpush2.bf16.xpose.msra.mxu0 %v6820_v18  ;;  %v6876_v18 = vld [vmem:[#allocation14 + $0x1cc] ss:$12 sps:$4 sm:$0xff]  }
 0xf9d   : > { %5077 = vmatprep.subr.bf16.mxu0 %v6825_v20  ;;  %v6874_v20 = vld [vmem:[#allocation14 + $0x1c8] ss:$12 sps:$4 sm:$0xff]  }
 0xfa4   : > { %5078 = vmatpush2.bf16.xpose.msra.mxu0 %v6823_v11  ;;  %v6879_v11 = vld [vmem:[#allocation14 + $0x1b4] ss:$12 sps:$4 sm:$0xff]  }
 0xfa5   : > { %5079 = vmatprep.subr.bf16.mxu0 %v6828_v21  ;;  %v6877_v21 = vld [vmem:[#allocation14 + $0x1b0] ss:$12 sps:$4 sm:$0xff]  }
 0xfac   : > { %5080 = vmatpush2.bf16.xpose.msra.mxu0 %v6826_v2  ;;  %v6882_v2 = vld [vmem:[#allocation14 + $0x19c] ss:$12 sps:$4 sm:$0xff]  }
 0xfad   : > { %5081 = vmatprep.subr.bf16.mxu0 %v6831_v22  ;;  %v6880_v22 = vld [vmem:[#allocation14 + $0x198] ss:$12 sps:$4 sm:$0xff]  }
 0xfb4   : > { %5082 = vmatpush2.bf16.xpose.msra.mxu0 %v6829_v23  ;;  %v6885_v23 = vld [vmem:[#allocation14 + $0x184] ss:$12 sps:$4 sm:$0xff]  }
 0xfb5   : > { %5083 = vmatprep.subr.bf16.mxu0 %v6834_v24  ;;  %v6883_v24 = vld [vmem:[#allocation14 + $0x180] ss:$12 sps:$4 sm:$0xff]  }
 0xfbc   : > { %5084 = vmatpush2.bf16.xpose.msra.mxu0 %v6832_v25 }
 0xfbd   : > { %5085 = vmatprep.subr.bf16.mxu0 %v6837_v29 }
 0xfc4   : > { %5086 = vmatpush2.bf16.xpose.msra.mxu0 %v6835_v31 }
 0xfc5   : > { %6159 = vmatprep.subr.bf16.mxu0 %v7219_v26 }
 0xfcb   : > { %v4424_v34 = vpop.f32.mrf.mxu1  ;;  %v4465_v36 = vpop.f32.mrf.mxu0 }
 0xfcc   : > { %v4425_v37 = vadd.f32 %v4424_v34, %v3994_v32  ;;  %v4654_v32 = vld [vmem:[%s7854_s12] sm:$0x7] }
 0xfcd   : > { %v4426_v38 = vpop.f32.mrf.mxu1  ;;  %v4467_v30 = vpop.f32.mrf.mxu0  ;;  %v4663_v34 = vrot.slane %v4654_v32, %v7516_v6 }
 0xfce   : > { %v4466_v40 = vadd.f32 %v4465_v36, %v4425_v37  ;;  %v4427_v41 = vadd.f32 %v4426_v38, %v3998_v33  ;;  %v4659_v33 = vrot.slane %v4654_v32, %v7520_v8 }
 0xfcf   : > { %v4428_v42 = vpop.f32.mrf.mxu1  ;;  %v4469_v43 = vpop.f32.mrf.mxu0 }
 0xfd0   : > { %v4468_v44 = vadd.f32 %v4467_v30, %v4427_v41  ;;  %v4552_v46 = vmax.f32 %v4466_v40, 0.0 }
 0xfd1   : > { %v4429_v48 = vpop.f32.mrf.mxu1  ;;  %v4470_v49 = vpop.f32.mrf.mxu0 }
 0xfd2   : > { %v4553_v51 = vmax.f32 %v4468_v44, 0.0  ;;  %v7776_v55 = vpack.c.bf16 %v4552_v46, %v4552_v46 }
 0xfd4   : > { %v4556_v52 = vpack.c.bf16 %v4553_v51, %v4553_v51  ;;  %v4667_v51 = vrot.slane %v4654_v32, %v7518_v7 }
 0xfd6   : > { %5087 = vmatprep.mubr.bf16.mxu0 %v4556_v52 }
 0xfd7   : > { %5088 = vmatmul.mubr.bf16.vlgmr.msra.gmra.mxu0 %v7776_v55 }
 0xfd8   : > { %6160 = vmatpush3.bf16.xpose.msra.mxu0 %v6840_v54  ;;  %6175 = vmatprep.mubr.msk.bf16.mxu0 %vm7220_vm0, %v7219_v26 }
 0xfd9   : > { %6161 = vmatprep.subr.bf16.mxu0 %v7219_v26 }
 0xfe0   : > { %6162 = vmatpush3.bf16.xpose.msra.mxu0 %v6843_v28 }
 0xfe1   : > { %6163 = vmatprep.subr.bf16.mxu0 %v7219_v26 }
 0xfe8   : > { %6164 = vmatpush3.bf16.xpose.msra.mxu0 %v6846_v47 }
 0xfe9   : > { %6165 = vmatprep.subr.bf16.mxu0 %v7219_v26 }
 0xff0   : > { %6166 = vmatpush3.bf16.xpose.msra.mxu0 %v6849_v50 }
 0xff1   : > { %6167 = vmatprep.subr.bf16.mxu0 %v7219_v26 }
 0xff8   : > { %6168 = vmatpush3.bf16.xpose.msra.mxu0 %v6852_v56 }
 0xff9   : > { %6169 = vmatprep.subr.bf16.mxu0 %v7219_v26 }
0x1000   : > { %6170 = vmatpush3.bf16.xpose.msra.mxu0 %v6855_v13 }
0x1001   : > { %6171 = vmatprep.subr.bf16.mxu0 %v7219_v26 }
0x1008   : > { %6172 = vmatpush3.bf16.xpose.msra.mxu0 %v6858_v45 }
0x1009   : > { %6173 = vmatprep.subr.bf16.mxu0 %v7219_v26  ;;  %v6865_v26 = vld [vmem:[#allocation14 + $0x210] ss:$12 sps:$4 sm:$0xff]  }
0x100b   : > { %v4506_v59 = vpop.f32.mrf.mxu0  ;;  %v4546_v60 = vpop.f32.mrf.mxu1 }
0x100c   : > { %v4507_v61 = vadd.f32 %v4506_v59, %v4002_v58 }
0x100d   : > { %v4508_v63 = vpop.f32.mrf.mxu0  ;;  %v6157_v0 = vpop.f32.mrf.mxu1 }
0x100e   : > { %v4547_v3 = vadd.f32 %v4546_v60, %v4507_v61 }
0x100f   : > { %v4509_v27 = vpop.f32.mrf.mxu0  ;;  %v4549_v4 = vpop.f32.mrf.mxu1 }
0x1010   : > { %v4554_v1 = vmax.f32 %v4547_v3, 0.0  ;;  %6174 = vmatpush3.bf16.xpose.msra.mxu0 %v6861_v62 }
0x1011   : > { %v4510_v16 = vpop.f32.mrf.mxu0  ;;  %v6158_v57 = vpop.f32.mrf.mxu1 }
0x1012   : > { %v4557_v5 = vpack.c.bf16 %v4554_v1, %v4554_v1 }
0x1014   : > { %6016 = vmatprep.mubr.bf16.mxu1 %v4557_v5 }
0x1015   : > { %6017 = vmatmul.mubr.bf16.vlgmr.msra.gmra.mxu1 %v4557_v5 }
0x1016   : > { %5138 = vmatpush1.bf16.xpose.msra.mxu1 %v6862_v9  ;;  %5169 = vmatprep.mubr.bf16.mxu1 %v4556_v52 }
0x1017   : > { %6176 = vmatmul.mubr.bf16.vlgmr.msra.gmra.mxu0 %v4557_v5  ;;  %5139 = vmatprep.subr.bf16.mxu1 %v6867_v10 }
0x101e   : > { %5140 = vmatpush1.bf16.xpose.msra.mxu1 %v6865_v26 }
0x101f   : > { %5141 = vmatprep.subr.bf16.mxu1 %v6870_v14 }
0x1026   : > { %5142 = vmatpush1.bf16.xpose.msra.mxu1 %v6868_v19 }
0x1027   : > { %5143 = vmatprep.subr.bf16.mxu1 %v6873_v15 }
0x102e   : > { %5144 = vmatpush1.bf16.xpose.msra.mxu1 %v6871_v17 }
0x102f   : > { %5145 = vmatprep.subr.bf16.mxu1 %v6876_v18 }
0x1036   : > { %5146 = vmatpush1.bf16.xpose.msra.mxu1 %v6874_v20 }
0x1037   : > { %5147 = vmatprep.subr.bf16.mxu1 %v6879_v11 }
0x103e   : > { %5148 = vmatpush1.bf16.xpose.msra.mxu1 %v6877_v21 }
0x103f   : > { %5149 = vmatprep.subr.bf16.mxu1 %v6882_v2 }
0x1046   : > { %5150 = vmatpush1.bf16.xpose.msra.mxu1 %v6880_v22 }
0x1047   : > { %5151 = vmatprep.subr.bf16.mxu1 %v6885_v23 }
0x104e   : > { %5152 = vmatpush1.bf16.xpose.msra.mxu1 %v6883_v24 }
0x1055   : > { %5170 = vmatmul.mubr.bf16.vlgmr.msra.gmra.mxu1 %v7776_v55 }
0x1097   : > { %v5089_v25 = vpop.f32.mrf.mxu0 }
0x1098   : > { %v5090_v36 = vadd.f32 %v5089_v25, %v4659_v33 }
0x1099   : > { %v5091_v29 = vpop.f32.mrf.mxu0 }
0x109a   : > { %v5092_v38 = vadd.f32 %v5091_v29, %v4663_v34 }
0x109b   : > { %v5093_v31 = vpop.f32.mrf.mxu0 }
0x109d   : > { %v5094_v12 = vpop.f32.mrf.mxu0 }
0x10d5   : > { %v5130_v37 = vpop.f32.mrf.mxu1 }
0x10d6   : > { %v5131_v30 = vadd.f32 %v5130_v37, %v5090_v36 }
0x10d7   : > { %v5132_v40 = vpop.f32.mrf.mxu1  ;;  %v5211_v41 = vpop.f32.mrf.mxu0 }
0x10d8   : > { %v5217_v42 = vadd.f32 %v5131_v30, %v7732_v39  ;;  %v5133_v43 = vadd.f32 %v5132_v40, %v5092_v38 }
0x10d9   : > { %v5134_v44 = vpop.f32.mrf.mxu1  ;;  %v6177_v46 = vpop.f32.mrf.mxu0 }
0x10da   : > { %5220 = vst [vmem:[%s552_s18] sm:$0xff] %v5217_v42  ;;  %v5218_v48 = vadd.f32 %v5133_v43, %v7729_v35 }
0x10db   : > { %v5135_v8 = vpop.f32.mrf.mxu1  ;;  %v5214_v49 = vpop.f32.mrf.mxu0 }
0x10dc   : > { %5221 = vst [vmem:[%s552_s18 + $0x8] sm:$0xff] %v5218_v48 }
0x10dd   : > { %v6178_v6 = vpop.f32.mrf.mxu0 }
0x1115   : > { %v5171_v52 = vpop.f32.mrf.mxu1 }
0x1116   : > { %v5172_v54 = vadd.f32 %v5171_v52, %v4667_v51 }
0x1117   : > { %v5173_v39 = vpop.f32.mrf.mxu1 }
0x1118   : > { %v5212_v55 = vadd.f32 %v5211_v41, %v5172_v54 }
0x1119   : > { %v5174_v28 = vpop.f32.mrf.mxu1 }
0x111a   : > { %v5219_v47 = vadd.f32 %v5212_v55, %v7735_v53 }
0x111b   : > { %v5175_v35 = vpop.f32.mrf.mxu1 }
0x111c   : > { %5222 = vst [vmem:[%s552_s18 + $0x10] sm:$0xff] %v5219_v47 }
0x111d   : > { %7140 = shalt.err (!%p7137_p12)
}
0x111e   : > { %s7141_s23 = scalar_lea.hbm %s7805_s4, 384  ;;  %s7145_s29 = scalar_lea.hbm %s7855_s13, 768 }
0x111f   : > { %p7142_p13 = scmp.ne.s32.totalorder %s7805_s4, %s7141_s23  ;;  %p7146_p2 = scmp.lt.s32.totalorder %s7805_s4, %s7855_s13 }
0x1120   : > { %p7147_p5 = scmp.lt.s32.totalorder %s7145_s29, %s7141_s23 }
0x1121   : > { %p7143_p7 = pnand %p7142_p13, %p7899_p10 }
0x1122   : > { %p7148_p8 = por %p7147_p5, %p7146_p2 }
0x1123   : > { %p7144_p0 = pneg %p7143_p7 }
0x1125   : > { %p7149_p11 = pnand %p7148_p8, %p7144_p0 }
0x1127   : > { %7152 = shalt.err (!%p7149_p11)
}
0x1128   : > { %6213 = dma.vmem_to_hbm [thread:$0]  (%p7899_p10), %s5239_s1, 384, %s7805_s4, %s5224_s15  }
0x1129 PF: > { %s5250_s18 = sand.u32 1, %s7195_s25   ;;  %p7900_p1 = scmp.ne.s32.totalorder %s7887_s20, 0 }
0x112a   : > { %p7901_p3 = scmp.ge.s32.totalorder %s7207_s28, 2  ;;  %s5251_s11 = scalar_lea.sflag [#allocation4], %s5250_s18 }
0x112c   : > { %p6242_p4 = pnand %p7901_p3, %p7900_p1 }
0x112e   : > { %p6243_p9 = pneg %p6242_p4 }
0x1130   : > { %7190 = dma.done.wait (%p6243_p9), %s5251_s11, 384  }
0x1131   : > { %7192 = vsyncadd (%p6243_p9), %s5251_s11, 4294966912  ;;  %s7902_s9 = sld [smem:[#allocation23_spill]]  ;;  %p30_p6 = scmp.ge.s32.totalorder %s7416_s21, 4  }
0x1132   : > { %s7903_s25 = smov %s7199_s26  ;;  %s7904_s26 = smov %s7203_s27 }
0x1133   : > { %s7906_s28 = smov %s7416_s21  ;;  %32 = sbr.rel (!%p30_p6) target bundleno = 17 (0x11), region = 145 }
0x1137   : > { %s7905_s27 = smov %s7902_s9 }
0x1138   :  { %5256 = vsyncpa [#allocation3], 1 }
0x1139   :  { %5258 = vsyncpa [#allocation3 + $0x1], 1 }
0x113a   :  { %5259 = vsyncpa [#allocation6], 1 }
0x113b   :  { %5260 = vsyncpa [#allocation9], 1 }
0x113c   :  { %5261 = vsyncpa [#allocation12], 1 }
0x113d   :  { %5262 = vsyncpa [#allocation15], 1 }
0x113e   :  { %5263 = vsyncpa [#allocation4], 1 }
0x113f   :  { %5265 = vsyncpa [#allocation4 + $0x1], 1 }

</bundles_post_ra>
